<compile_context>
chip_gen: v7x
topology: tpu7x:2x2x1
jax: 0.10.0
libtpu: 0.0.40
codegen_flags: <defaults>
</compile_context>

<pallas_src>
import jax
import jax.numpy as jnp
from jax import lax
from jax.experimental import pallas as pl
from jax.experimental.pallas import tpu as pltpu


def make_encoder_kernel(T, B, Din, H, L):
    """Fused encoder kernel for static dims (seq T, batch B, in-width Din=max(E,H), hidden H,
    layers L). Runs with grid=(L,); one grid step == one GRU layer."""
    TB = T * B

    def kernel(ids_ref,      # SMEM (TB,) int32      scalar-prefetched token ids
               emb_ref,      # HBM  (V, Din) f32     embedding table (memory_space=pl.ANY)
               wih_ref,      # VMEM (1, 3, Din, H)   gate-major input weights [r, z, n]
               whh_ref,      # VMEM (1, H, 3H)       fused hidden weights, columns [r | z | n]
               big_ref,      # VMEM (1, 3, 1, H)     input biases (b_hr/b_hz folded in)
               bhn_ref,      # VMEM (1, 1, H)        b_hn
               out_ref,      # VMEM (T, H)           top-layer h of last batch element
               xbuf,         # VMEM scratch (TB, Din): layer input (persists across grid steps)
               sems):        # DMA semaphores (TB,)
        layer = pl.program_id(0)
        last = pl.num_programs(0) - 1
        f32 = jnp.float32

        # ---- Layer 0 only: DMA-gather embedding rows straight out of HBM ----------------
        @pl.when(layer == 0)
        def _gather():
            copies = []
            for r in range(TB):                               # TB is small & static here
                tok = ids_ref[r]                              # scalar read from SMEM
                cp = pltpu.make_async_copy(
                    emb_ref.at[pl.ds(tok, 1)],                # (1, Din) row in HBM
                    xbuf.at[pl.ds(r, 1)],                     # (1, Din) slot in VMEM
                    sems.at[r])
                cp.start()
                copies.append(cp)
            for cp in copies:                                 # all rows in flight, then wait
                cp.wait()
            # TODO(synk): for large T*B switch to a chunked, double-buffered gather loop.

        x = xbuf[...]                                         # (TB, Din)

        w_ir = wih_ref[0, 0]                                  # (Din, H)  lane-dense per gate
        w_iz = wih_ref[0, 1]
        w_in = wih_ref[0, 2]
        w_hh = whh_ref[0]                                     # (H, 3H)
        b_ir = big_ref[0, 0]                                  # (1, H)
        b_iz = big_ref[0, 1]
        b_in = big_ref[0, 2]
        b_hn = bhn_ref[0]                                     # (1, H)

        # ---- Hoisted input projections for ALL timesteps, one matmul per gate ------------
        gin_r = jnp.dot(x, w_ir, preferred_element_type=f32) + b_ir   # (TB, H)
        gin_z = jnp.dot(x, w_iz, preferred_element_type=f32) + b_iz
        gin_n = jnp.dot(x, w_in, preferred_element_type=f32) + b_in

        # Pre-slice per-timestep blocks: h-independent, so these sit off the recurrence's
        # serial dependency chain and the scheduler overlaps them with the h matmuls.
        gr = [gin_r[t * B:(t + 1) * B] for t in range(T)]
        gz = [gin_z[t * B:(t + 1) * B] for t in range(T)]
        gn = [gin_n[t * B:(t + 1) * B] for t in range(T)]

        # ---- Recurrence: one h-dependent matmul per step, h carried in registers ---------
        # TODO(synk): keep w_hh MXU-resident across the T steps via
        #   pltpu.matmul_push_rhs / matmul_acc_lhs / matmul_pop.
        # TODO(synk): for large T switch to lax.fori_loop(..., unroll=4..8) with h as carry.
        h = jnp.zeros((B, H), f32)
        hs = []
        for t in range(T):                                    # fully unrolled (T static, small)
            hh = jnp.dot(h, w_hh, preferred_element_type=f32)          # (B, 3H)
            r = jax.nn.sigmoid(gr[t] + hh[:, 0:H])
            z = jax.nn.sigmoid(gz[t] + hh[:, H:2 * H])
            n = jnp.tanh(gn[t] + r * (hh[:, 2 * H:3 * H] + b_hn))
            h = n + z * (h - n)                               # == (1 - z) * n + z * h
            hs.append(h)

        # ---- Inter-layer hand-off: one bulk VMEM write (not T masked per-step stores) ----
        @pl.when(layer != last)
        def _to_next_layer():
            nxt = jnp.concatenate(hs, axis=0)                 # (TB, H)
            if Din > H:                                       # only if embed_size > hidden_size
                nxt = jnp.concatenate([nxt, jnp.zeros((TB, Din - H), f32)], axis=1)
            xbuf[...] = nxt

        # ---- Final output: only output[:, -1, :] is consumed -> write (T, H) in ONE store -
        @pl.when(layer == last)
        def _write_out():
            out_ref[...] = jnp.concatenate([hv[B - 1:B, :] for hv in hs], axis=0)

    return kernel


def init_encoder_params(key, vocab_size, embed_size, hidden_size, num_layers):
    """Synthetic params in native PyTorch layout (nn.Embedding + nn.GRU)."""
    H = hidden_size
    keys = jax.random.split(key, 1 + 4 * num_layers)
    params = {"embedding": jax.random.normal(keys[0], (vocab_size, embed_size), jnp.float32)}
    bound = hidden_size ** -0.5
    layers = []
    for l in range(num_layers):
        in_sz = embed_size if l == 0 else H
        k = keys[1 + 4 * l: 1 + 4 * (l + 1)]
        layers.append({
            "w_ih": jax.random.uniform(k[0], (3 * H, in_sz), jnp.float32, -bound, bound),
            "w_hh": jax.random.uniform(k[1], (3 * H, H), jnp.float32, -bound, bound),
            "b_ih": jax.random.uniform(k[2], (3 * H,), jnp.float32, -bound, bound),
            "b_hh": jax.random.uniform(k[3], (3 * H,), jnp.float32, -bound, bound),
        })
    params["gru_layers"] = layers
    return params


def pack_encoder_params(params):
    """Pre-pack once: gate-major, transposed, bias-folded, layer-stacked arrays."""
    emb = params["embedding"].astype(jnp.float32)
    V, E = emb.shape
    layers = params["gru_layers"]
    H = layers[0]["w_hh"].shape[1]
    Din = max(E, H)                                   # uniform in-width across stacked layers

    emb_p = jnp.pad(emb, ((0, 0), (0, Din - E))) if Din > E else emb

    w_ih_g, w_hh_f, b_ig, b_hn = [], [], [], []
    for lay in layers:
        in_sz = lay["w_ih"].shape[1]
        gi, gb = [], []
        for g in range(3):                            # PyTorch gate order: r, z, n
            w = lay["w_ih"][g * H:(g + 1) * H, :].T   # (in, H)
            if Din > in_sz:
                w = jnp.pad(w, ((0, Din - in_sz), (0, 0)))
            gi.append(w)
            b = lay["b_ih"][g * H:(g + 1) * H]
            if g < 2:                                 # fold b_hr / b_hz into the input bias
                b = b + lay["b_hh"][g * H:(g + 1) * H]
            gb.append(b.reshape(1, H))
        w_ih_g.append(jnp.stack(gi))                  # (3, Din, H)
        b_ig.append(jnp.stack(gb))                    # (3, 1, H)
        w_hh_f.append(lay["w_hh"].T)                  # (H, 3H), column blocks [r | z | n]
        b_hn.append(lay["b_hh"][2 * H:].reshape(1, H))
    return {
        "embedding": emb_p,                           # (V, Din)
        "w_ih_g": jnp.stack(w_ih_g),                  # (L, 3, Din, H)
        "w_hh": jnp.stack(w_hh_f),                    # (L, H, 3H)
        "b_ig": jnp.stack(b_ig),                      # (L, 3, 1, H)
        "b_hn": jnp.stack(b_hn),                      # (L, 1, H)
    }


def encoder_rnn_forward(inputs, packed):
    """inputs: (seq_len, batch) integer ids. Returns output[:, -1, :].squeeze()."""
    T, B = inputs.shape
    emb = packed["embedding"]
    V, Din = emb.shape
    w_ih_g, w_hh, b_ig, b_hn = packed["w_ih_g"], packed["w_hh"], packed["b_ig"], packed["b_hn"]
    L = w_ih_g.shape[0]
    H = w_hh.shape[1]

    # nn.Embedding raises on out-of-range ids; clamp instead to avoid OOB DMA.
    ids = jnp.clip(inputs.astype(jnp.int32), 0, V - 1).reshape(T * B)

    grid_spec = pltpu.PrefetchScalarGridSpec(
        num_scalar_prefetch=1,                        # ids -> SMEM
        grid=(L,),                                    # stream one layer's weights per grid step
        in_specs=[
            pl.BlockSpec(memory_space=pl.ANY),                               # table stays in HBM
            pl.BlockSpec((1, 3, Din, H), lambda l, ids: (l, 0, 0, 0)),       # w_ih (gate-major)
            pl.BlockSpec((1, H, 3 * H), lambda l, ids: (l, 0, 0)),           # w_hh (fused)
            pl.BlockSpec((1, 3, 1, H), lambda l, ids: (l, 0, 0, 0)),         # folded input biases
            pl.BlockSpec((1, 1, H), lambda l, ids: (l, 0, 0)),               # b_hn
        ],
        out_specs=pl.BlockSpec((T, H), lambda l, ids: (0, 0)),               # resident output
        scratch_shapes=[
            pltpu.VMEM((T * B, Din), jnp.float32),    # gathered embeds / inter-layer activations
            pltpu.SemaphoreType.DMA((T * B,)),        # one sem per gathered row
        ],
    )

    out = pl.pallas_call(
        make_encoder_kernel(T, B, Din, H, L),
        out_shape=jax.ShapeDtypeStruct((T, H), jnp.float32),
        grid_spec=grid_spec,
        compiler_params=pltpu.CompilerParams(
            dimension_semantics=("arbitrary",),       # layers are strictly sequential
            vmem_limit_bytes=32 * 1024 * 1024,        # explicit budget; safe on v5e/v6e/v7x
        ),
        # TODO(synk): when batch grows, add a leading batch-chunk grid axis marked "parallel"
        # so v7x's second TensorCore runs its own independent recurrences.
    )(ids, emb, w_ih_g, w_hh, b_ig, b_hn)

    # == torch: output[:, -1, :].squeeze()
    return jnp.squeeze(out)


if __name__ == "__main__":
    vocab_size, embed_size, hidden_size, num_layers = 20, 32, 32, 2
    seq_len, batch = 8, 2

    root = jax.random.PRNGKey(0)
    k_params, k_inputs = jax.random.split(root)
    params = init_encoder_params(k_params, vocab_size, embed_size, hidden_size, num_layers)
    packed = pack_encoder_params(params)
    inputs = jax.random.randint(k_inputs, (seq_len, batch), 0, vocab_size, jnp.int32)

    out = encoder_rnn_forward(inputs, packed)
    out = jax.block_until_ready(out)
    assert out.shape == (seq_len, hidden_size), out.shape
    assert bool(jnp.all(jnp.isfinite(out)))
    print("KERNEL_OK")
</pallas_src>

<mosaic_0001>
module attributes {stable_mosaic.version = 11 : i64} {
  func.func @kernel(%arg0: i32, %arg1: memref<16xi32, #tpu.memory_space<smem>>, %arg2: memref<20x32xf32, #tpu.memory_space<any>>, %arg3: memref<1x3x32x32xf32, #tpu.memory_space<vmem>>, %arg4: memref<1x32x96xf32, #tpu.memory_space<vmem>>, %arg5: memref<1x3x1x32xf32, #tpu.memory_space<vmem>>, %arg6: memref<1x1x32xf32, #tpu.memory_space<vmem>>, %arg7: memref<8x32xf32, #tpu.memory_space<vmem>>, %arg8: memref<16x32xf32, #tpu.memory_space<vmem>>, %arg9: memref<16x!tpu.dma_semaphore, #tpu.memory_space<semaphore_mem>>) attributes {dimension_semantics = [#tpu.dimension_semantics<arbitrary>], iteration_bounds = array<i64: 2>, scalar_prefetch = 1 : i64, scratch_operands = 2 : i64, tpu.core_type = #tpu.core_type<tc>, window_params = [{}, {transform_indices = @transform_1, window_bounds = array<i64: 1, 3, 32, 32>}, {transform_indices = @transform_2, window_bounds = array<i64: 1, 32, 96>}, {transform_indices = @transform_3, window_bounds = array<i64: 1, 3, 1, 32>}, {transform_indices = @transform_4, window_bounds = array<i64: 1, 1, 32>}, {pipeline_mode = #tpu.pipeline_mode<synchronous>, transform_indices = @transform_5, window_bounds = array<i64: 8, 32>}]} {
    %c0_i32 = arith.constant 0 : i32
    %0 = arith.cmpi eq, %arg0, %c0_i32 : i32
    %1 = arith.extui %0 : i1 to i32
    %c0_i32_0 = arith.constant 0 : i32
    %2 = arith.cmpi ne, %1, %c0_i32_0 : i32
    scf.if %2 {
      %c0_60 = arith.constant 0 : index
      %252 = memref.load %arg1[%c0_60] : memref<16xi32, #tpu.memory_space<smem>>
      %c0_i32_61 = arith.constant 0 : i32
      %c0_i32_62 = arith.constant 0 : i32
      %253 = tpu.memref_slice %arg2[%252, %c0_i32_62] : memref<20x32xf32, #tpu.memory_space<any>> -> memref<1x32xf32, #tpu.memory_space<any>>
      %c0_i32_63 = arith.constant 0 : i32
      %c0_i32_64 = arith.constant 0 : i32
      %254 = tpu.memref_slice %arg8[%c0_i32_63, %c0_i32_64] : memref<16x32xf32, #tpu.memory_space<vmem>> -> memref<1x32xf32, #tpu.memory_space<vmem>>
      %255 = tpu.memref_slice %arg9[%c0_i32_61] : memref<16x!tpu.dma_semaphore, #tpu.memory_space<semaphore_mem>> -> memref<1x!tpu.dma_semaphore, #tpu.memory_space<semaphore_mem>>
      %256 = tpu.memref_squeeze %255 : memref<1x!tpu.dma_semaphore, #tpu.memory_space<semaphore_mem>> -> memref<!tpu.dma_semaphore, #tpu.memory_space<semaphore_mem>>
      tpu.enqueue_dma source(%253 : memref<1x32xf32, #tpu.memory_space<any>>) target(%254 : memref<1x32xf32, #tpu.memory_space<vmem>>) target_semaphore(%256 : memref<!tpu.dma_semaphore, #tpu.memory_space<semaphore_mem>>)
      %c1_65 = arith.constant 1 : index
      %257 = memref.load %arg1[%c1_65] : memref<16xi32, #tpu.memory_space<smem>>
      %c1_i32_66 = arith.constant 1 : i32
      %c0_i32_67 = arith.constant 0 : i32
      %258 = tpu.memref_slice %arg2[%257, %c0_i32_67] : memref<20x32xf32, #tpu.memory_space<any>> -> memref<1x32xf32, #tpu.memory_space<any>>
      %c1_i32_68 = arith.constant 1 : i32
      %c0_i32_69 = arith.constant 0 : i32
      %259 = tpu.memref_slice %arg8[%c1_i32_68, %c0_i32_69] : memref<16x32xf32, #tpu.memory_space<vmem>> -> memref<1x32xf32, #tpu.memory_space<vmem>>
      %260 = tpu.memref_slice %arg9[%c1_i32_66] : memref<16x!tpu.dma_semaphore, #tpu.memory_space<semaphore_mem>> -> memref<1x!tpu.dma_semaphore, #tpu.memory_space<semaphore_mem>>
      %261 = tpu.memref_squeeze %260 : memref<1x!tpu.dma_semaphore, #tpu.memory_space<semaphore_mem>> -> memref<!tpu.dma_semaphore, #tpu.memory_space<semaphore_mem>>
      tpu.enqueue_dma source(%258 : memref<1x32xf32, #tpu.memory_space<any>>) target(%259 : memref<1x32xf32, #tpu.memory_space<vmem>>) target_semaphore(%261 : memref<!tpu.dma_semaphore, #tpu.memory_space<semaphore_mem>>)
      %c2_70 = arith.constant 2 : index
      %262 = memref.load %arg1[%c2_70] : memref<16xi32, #tpu.memory_space<smem>>
      %c2_i32 = arith.constant 2 : i32
      %c0_i32_71 = arith.constant 0 : i32
      %263 = tpu.memref_slice %arg2[%262, %c0_i32_71] : memref<20x32xf32, #tpu.memory_space<any>> -> memref<1x32xf32, #tpu.memory_space<any>>
      %c2_i32_72 = arith.constant 2 : i32
      %c0_i32_73 = arith.constant 0 : i32
      %264 = tpu.memref_slice %arg8[%c2_i32_72, %c0_i32_73] : memref<16x32xf32, #tpu.memory_space<vmem>> -> memref<1x32xf32, #tpu.memory_space<vmem>>
      %265 = tpu.memref_slice %arg9[%c2_i32] : memref<16x!tpu.dma_semaphore, #tpu.memory_space<semaphore_mem>> -> memref<1x!tpu.dma_semaphore, #tpu.memory_space<semaphore_mem>>
      %266 = tpu.memref_squeeze %265 : memref<1x!tpu.dma_semaphore, #tpu.memory_space<semaphore_mem>> -> memref<!tpu.dma_semaphore, #tpu.memory_space<semaphore_mem>>
      tpu.enqueue_dma source(%263 : memref<1x32xf32, #tpu.memory_space<any>>) target(%264 : memref<1x32xf32, #tpu.memory_space<vmem>>) target_semaphore(%266 : memref<!tpu.dma_semaphore, #tpu.memory_space<semaphore_mem>>)
      %c3 = arith.constant 3 : index
      %267 = memref.load %arg1[%c3] : memref<16xi32, #tpu.memory_space<smem>>
      %c3_i32 = arith.constant 3 : i32
      %c0_i32_74 = arith.constant 0 : i32
      %268 = tpu.memref_slice %arg2[%267, %c0_i32_74] : memref<20x32xf32, #tpu.memory_space<any>> -> memref<1x32xf32, #tpu.memory_space<any>>
      %c3_i32_75 = arith.constant 3 : i32
      %c0_i32_76 = arith.constant 0 : i32
      %269 = tpu.memref_slice %arg8[%c3_i32_75, %c0_i32_76] : memref<16x32xf32, #tpu.memory_space<vmem>> -> memref<1x32xf32, #tpu.memory_space<vmem>>
      %270 = tpu.memref_slice %arg9[%c3_i32] : memref<16x!tpu.dma_semaphore, #tpu.memory_space<semaphore_mem>> -> memref<1x!tpu.dma_semaphore, #tpu.memory_space<semaphore_mem>>
      %271 = tpu.memref_squeeze %270 : memref<1x!tpu.dma_semaphore, #tpu.memory_space<semaphore_mem>> -> memref<!tpu.dma_semaphore, #tpu.memory_space<semaphore_mem>>
      tpu.enqueue_dma source(%268 : memref<1x32xf32, #tpu.memory_space<any>>) target(%269 : memref<1x32xf32, #tpu.memory_space<vmem>>) target_semaphore(%271 : memref<!tpu.dma_semaphore, #tpu.memory_space<semaphore_mem>>)
      %c4 = arith.constant 4 : index
      %272 = memref.load %arg1[%c4] : memref<16xi32, #tpu.memory_space<smem>>
      %c4_i32 = arith.constant 4 : i32
      %c0_i32_77 = arith.constant 0 : i32
      %273 = tpu.memref_slice %arg2[%272, %c0_i32_77] : memref<20x32xf32, #tpu.memory_space<any>> -> memref<1x32xf32, #tpu.memory_space<any>>
      %c4_i32_78 = arith.constant 4 : i32
      %c0_i32_79 = arith.constant 0 : i32
      %274 = tpu.memref_slice %arg8[%c4_i32_78, %c0_i32_79] : memref<16x32xf32, #tpu.memory_space<vmem>> -> memref<1x32xf32, #tpu.memory_space<vmem>>
      %275 = tpu.memref_slice %arg9[%c4_i32] : memref<16x!tpu.dma_semaphore, #tpu.memory_space<semaphore_mem>> -> memref<1x!tpu.dma_semaphore, #tpu.memory_space<semaphore_mem>>
      %276 = tpu.memref_squeeze %275 : memref<1x!tpu.dma_semaphore, #tpu.memory_space<semaphore_mem>> -> memref<!tpu.dma_semaphore, #tpu.memory_space<semaphore_mem>>
      tpu.enqueue_dma source(%273 : memref<1x32xf32, #tpu.memory_space<any>>) target(%274 : memref<1x32xf32, #tpu.memory_space<vmem>>) target_semaphore(%276 : memref<!tpu.dma_semaphore, #tpu.memory_space<semaphore_mem>>)
      %c5 = arith.constant 5 : index
      %277 = memref.load %arg1[%c5] : memref<16xi32, #tpu.memory_space<smem>>
      %c5_i32 = arith.constant 5 : i32
      %c0_i32_80 = arith.constant 0 : i32
      %278 = tpu.memref_slice %arg2[%277, %c0_i32_80] : memref<20x32xf32, #tpu.memory_space<any>> -> memref<1x32xf32, #tpu.memory_space<any>>
      %c5_i32_81 = arith.constant 5 : i32
      %c0_i32_82 = arith.constant 0 : i32
      %279 = tpu.memref_slice %arg8[%c5_i32_81, %c0_i32_82] : memref<16x32xf32, #tpu.memory_space<vmem>> -> memref<1x32xf32, #tpu.memory_space<vmem>>
      %280 = tpu.memref_slice %arg9[%c5_i32] : memref<16x!tpu.dma_semaphore, #tpu.memory_space<semaphore_mem>> -> memref<1x!tpu.dma_semaphore, #tpu.memory_space<semaphore_mem>>
      %281 = tpu.memref_squeeze %280 : memref<1x!tpu.dma_semaphore, #tpu.memory_space<semaphore_mem>> -> memref<!tpu.dma_semaphore, #tpu.memory_space<semaphore_mem>>
      tpu.enqueue_dma source(%278 : memref<1x32xf32, #tpu.memory_space<any>>) target(%279 : memref<1x32xf32, #tpu.memory_space<vmem>>) target_semaphore(%281 : memref<!tpu.dma_semaphore, #tpu.memory_space<semaphore_mem>>)
      %c6 = arith.constant 6 : index
      %282 = memref.load %arg1[%c6] : memref<16xi32, #tpu.memory_space<smem>>
      %c6_i32 = arith.constant 6 : i32
      %c0_i32_83 = arith.constant 0 : i32
      %283 = tpu.memref_slice %arg2[%282, %c0_i32_83] : memref<20x32xf32, #tpu.memory_space<any>> -> memref<1x32xf32, #tpu.memory_space<any>>
      %c6_i32_84 = arith.constant 6 : i32
      %c0_i32_85 = arith.constant 0 : i32
      %284 = tpu.memref_slice %arg8[%c6_i32_84, %c0_i32_85] : memref<16x32xf32, #tpu.memory_space<vmem>> -> memref<1x32xf32, #tpu.memory_space<vmem>>
      %285 = tpu.memref_slice %arg9[%c6_i32] : memref<16x!tpu.dma_semaphore, #tpu.memory_space<semaphore_mem>> -> memref<1x!tpu.dma_semaphore, #tpu.memory_space<semaphore_mem>>
      %286 = tpu.memref_squeeze %285 : memref<1x!tpu.dma_semaphore, #tpu.memory_space<semaphore_mem>> -> memref<!tpu.dma_semaphore, #tpu.memory_space<semaphore_mem>>
      tpu.enqueue_dma source(%283 : memref<1x32xf32, #tpu.memory_space<any>>) target(%284 : memref<1x32xf32, #tpu.memory_space<vmem>>) target_semaphore(%286 : memref<!tpu.dma_semaphore, #tpu.memory_space<semaphore_mem>>)
      %c7 = arith.constant 7 : index
      %287 = memref.load %arg1[%c7] : memref<16xi32, #tpu.memory_space<smem>>
      %c7_i32 = arith.constant 7 : i32
      %c0_i32_86 = arith.constant 0 : i32
      %288 = tpu.memref_slice %arg2[%287, %c0_i32_86] : memref<20x32xf32, #tpu.memory_space<any>> -> memref<1x32xf32, #tpu.memory_space<any>>
      %c7_i32_87 = arith.constant 7 : i32
      %c0_i32_88 = arith.constant 0 : i32
      %289 = tpu.memref_slice %arg8[%c7_i32_87, %c0_i32_88] : memref<16x32xf32, #tpu.memory_space<vmem>> -> memref<1x32xf32, #tpu.memory_space<vmem>>
      %290 = tpu.memref_slice %arg9[%c7_i32] : memref<16x!tpu.dma_semaphore, #tpu.memory_space<semaphore_mem>> -> memref<1x!tpu.dma_semaphore, #tpu.memory_space<semaphore_mem>>
      %291 = tpu.memref_squeeze %290 : memref<1x!tpu.dma_semaphore, #tpu.memory_space<semaphore_mem>> -> memref<!tpu.dma_semaphore, #tpu.memory_space<semaphore_mem>>
      tpu.enqueue_dma source(%288 : memref<1x32xf32, #tpu.memory_space<any>>) target(%289 : memref<1x32xf32, #tpu.memory_space<vmem>>) target_semaphore(%291 : memref<!tpu.dma_semaphore, #tpu.memory_space<semaphore_mem>>)
      %c8 = arith.constant 8 : index
      %292 = memref.load %arg1[%c8] : memref<16xi32, #tpu.memory_space<smem>>
      %c8_i32 = arith.constant 8 : i32
      %c0_i32_89 = arith.constant 0 : i32
      %293 = tpu.memref_slice %arg2[%292, %c0_i32_89] : memref<20x32xf32, #tpu.memory_space<any>> -> memref<1x32xf32, #tpu.memory_space<any>>
      %c8_i32_90 = arith.constant 8 : i32
      %c0_i32_91 = arith.constant 0 : i32
      %294 = tpu.memref_slice %arg8[%c8_i32_90, %c0_i32_91] : memref<16x32xf32, #tpu.memory_space<vmem>> -> memref<1x32xf32, #tpu.memory_space<vmem>>
      %295 = tpu.memref_slice %arg9[%c8_i32] : memref<16x!tpu.dma_semaphore, #tpu.memory_space<semaphore_mem>> -> memref<1x!tpu.dma_semaphore, #tpu.memory_space<semaphore_mem>>
      %296 = tpu.memref_squeeze %295 : memref<1x!tpu.dma_semaphore, #tpu.memory_space<semaphore_mem>> -> memref<!tpu.dma_semaphore, #tpu.memory_space<semaphore_mem>>
      tpu.enqueue_dma source(%293 : memref<1x32xf32, #tpu.memory_space<any>>) target(%294 : memref<1x32xf32, #tpu.memory_space<vmem>>) target_semaphore(%296 : memref<!tpu.dma_semaphore, #tpu.memory_space<semaphore_mem>>)
      %c9 = arith.constant 9 : index
      %297 = memref.load %arg1[%c9] : memref<16xi32, #tpu.memory_space<smem>>
      %c9_i32 = arith.constant 9 : i32
      %c0_i32_92 = arith.constant 0 : i32
      %298 = tpu.memref_slice %arg2[%297, %c0_i32_92] : memref<20x32xf32, #tpu.memory_space<any>> -> memref<1x32xf32, #tpu.memory_space<any>>
      %c9_i32_93 = arith.constant 9 : i32
      %c0_i32_94 = arith.constant 0 : i32
      %299 = tpu.memref_slice %arg8[%c9_i32_93, %c0_i32_94] : memref<16x32xf32, #tpu.memory_space<vmem>> -> memref<1x32xf32, #tpu.memory_space<vmem>>
      %300 = tpu.memref_slice %arg9[%c9_i32] : memref<16x!tpu.dma_semaphore, #tpu.memory_space<semaphore_mem>> -> memref<1x!tpu.dma_semaphore, #tpu.memory_space<semaphore_mem>>
      %301 = tpu.memref_squeeze %300 : memref<1x!tpu.dma_semaphore, #tpu.memory_space<semaphore_mem>> -> memref<!tpu.dma_semaphore, #tpu.memory_space<semaphore_mem>>
      tpu.enqueue_dma source(%298 : memref<1x32xf32, #tpu.memory_space<any>>) target(%299 : memref<1x32xf32, #tpu.memory_space<vmem>>) target_semaphore(%301 : memref<!tpu.dma_semaphore, #tpu.memory_space<semaphore_mem>>)
      %c10 = arith.constant 10 : index
      %302 = memref.load %arg1[%c10] : memref<16xi32, #tpu.memory_space<smem>>
      %c10_i32 = arith.constant 10 : i32
      %c0_i32_95 = arith.constant 0 : i32
      %303 = tpu.memref_slice %arg2[%302, %c0_i32_95] : memref<20x32xf32, #tpu.memory_space<any>> -> memref<1x32xf32, #tpu.memory_space<any>>
      %c10_i32_96 = arith.constant 10 : i32
      %c0_i32_97 = arith.constant 0 : i32
      %304 = tpu.memref_slice %arg8[%c10_i32_96, %c0_i32_97] : memref<16x32xf32, #tpu.memory_space<vmem>> -> memref<1x32xf32, #tpu.memory_space<vmem>>
      %305 = tpu.memref_slice %arg9[%c10_i32] : memref<16x!tpu.dma_semaphore, #tpu.memory_space<semaphore_mem>> -> memref<1x!tpu.dma_semaphore, #tpu.memory_space<semaphore_mem>>
      %306 = tpu.memref_squeeze %305 : memref<1x!tpu.dma_semaphore, #tpu.memory_space<semaphore_mem>> -> memref<!tpu.dma_semaphore, #tpu.memory_space<semaphore_mem>>
      tpu.enqueue_dma source(%303 : memref<1x32xf32, #tpu.memory_space<any>>) target(%304 : memref<1x32xf32, #tpu.memory_space<vmem>>) target_semaphore(%306 : memref<!tpu.dma_semaphore, #tpu.memory_space<semaphore_mem>>)
      %c11 = arith.constant 11 : index
      %307 = memref.load %arg1[%c11] : memref<16xi32, #tpu.memory_space<smem>>
      %c11_i32 = arith.constant 11 : i32
      %c0_i32_98 = arith.constant 0 : i32
      %308 = tpu.memref_slice %arg2[%307, %c0_i32_98] : memref<20x32xf32, #tpu.memory_space<any>> -> memref<1x32xf32, #tpu.memory_space<any>>
      %c11_i32_99 = arith.constant 11 : i32
      %c0_i32_100 = arith.constant 0 : i32
      %309 = tpu.memref_slice %arg8[%c11_i32_99, %c0_i32_100] : memref<16x32xf32, #tpu.memory_space<vmem>> -> memref<1x32xf32, #tpu.memory_space<vmem>>
      %310 = tpu.memref_slice %arg9[%c11_i32] : memref<16x!tpu.dma_semaphore, #tpu.memory_space<semaphore_mem>> -> memref<1x!tpu.dma_semaphore, #tpu.memory_space<semaphore_mem>>
      %311 = tpu.memref_squeeze %310 : memref<1x!tpu.dma_semaphore, #tpu.memory_space<semaphore_mem>> -> memref<!tpu.dma_semaphore, #tpu.memory_space<semaphore_mem>>
      tpu.enqueue_dma source(%308 : memref<1x32xf32, #tpu.memory_space<any>>) target(%309 : memref<1x32xf32, #tpu.memory_space<vmem>>) target_semaphore(%311 : memref<!tpu.dma_semaphore, #tpu.memory_space<semaphore_mem>>)
      %c12 = arith.constant 12 : index
      %312 = memref.load %arg1[%c12] : memref<16xi32, #tpu.memory_space<smem>>
      %c12_i32 = arith.constant 12 : i32
      %c0_i32_101 = arith.constant 0 : i32
      %313 = tpu.memref_slice %arg2[%312, %c0_i32_101] : memref<20x32xf32, #tpu.memory_space<any>> -> memref<1x32xf32, #tpu.memory_space<any>>
      %c12_i32_102 = arith.constant 12 : i32
      %c0_i32_103 = arith.constant 0 : i32
      %314 = tpu.memref_slice %arg8[%c12_i32_102, %c0_i32_103] : memref<16x32xf32, #tpu.memory_space<vmem>> -> memref<1x32xf32, #tpu.memory_space<vmem>>
      %315 = tpu.memref_slice %arg9[%c12_i32] : memref<16x!tpu.dma_semaphore, #tpu.memory_space<semaphore_mem>> -> memref<1x!tpu.dma_semaphore, #tpu.memory_space<semaphore_mem>>
      %316 = tpu.memref_squeeze %315 : memref<1x!tpu.dma_semaphore, #tpu.memory_space<semaphore_mem>> -> memref<!tpu.dma_semaphore, #tpu.memory_space<semaphore_mem>>
      tpu.enqueue_dma source(%313 : memref<1x32xf32, #tpu.memory_space<any>>) target(%314 : memref<1x32xf32, #tpu.memory_space<vmem>>) target_semaphore(%316 : memref<!tpu.dma_semaphore, #tpu.memory_space<semaphore_mem>>)
      %c13 = arith.constant 13 : index
      %317 = memref.load %arg1[%c13] : memref<16xi32, #tpu.memory_space<smem>>
      %c13_i32 = arith.constant 13 : i32
      %c0_i32_104 = arith.constant 0 : i32
      %318 = tpu.memref_slice %arg2[%317, %c0_i32_104] : memref<20x32xf32, #tpu.memory_space<any>> -> memref<1x32xf32, #tpu.memory_space<any>>
      %c13_i32_105 = arith.constant 13 : i32
      %c0_i32_106 = arith.constant 0 : i32
      %319 = tpu.memref_slice %arg8[%c13_i32_105, %c0_i32_106] : memref<16x32xf32, #tpu.memory_space<vmem>> -> memref<1x32xf32, #tpu.memory_space<vmem>>
      %320 = tpu.memref_slice %arg9[%c13_i32] : memref<16x!tpu.dma_semaphore, #tpu.memory_space<semaphore_mem>> -> memref<1x!tpu.dma_semaphore, #tpu.memory_space<semaphore_mem>>
      %321 = tpu.memref_squeeze %320 : memref<1x!tpu.dma_semaphore, #tpu.memory_space<semaphore_mem>> -> memref<!tpu.dma_semaphore, #tpu.memory_space<semaphore_mem>>
      tpu.enqueue_dma source(%318 : memref<1x32xf32, #tpu.memory_space<any>>) target(%319 : memref<1x32xf32, #tpu.memory_space<vmem>>) target_semaphore(%321 : memref<!tpu.dma_semaphore, #tpu.memory_space<semaphore_mem>>)
      %c14 = arith.constant 14 : index
      %322 = memref.load %arg1[%c14] : memref<16xi32, #tpu.memory_space<smem>>
      %c14_i32 = arith.constant 14 : i32
      %c0_i32_107 = arith.constant 0 : i32
      %323 = tpu.memref_slice %arg2[%322, %c0_i32_107] : memref<20x32xf32, #tpu.memory_space<any>> -> memref<1x32xf32, #tpu.memory_space<any>>
      %c14_i32_108 = arith.constant 14 : i32
      %c0_i32_109 = arith.constant 0 : i32
      %324 = tpu.memref_slice %arg8[%c14_i32_108, %c0_i32_109] : memref<16x32xf32, #tpu.memory_space<vmem>> -> memref<1x32xf32, #tpu.memory_space<vmem>>
      %325 = tpu.memref_slice %arg9[%c14_i32] : memref<16x!tpu.dma_semaphore, #tpu.memory_space<semaphore_mem>> -> memref<1x!tpu.dma_semaphore, #tpu.memory_space<semaphore_mem>>
      %326 = tpu.memref_squeeze %325 : memref<1x!tpu.dma_semaphore, #tpu.memory_space<semaphore_mem>> -> memref<!tpu.dma_semaphore, #tpu.memory_space<semaphore_mem>>
      tpu.enqueue_dma source(%323 : memref<1x32xf32, #tpu.memory_space<any>>) target(%324 : memref<1x32xf32, #tpu.memory_space<vmem>>) target_semaphore(%326 : memref<!tpu.dma_semaphore, #tpu.memory_space<semaphore_mem>>)
      %c15 = arith.constant 15 : index
      %327 = memref.load %arg1[%c15] : memref<16xi32, #tpu.memory_space<smem>>
      %c15_i32 = arith.constant 15 : i32
      %c0_i32_110 = arith.constant 0 : i32
      %328 = tpu.memref_slice %arg2[%327, %c0_i32_110] : memref<20x32xf32, #tpu.memory_space<any>> -> memref<1x32xf32, #tpu.memory_space<any>>
      %c15_i32_111 = arith.constant 15 : i32
      %c0_i32_112 = arith.constant 0 : i32
      %329 = tpu.memref_slice %arg8[%c15_i32_111, %c0_i32_112] : memref<16x32xf32, #tpu.memory_space<vmem>> -> memref<1x32xf32, #tpu.memory_space<vmem>>
      %330 = tpu.memref_slice %arg9[%c15_i32] : memref<16x!tpu.dma_semaphore, #tpu.memory_space<semaphore_mem>> -> memref<1x!tpu.dma_semaphore, #tpu.memory_space<semaphore_mem>>
      %331 = tpu.memref_squeeze %330 : memref<1x!tpu.dma_semaphore, #tpu.memory_space<semaphore_mem>> -> memref<!tpu.dma_semaphore, #tpu.memory_space<semaphore_mem>>
      tpu.enqueue_dma source(%328 : memref<1x32xf32, #tpu.memory_space<any>>) target(%329 : memref<1x32xf32, #tpu.memory_space<vmem>>) target_semaphore(%331 : memref<!tpu.dma_semaphore, #tpu.memory_space<semaphore_mem>>)
      %c0_i32_113 = arith.constant 0 : i32
      %c0_i32_114 = arith.constant 0 : i32
      %332 = tpu.memref_slice %arg2[%252, %c0_i32_114] : memref<20x32xf32, #tpu.memory_space<any>> -> memref<1x32xf32, #tpu.memory_space<any>>
      %c0_i32_115 = arith.constant 0 : i32
      %c0_i32_116 = arith.constant 0 : i32
      %333 = tpu.memref_slice %arg8[%c0_i32_115, %c0_i32_116] : memref<16x32xf32, #tpu.memory_space<vmem>> -> memref<1x32xf32, #tpu.memory_space<vmem>>
      %334 = tpu.memref_slice %arg9[%c0_i32_113] : memref<16x!tpu.dma_semaphore, #tpu.memory_space<semaphore_mem>> -> memref<1x!tpu.dma_semaphore, #tpu.memory_space<semaphore_mem>>
      %335 = tpu.memref_squeeze %334 : memref<1x!tpu.dma_semaphore, #tpu.memory_space<semaphore_mem>> -> memref<!tpu.dma_semaphore, #tpu.memory_space<semaphore_mem>>
      tpu.wait_dma2 semaphore(%335 : memref<!tpu.dma_semaphore, #tpu.memory_space<semaphore_mem>>) src(%332 : memref<1x32xf32, #tpu.memory_space<any>>) dst(%333 : memref<1x32xf32, #tpu.memory_space<vmem>>)
      %c1_i32_117 = arith.constant 1 : i32
      %c0_i32_118 = arith.constant 0 : i32
      %336 = tpu.memref_slice %arg2[%257, %c0_i32_118] : memref<20x32xf32, #tpu.memory_space<any>> -> memref<1x32xf32, #tpu.memory_space<any>>
      %c1_i32_119 = arith.constant 1 : i32
      %c0_i32_120 = arith.constant 0 : i32
      %337 = tpu.memref_slice %arg8[%c1_i32_119, %c0_i32_120] : memref<16x32xf32, #tpu.memory_space<vmem>> -> memref<1x32xf32, #tpu.memory_space<vmem>>
      %338 = tpu.memref_slice %arg9[%c1_i32_117] : memref<16x!tpu.dma_semaphore, #tpu.memory_space<semaphore_mem>> -> memref<1x!tpu.dma_semaphore, #tpu.memory_space<semaphore_mem>>
      %339 = tpu.memref_squeeze %338 : memref<1x!tpu.dma_semaphore, #tpu.memory_space<semaphore_mem>> -> memref<!tpu.dma_semaphore, #tpu.memory_space<semaphore_mem>>
      tpu.wait_dma2 semaphore(%339 : memref<!tpu.dma_semaphore, #tpu.memory_space<semaphore_mem>>) src(%336 : memref<1x32xf32, #tpu.memory_space<any>>) dst(%337 : memref<1x32xf32, #tpu.memory_space<vmem>>)
      %c2_i32_121 = arith.constant 2 : i32
      %c0_i32_122 = arith.constant 0 : i32
      %340 = tpu.memref_slice %arg2[%262, %c0_i32_122] : memref<20x32xf32, #tpu.memory_space<any>> -> memref<1x32xf32, #tpu.memory_space<any>>
      %c2_i32_123 = arith.constant 2 : i32
      %c0_i32_124 = arith.constant 0 : i32
      %341 = tpu.memref_slice %arg8[%c2_i32_123, %c0_i32_124] : memref<16x32xf32, #tpu.memory_space<vmem>> -> memref<1x32xf32, #tpu.memory_space<vmem>>
      %342 = tpu.memref_slice %arg9[%c2_i32_121] : memref<16x!tpu.dma_semaphore, #tpu.memory_space<semaphore_mem>> -> memref<1x!tpu.dma_semaphore, #tpu.memory_space<semaphore_mem>>
      %343 = tpu.memref_squeeze %342 : memref<1x!tpu.dma_semaphore, #tpu.memory_space<semaphore_mem>> -> memref<!tpu.dma_semaphore, #tpu.memory_space<semaphore_mem>>
      tpu.wait_dma2 semaphore(%343 : memref<!tpu.dma_semaphore, #tpu.memory_space<semaphore_mem>>) src(%340 : memref<1x32xf32, #tpu.memory_space<any>>) dst(%341 : memref<1x32xf32, #tpu.memory_space<vmem>>)
      %c3_i32_125 = arith.constant 3 : i32
      %c0_i32_126 = arith.constant 0 : i32
      %344 = tpu.memref_slice %arg2[%267, %c0_i32_126] : memref<20x32xf32, #tpu.memory_space<any>> -> memref<1x32xf32, #tpu.memory_space<any>>
      %c3_i32_127 = arith.constant 3 : i32
      %c0_i32_128 = arith.constant 0 : i32
      %345 = tpu.memref_slice %arg8[%c3_i32_127, %c0_i32_128] : memref<16x32xf32, #tpu.memory_space<vmem>> -> memref<1x32xf32, #tpu.memory_space<vmem>>
      %346 = tpu.memref_slice %arg9[%c3_i32_125] : memref<16x!tpu.dma_semaphore, #tpu.memory_space<semaphore_mem>> -> memref<1x!tpu.dma_semaphore, #tpu.memory_space<semaphore_mem>>
      %347 = tpu.memref_squeeze %346 : memref<1x!tpu.dma_semaphore, #tpu.memory_space<semaphore_mem>> -> memref<!tpu.dma_semaphore, #tpu.memory_space<semaphore_mem>>
      tpu.wait_dma2 semaphore(%347 : memref<!tpu.dma_semaphore, #tpu.memory_space<semaphore_mem>>) src(%344 : memref<1x32xf32, #tpu.memory_space<any>>) dst(%345 : memref<1x32xf32, #tpu.memory_space<vmem>>)
      %c4_i32_129 = arith.constant 4 : i32
      %c0_i32_130 = arith.constant 0 : i32
      %348 = tpu.memref_slice %arg2[%272, %c0_i32_130] : memref<20x32xf32, #tpu.memory_space<any>> -> memref<1x32xf32, #tpu.memory_space<any>>
      %c4_i32_131 = arith.constant 4 : i32
      %c0_i32_132 = arith.constant 0 : i32
      %349 = tpu.memref_slice %arg8[%c4_i32_131, %c0_i32_132] : memref<16x32xf32, #tpu.memory_space<vmem>> -> memref<1x32xf32, #tpu.memory_space<vmem>>
      %350 = tpu.memref_slice %arg9[%c4_i32_129] : memref<16x!tpu.dma_semaphore, #tpu.memory_space<semaphore_mem>> -> memref<1x!tpu.dma_semaphore, #tpu.memory_space<semaphore_mem>>
      %351 = tpu.memref_squeeze %350 : memref<1x!tpu.dma_semaphore, #tpu.memory_space<semaphore_mem>> -> memref<!tpu.dma_semaphore, #tpu.memory_space<semaphore_mem>>
      tpu.wait_dma2 semaphore(%351 : memref<!tpu.dma_semaphore, #tpu.memory_space<semaphore_mem>>) src(%348 : memref<1x32xf32, #tpu.memory_space<any>>) dst(%349 : memref<1x32xf32, #tpu.memory_space<vmem>>)
      %c5_i32_133 = arith.constant 5 : i32
      %c0_i32_134 = arith.constant 0 : i32
      %352 = tpu.memref_slice %arg2[%277, %c0_i32_134] : memref<20x32xf32, #tpu.memory_space<any>> -> memref<1x32xf32, #tpu.memory_space<any>>
      %c5_i32_135 = arith.constant 5 : i32
      %c0_i32_136 = arith.constant 0 : i32
      %353 = tpu.memref_slice %arg8[%c5_i32_135, %c0_i32_136] : memref<16x32xf32, #tpu.memory_space<vmem>> -> memref<1x32xf32, #tpu.memory_space<vmem>>
      %354 = tpu.memref_slice %arg9[%c5_i32_133] : memref<16x!tpu.dma_semaphore, #tpu.memory_space<semaphore_mem>> -> memref<1x!tpu.dma_semaphore, #tpu.memory_space<semaphore_mem>>
      %355 = tpu.memref_squeeze %354 : memref<1x!tpu.dma_semaphore, #tpu.memory_space<semaphore_mem>> -> memref<!tpu.dma_semaphore, #tpu.memory_space<semaphore_mem>>
      tpu.wait_dma2 semaphore(%355 : memref<!tpu.dma_semaphore, #tpu.memory_space<semaphore_mem>>) src(%352 : memref<1x32xf32, #tpu.memory_space<any>>) dst(%353 : memref<1x32xf32, #tpu.memory_space<vmem>>)
      %c6_i32_137 = arith.constant 6 : i32
      %c0_i32_138 = arith.constant 0 : i32
      %356 = tpu.memref_slice %arg2[%282, %c0_i32_138] : memref<20x32xf32, #tpu.memory_space<any>> -> memref<1x32xf32, #tpu.memory_space<any>>
      %c6_i32_139 = arith.constant 6 : i32
      %c0_i32_140 = arith.constant 0 : i32
      %357 = tpu.memref_slice %arg8[%c6_i32_139, %c0_i32_140] : memref<16x32xf32, #tpu.memory_space<vmem>> -> memref<1x32xf32, #tpu.memory_space<vmem>>
      %358 = tpu.memref_slice %arg9[%c6_i32_137] : memref<16x!tpu.dma_semaphore, #tpu.memory_space<semaphore_mem>> -> memref<1x!tpu.dma_semaphore, #tpu.memory_space<semaphore_mem>>
      %359 = tpu.memref_squeeze %358 : memref<1x!tpu.dma_semaphore, #tpu.memory_space<semaphore_mem>> -> memref<!tpu.dma_semaphore, #tpu.memory_space<semaphore_mem>>
      tpu.wait_dma2 semaphore(%359 : memref<!tpu.dma_semaphore, #tpu.memory_space<semaphore_mem>>) src(%356 : memref<1x32xf32, #tpu.memory_space<any>>) dst(%357 : memref<1x32xf32, #tpu.memory_space<vmem>>)
      %c7_i32_141 = arith.constant 7 : i32
      %c0_i32_142 = arith.constant 0 : i32
      %360 = tpu.memref_slice %arg2[%287, %c0_i32_142] : memref<20x32xf32, #tpu.memory_space<any>> -> memref<1x32xf32, #tpu.memory_space<any>>
      %c7_i32_143 = arith.constant 7 : i32
      %c0_i32_144 = arith.constant 0 : i32
      %361 = tpu.memref_slice %arg8[%c7_i32_143, %c0_i32_144] : memref<16x32xf32, #tpu.memory_space<vmem>> -> memref<1x32xf32, #tpu.memory_space<vmem>>
      %362 = tpu.memref_slice %arg9[%c7_i32_141] : memref<16x!tpu.dma_semaphore, #tpu.memory_space<semaphore_mem>> -> memref<1x!tpu.dma_semaphore, #tpu.memory_space<semaphore_mem>>
      %363 = tpu.memref_squeeze %362 : memref<1x!tpu.dma_semaphore, #tpu.memory_space<semaphore_mem>> -> memref<!tpu.dma_semaphore, #tpu.memory_space<semaphore_mem>>
      tpu.wait_dma2 semaphore(%363 : memref<!tpu.dma_semaphore, #tpu.memory_space<semaphore_mem>>) src(%360 : memref<1x32xf32, #tpu.memory_space<any>>) dst(%361 : memref<1x32xf32, #tpu.memory_space<vmem>>)
      %c8_i32_145 = arith.constant 8 : i32
      %c0_i32_146 = arith.constant 0 : i32
      %364 = tpu.memref_slice %arg2[%292, %c0_i32_146] : memref<20x32xf32, #tpu.memory_space<any>> -> memref<1x32xf32, #tpu.memory_space<any>>
      %c8_i32_147 = arith.constant 8 : i32
      %c0_i32_148 = arith.constant 0 : i32
      %365 = tpu.memref_slice %arg8[%c8_i32_147, %c0_i32_148] : memref<16x32xf32, #tpu.memory_space<vmem>> -> memref<1x32xf32, #tpu.memory_space<vmem>>
      %366 = tpu.memref_slice %arg9[%c8_i32_145] : memref<16x!tpu.dma_semaphore, #tpu.memory_space<semaphore_mem>> -> memref<1x!tpu.dma_semaphore, #tpu.memory_space<semaphore_mem>>
      %367 = tpu.memref_squeeze %366 : memref<1x!tpu.dma_semaphore, #tpu.memory_space<semaphore_mem>> -> memref<!tpu.dma_semaphore, #tpu.memory_space<semaphore_mem>>
      tpu.wait_dma2 semaphore(%367 : memref<!tpu.dma_semaphore, #tpu.memory_space<semaphore_mem>>) src(%364 : memref<1x32xf32, #tpu.memory_space<any>>) dst(%365 : memref<1x32xf32, #tpu.memory_space<vmem>>)
      %c9_i32_149 = arith.constant 9 : i32
      %c0_i32_150 = arith.constant 0 : i32
      %368 = tpu.memref_slice %arg2[%297, %c0_i32_150] : memref<20x32xf32, #tpu.memory_space<any>> -> memref<1x32xf32, #tpu.memory_space<any>>
      %c9_i32_151 = arith.constant 9 : i32
      %c0_i32_152 = arith.constant 0 : i32
      %369 = tpu.memref_slice %arg8[%c9_i32_151, %c0_i32_152] : memref<16x32xf32, #tpu.memory_space<vmem>> -> memref<1x32xf32, #tpu.memory_space<vmem>>
      %370 = tpu.memref_slice %arg9[%c9_i32_149] : memref<16x!tpu.dma_semaphore, #tpu.memory_space<semaphore_mem>> -> memref<1x!tpu.dma_semaphore, #tpu.memory_space<semaphore_mem>>
      %371 = tpu.memref_squeeze %370 : memref<1x!tpu.dma_semaphore, #tpu.memory_space<semaphore_mem>> -> memref<!tpu.dma_semaphore, #tpu.memory_space<semaphore_mem>>
      tpu.wait_dma2 semaphore(%371 : memref<!tpu.dma_semaphore, #tpu.memory_space<semaphore_mem>>) src(%368 : memref<1x32xf32, #tpu.memory_space<any>>) dst(%369 : memref<1x32xf32, #tpu.memory_space<vmem>>)
      %c10_i32_153 = arith.constant 10 : i32
      %c0_i32_154 = arith.constant 0 : i32
      %372 = tpu.memref_slice %arg2[%302, %c0_i32_154] : memref<20x32xf32, #tpu.memory_space<any>> -> memref<1x32xf32, #tpu.memory_space<any>>
      %c10_i32_155 = arith.constant 10 : i32
      %c0_i32_156 = arith.constant 0 : i32
      %373 = tpu.memref_slice %arg8[%c10_i32_155, %c0_i32_156] : memref<16x32xf32, #tpu.memory_space<vmem>> -> memref<1x32xf32, #tpu.memory_space<vmem>>
      %374 = tpu.memref_slice %arg9[%c10_i32_153] : memref<16x!tpu.dma_semaphore, #tpu.memory_space<semaphore_mem>> -> memref<1x!tpu.dma_semaphore, #tpu.memory_space<semaphore_mem>>
      %375 = tpu.memref_squeeze %374 : memref<1x!tpu.dma_semaphore, #tpu.memory_space<semaphore_mem>> -> memref<!tpu.dma_semaphore, #tpu.memory_space<semaphore_mem>>
      tpu.wait_dma2 semaphore(%375 : memref<!tpu.dma_semaphore, #tpu.memory_space<semaphore_mem>>) src(%372 : memref<1x32xf32, #tpu.memory_space<any>>) dst(%373 : memref<1x32xf32, #tpu.memory_space<vmem>>)
      %c11_i32_157 = arith.constant 11 : i32
      %c0_i32_158 = arith.constant 0 : i32
      %376 = tpu.memref_slice %arg2[%307, %c0_i32_158] : memref<20x32xf32, #tpu.memory_space<any>> -> memref<1x32xf32, #tpu.memory_space<any>>
      %c11_i32_159 = arith.constant 11 : i32
      %c0_i32_160 = arith.constant 0 : i32
      %377 = tpu.memref_slice %arg8[%c11_i32_159, %c0_i32_160] : memref<16x32xf32, #tpu.memory_space<vmem>> -> memref<1x32xf32, #tpu.memory_space<vmem>>
      %378 = tpu.memref_slice %arg9[%c11_i32_157] : memref<16x!tpu.dma_semaphore, #tpu.memory_space<semaphore_mem>> -> memref<1x!tpu.dma_semaphore, #tpu.memory_space<semaphore_mem>>
      %379 = tpu.memref_squeeze %378 : memref<1x!tpu.dma_semaphore, #tpu.memory_space<semaphore_mem>> -> memref<!tpu.dma_semaphore, #tpu.memory_space<semaphore_mem>>
      tpu.wait_dma2 semaphore(%379 : memref<!tpu.dma_semaphore, #tpu.memory_space<semaphore_mem>>) src(%376 : memref<1x32xf32, #tpu.memory_space<any>>) dst(%377 : memref<1x32xf32, #tpu.memory_space<vmem>>)
      %c12_i32_161 = arith.constant 12 : i32
      %c0_i32_162 = arith.constant 0 : i32
      %380 = tpu.memref_slice %arg2[%312, %c0_i32_162] : memref<20x32xf32, #tpu.memory_space<any>> -> memref<1x32xf32, #tpu.memory_space<any>>
      %c12_i32_163 = arith.constant 12 : i32
      %c0_i32_164 = arith.constant 0 : i32
      %381 = tpu.memref_slice %arg8[%c12_i32_163, %c0_i32_164] : memref<16x32xf32, #tpu.memory_space<vmem>> -> memref<1x32xf32, #tpu.memory_space<vmem>>
      %382 = tpu.memref_slice %arg9[%c12_i32_161] : memref<16x!tpu.dma_semaphore, #tpu.memory_space<semaphore_mem>> -> memref<1x!tpu.dma_semaphore, #tpu.memory_space<semaphore_mem>>
      %383 = tpu.memref_squeeze %382 : memref<1x!tpu.dma_semaphore, #tpu.memory_space<semaphore_mem>> -> memref<!tpu.dma_semaphore, #tpu.memory_space<semaphore_mem>>
      tpu.wait_dma2 semaphore(%383 : memref<!tpu.dma_semaphore, #tpu.memory_space<semaphore_mem>>) src(%380 : memref<1x32xf32, #tpu.memory_space<any>>) dst(%381 : memref<1x32xf32, #tpu.memory_space<vmem>>)
      %c13_i32_165 = arith.constant 13 : i32
      %c0_i32_166 = arith.constant 0 : i32
      %384 = tpu.memref_slice %arg2[%317, %c0_i32_166] : memref<20x32xf32, #tpu.memory_space<any>> -> memref<1x32xf32, #tpu.memory_space<any>>
      %c13_i32_167 = arith.constant 13 : i32
      %c0_i32_168 = arith.constant 0 : i32
      %385 = tpu.memref_slice %arg8[%c13_i32_167, %c0_i32_168] : memref<16x32xf32, #tpu.memory_space<vmem>> -> memref<1x32xf32, #tpu.memory_space<vmem>>
      %386 = tpu.memref_slice %arg9[%c13_i32_165] : memref<16x!tpu.dma_semaphore, #tpu.memory_space<semaphore_mem>> -> memref<1x!tpu.dma_semaphore, #tpu.memory_space<semaphore_mem>>
      %387 = tpu.memref_squeeze %386 : memref<1x!tpu.dma_semaphore, #tpu.memory_space<semaphore_mem>> -> memref<!tpu.dma_semaphore, #tpu.memory_space<semaphore_mem>>
      tpu.wait_dma2 semaphore(%387 : memref<!tpu.dma_semaphore, #tpu.memory_space<semaphore_mem>>) src(%384 : memref<1x32xf32, #tpu.memory_space<any>>) dst(%385 : memref<1x32xf32, #tpu.memory_space<vmem>>)
      %c14_i32_169 = arith.constant 14 : i32
      %c0_i32_170 = arith.constant 0 : i32
      %388 = tpu.memref_slice %arg2[%322, %c0_i32_170] : memref<20x32xf32, #tpu.memory_space<any>> -> memref<1x32xf32, #tpu.memory_space<any>>
      %c14_i32_171 = arith.constant 14 : i32
      %c0_i32_172 = arith.constant 0 : i32
      %389 = tpu.memref_slice %arg8[%c14_i32_171, %c0_i32_172] : memref<16x32xf32, #tpu.memory_space<vmem>> -> memref<1x32xf32, #tpu.memory_space<vmem>>
      %390 = tpu.memref_slice %arg9[%c14_i32_169] : memref<16x!tpu.dma_semaphore, #tpu.memory_space<semaphore_mem>> -> memref<1x!tpu.dma_semaphore, #tpu.memory_space<semaphore_mem>>
      %391 = tpu.memref_squeeze %390 : memref<1x!tpu.dma_semaphore, #tpu.memory_space<semaphore_mem>> -> memref<!tpu.dma_semaphore, #tpu.memory_space<semaphore_mem>>
      tpu.wait_dma2 semaphore(%391 : memref<!tpu.dma_semaphore, #tpu.memory_space<semaphore_mem>>) src(%388 : memref<1x32xf32, #tpu.memory_space<any>>) dst(%389 : memref<1x32xf32, #tpu.memory_space<vmem>>)
      %c15_i32_173 = arith.constant 15 : i32
      %c0_i32_174 = arith.constant 0 : i32
      %392 = tpu.memref_slice %arg2[%327, %c0_i32_174] : memref<20x32xf32, #tpu.memory_space<any>> -> memref<1x32xf32, #tpu.memory_space<any>>
      %c15_i32_175 = arith.constant 15 : i32
      %c0_i32_176 = arith.constant 0 : i32
      %393 = tpu.memref_slice %arg8[%c15_i32_175, %c0_i32_176] : memref<16x32xf32, #tpu.memory_space<vmem>> -> memref<1x32xf32, #tpu.memory_space<vmem>>
      %394 = tpu.memref_slice %arg9[%c15_i32_173] : memref<16x!tpu.dma_semaphore, #tpu.memory_space<semaphore_mem>> -> memref<1x!tpu.dma_semaphore, #tpu.memory_space<semaphore_mem>>
      %395 = tpu.memref_squeeze %394 : memref<1x!tpu.dma_semaphore, #tpu.memory_space<semaphore_mem>> -> memref<!tpu.dma_semaphore, #tpu.memory_space<semaphore_mem>>
      tpu.wait_dma2 semaphore(%395 : memref<!tpu.dma_semaphore, #tpu.memory_space<semaphore_mem>>) src(%392 : memref<1x32xf32, #tpu.memory_space<any>>) dst(%393 : memref<1x32xf32, #tpu.memory_space<vmem>>)
    } else {
    }
    %c0 = arith.constant 0 : index
    %c0_1 = arith.constant 0 : index
    %3 = vector.load %arg8[%c0, %c0_1] : memref<16x32xf32, #tpu.memory_space<vmem>>, vector<16x32xf32>
    %c0_2 = arith.constant 0 : index
    %c0_3 = arith.constant 0 : index
    %c0_4 = arith.constant 0 : index
    %c0_5 = arith.constant 0 : index
    %4 = vector.load %arg3[%c0_2, %c0_3, %c0_4, %c0_5] : memref<1x3x32x32xf32, #tpu.memory_space<vmem>>, vector<1x1x32x32xf32>
    %5 = vector.shape_cast %4 : vector<1x1x32x32xf32> to vector<32x32xf32>
    %c0_6 = arith.constant 0 : index
    %c1 = arith.constant 1 : index
    %c0_7 = arith.constant 0 : index
    %c0_8 = arith.constant 0 : index
    %6 = vector.load %arg3[%c0_6, %c1, %c0_7, %c0_8] : memref<1x3x32x32xf32, #tpu.memory_space<vmem>>, vector<1x1x32x32xf32>
    %7 = vector.shape_cast %6 : vector<1x1x32x32xf32> to vector<32x32xf32>
    %c0_9 = arith.constant 0 : index
    %c2 = arith.constant 2 : index
    %c0_10 = arith.constant 0 : index
    %c0_11 = arith.constant 0 : index
    %8 = vector.load %arg3[%c0_9, %c2, %c0_10, %c0_11] : memref<1x3x32x32xf32, #tpu.memory_space<vmem>>, vector<1x1x32x32xf32>
    %9 = vector.shape_cast %8 : vector<1x1x32x32xf32> to vector<32x32xf32>
    %c0_12 = arith.constant 0 : index
    %c0_13 = arith.constant 0 : index
    %c0_14 = arith.constant 0 : index
    %10 = vector.load %arg4[%c0_12, %c0_13, %c0_14] : memref<1x32x96xf32, #tpu.memory_space<vmem>>, vector<1x32x96xf32>
    %11 = vector.shape_cast %10 : vector<1x32x96xf32> to vector<32x96xf32>
    %c0_15 = arith.constant 0 : index
    %c0_16 = arith.constant 0 : index
    %c0_17 = arith.constant 0 : index
    %c0_18 = arith.constant 0 : index
    %12 = vector.load %arg5[%c0_15, %c0_16, %c0_17, %c0_18] : memref<1x3x1x32xf32, #tpu.memory_space<vmem>>, vector<1x1x1x32xf32>
    %13 = vector.shape_cast %12 : vector<1x1x1x32xf32> to vector<1x32xf32>
    %c0_19 = arith.constant 0 : index
    %c1_20 = arith.constant 1 : index
    %c0_21 = arith.constant 0 : index
    %c0_22 = arith.constant 0 : index
    %14 = vector.load %arg5[%c0_19, %c1_20, %c0_21, %c0_22] : memref<1x3x1x32xf32, #tpu.memory_space<vmem>>, vector<1x1x1x32xf32>
    %15 = vector.shape_cast %14 : vector<1x1x1x32xf32> to vector<1x32xf32>
    %c0_23 = arith.constant 0 : index
    %c2_24 = arith.constant 2 : index
    %c0_25 = arith.constant 0 : index
    %c0_26 = arith.constant 0 : index
    %16 = vector.load %arg5[%c0_23, %c2_24, %c0_25, %c0_26] : memref<1x3x1x32xf32, #tpu.memory_space<vmem>>, vector<1x1x1x32xf32>
    %17 = vector.shape_cast %16 : vector<1x1x1x32xf32> to vector<1x32xf32>
    %c0_27 = arith.constant 0 : index
    %c0_28 = arith.constant 0 : index
    %c0_29 = arith.constant 0 : index
    %18 = vector.load %arg6[%c0_27, %c0_28, %c0_29] : memref<1x1x32xf32, #tpu.memory_space<vmem>>, vector<1x1x32xf32>
    %19 = vector.shape_cast %18 : vector<1x1x32xf32> to vector<1x32xf32>
    %cst = arith.constant dense<0.000000e+00> : vector<16x32xf32>
    %20 = tpu.matmul %3, %5, %cst {dimension_numbers = #tpu.dot_dimension_numbers<[1], [0], [0], [1], [0, 0, 1, 1], [], []>} : vector<16x32xf32>, vector<32x32xf32>, vector<16x32xf32> -> vector<16x32xf32>
    %21 = vector.broadcast %13 : vector<1x32xf32> to vector<16x32xf32>
    %22 = arith.addf %20, %21 : vector<16x32xf32>
    %cst_30 = arith.constant dense<0.000000e+00> : vector<16x32xf32>
    %23 = tpu.matmul %3, %7, %cst_30 {dimension_numbers = #tpu.dot_dimension_numbers<[1], [0], [0], [1], [0, 0, 1, 1], [], []>} : vector<16x32xf32>, vector<32x32xf32>, vector<16x32xf32> -> vector<16x32xf32>
    %24 = vector.broadcast %15 : vector<1x32xf32> to vector<16x32xf32>
    %25 = arith.addf %23, %24 : vector<16x32xf32>
    %cst_31 = arith.constant dense<0.000000e+00> : vector<16x32xf32>
    %26 = tpu.matmul %3, %9, %cst_31 {dimension_numbers = #tpu.dot_dimension_numbers<[1], [0], [0], [1], [0, 0, 1, 1], [], []>} : vector<16x32xf32>, vector<32x32xf32>, vector<16x32xf32> -> vector<16x32xf32>
    %27 = vector.broadcast %17 : vector<1x32xf32> to vector<16x32xf32>
    %28 = arith.addf %26, %27 : vector<16x32xf32>
    %29 = vector.extract_strided_slice %22 {offsets = [0, 0], sizes = [2, 32], strides = [1, 1]} : vector<16x32xf32> to vector<2x32xf32>
    %30 = vector.extract_strided_slice %22 {offsets = [2, 0], sizes = [2, 32], strides = [1, 1]} : vector<16x32xf32> to vector<2x32xf32>
    %31 = vector.extract_strided_slice %22 {offsets = [4, 0], sizes = [2, 32], strides = [1, 1]} : vector<16x32xf32> to vector<2x32xf32>
    %32 = vector.extract_strided_slice %22 {offsets = [6, 0], sizes = [2, 32], strides = [1, 1]} : vector<16x32xf32> to vector<2x32xf32>
    %33 = vector.extract_strided_slice %22 {offsets = [8, 0], sizes = [2, 32], strides = [1, 1]} : vector<16x32xf32> to vector<2x32xf32>
    %34 = vector.extract_strided_slice %22 {offsets = [10, 0], sizes = [2, 32], strides = [1, 1]} : vector<16x32xf32> to vector<2x32xf32>
    %35 = vector.extract_strided_slice %22 {offsets = [12, 0], sizes = [2, 32], strides = [1, 1]} : vector<16x32xf32> to vector<2x32xf32>
    %36 = vector.extract_strided_slice %22 {offsets = [14, 0], sizes = [2, 32], strides = [1, 1]} : vector<16x32xf32> to vector<2x32xf32>
    %37 = vector.extract_strided_slice %25 {offsets = [0, 0], sizes = [2, 32], strides = [1, 1]} : vector<16x32xf32> to vector<2x32xf32>
    %38 = vector.extract_strided_slice %25 {offsets = [2, 0], sizes = [2, 32], strides = [1, 1]} : vector<16x32xf32> to vector<2x32xf32>
    %39 = vector.extract_strided_slice %25 {offsets = [4, 0], sizes = [2, 32], strides = [1, 1]} : vector<16x32xf32> to vector<2x32xf32>
    %40 = vector.extract_strided_slice %25 {offsets = [6, 0], sizes = [2, 32], strides = [1, 1]} : vector<16x32xf32> to vector<2x32xf32>
    %41 = vector.extract_strided_slice %25 {offsets = [8, 0], sizes = [2, 32], strides = [1, 1]} : vector<16x32xf32> to vector<2x32xf32>
    %42 = vector.extract_strided_slice %25 {offsets = [10, 0], sizes = [2, 32], strides = [1, 1]} : vector<16x32xf32> to vector<2x32xf32>
    %43 = vector.extract_strided_slice %25 {offsets = [12, 0], sizes = [2, 32], strides = [1, 1]} : vector<16x32xf32> to vector<2x32xf32>
    %44 = vector.extract_strided_slice %25 {offsets = [14, 0], sizes = [2, 32], strides = [1, 1]} : vector<16x32xf32> to vector<2x32xf32>
    %45 = vector.extract_strided_slice %28 {offsets = [0, 0], sizes = [2, 32], strides = [1, 1]} : vector<16x32xf32> to vector<2x32xf32>
    %46 = vector.extract_strided_slice %28 {offsets = [2, 0], sizes = [2, 32], strides = [1, 1]} : vector<16x32xf32> to vector<2x32xf32>
    %47 = vector.extract_strided_slice %28 {offsets = [4, 0], sizes = [2, 32], strides = [1, 1]} : vector<16x32xf32> to vector<2x32xf32>
    %48 = vector.extract_strided_slice %28 {offsets = [6, 0], sizes = [2, 32], strides = [1, 1]} : vector<16x32xf32> to vector<2x32xf32>
    %49 = vector.extract_strided_slice %28 {offsets = [8, 0], sizes = [2, 32], strides = [1, 1]} : vector<16x32xf32> to vector<2x32xf32>
    %50 = vector.extract_strided_slice %28 {offsets = [10, 0], sizes = [2, 32], strides = [1, 1]} : vector<16x32xf32> to vector<2x32xf32>
    %51 = vector.extract_strided_slice %28 {offsets = [12, 0], sizes = [2, 32], strides = [1, 1]} : vector<16x32xf32> to vector<2x32xf32>
    %52 = vector.extract_strided_slice %28 {offsets = [14, 0], sizes = [2, 32], strides = [1, 1]} : vector<16x32xf32> to vector<2x32xf32>
    %cst_32 = arith.constant 0.000000e+00 : f32
    %53 = vector.broadcast %cst_32 : f32 to vector<2x32xf32>
    %cst_33 = arith.constant dense<0.000000e+00> : vector<2x96xf32>
    %54 = tpu.matmul %53, %11, %cst_33 {dimension_numbers = #tpu.dot_dimension_numbers<[1], [0], [0], [1], [0, 0, 1, 1], [], []>} : vector<2x32xf32>, vector<32x96xf32>, vector<2x96xf32> -> vector<2x96xf32>
    %55 = vector.extract_strided_slice %54 {offsets = [0, 0], sizes = [2, 32], strides = [1, 1]} : vector<2x96xf32> to vector<2x32xf32>
    %56 = arith.addf %29, %55 : vector<2x32xf32>
    %57 = arith.negf %56 : vector<2x32xf32>
    %58 = math.exp %57 : vector<2x32xf32>
    %cst_34 = arith.constant 1.000000e+00 : f32
    %59 = vector.broadcast %cst_34 : f32 to vector<2x32xf32>
    %60 = arith.addf %59, %58 : vector<2x32xf32>
    %61 = arith.divf %59, %60 : vector<2x32xf32>
    %62 = vector.extract_strided_slice %54 {offsets = [0, 32], sizes = [2, 32], strides = [1, 1]} : vector<2x96xf32> to vector<2x32xf32>
    %63 = arith.addf %37, %62 : vector<2x32xf32>
    %64 = arith.negf %63 : vector<2x32xf32>
    %65 = math.exp %64 : vector<2x32xf32>
    %cst_35 = arith.constant 1.000000e+00 : f32
    %66 = vector.broadcast %cst_35 : f32 to vector<2x32xf32>
    %67 = arith.addf %66, %65 : vector<2x32xf32>
    %68 = arith.divf %66, %67 : vector<2x32xf32>
    %69 = vector.extract_strided_slice %54 {offsets = [0, 64], sizes = [2, 32], strides = [1, 1]} : vector<2x96xf32> to vector<2x32xf32>
    %70 = vector.broadcast %19 : vector<1x32xf32> to vector<2x32xf32>
    %71 = arith.addf %69, %70 : vector<2x32xf32>
    %72 = arith.mulf %61, %71 : vector<2x32xf32>
    %73 = arith.addf %45, %72 : vector<2x32xf32>
    %74 = math.tanh %73 : vector<2x32xf32>
    %75 = arith.subf %53, %74 : vector<2x32xf32>
    %76 = arith.mulf %68, %75 : vector<2x32xf32>
    %77 = arith.addf %74, %76 : vector<2x32xf32>
    %cst_36 = arith.constant dense<0.000000e+00> : vector<2x96xf32>
    %78 = tpu.matmul %77, %11, %cst_36 {dimension_numbers = #tpu.dot_dimension_numbers<[1], [0], [0], [1], [0, 0, 1, 1], [], []>} : vector<2x32xf32>, vector<32x96xf32>, vector<2x96xf32> -> vector<2x96xf32>
    %79 = vector.extract_strided_slice %78 {offsets = [0, 0], sizes = [2, 32], strides = [1, 1]} : vector<2x96xf32> to vector<2x32xf32>
    %80 = arith.addf %30, %79 : vector<2x32xf32>
    %81 = arith.negf %80 : vector<2x32xf32>
    %82 = math.exp %81 : vector<2x32xf32>
    %cst_37 = arith.constant 1.000000e+00 : f32
    %83 = vector.broadcast %cst_37 : f32 to vector<2x32xf32>
    %84 = arith.addf %83, %82 : vector<2x32xf32>
    %85 = arith.divf %83, %84 : vector<2x32xf32>
    %86 = vector.extract_strided_slice %78 {offsets = [0, 32], sizes = [2, 32], strides = [1, 1]} : vector<2x96xf32> to vector<2x32xf32>
    %87 = arith.addf %38, %86 : vector<2x32xf32>
    %88 = arith.negf %87 : vector<2x32xf32>
    %89 = math.exp %88 : vector<2x32xf32>
    %cst_38 = arith.constant 1.000000e+00 : f32
    %90 = vector.broadcast %cst_38 : f32 to vector<2x32xf32>
    %91 = arith.addf %90, %89 : vector<2x32xf32>
    %92 = arith.divf %90, %91 : vector<2x32xf32>
    %93 = vector.extract_strided_slice %78 {offsets = [0, 64], sizes = [2, 32], strides = [1, 1]} : vector<2x96xf32> to vector<2x32xf32>
    %94 = vector.broadcast %19 : vector<1x32xf32> to vector<2x32xf32>
    %95 = arith.addf %93, %94 : vector<2x32xf32>
    %96 = arith.mulf %85, %95 : vector<2x32xf32>
    %97 = arith.addf %46, %96 : vector<2x32xf32>
    %98 = math.tanh %97 : vector<2x32xf32>
    %99 = arith.subf %77, %98 : vector<2x32xf32>
    %100 = arith.mulf %92, %99 : vector<2x32xf32>
    %101 = arith.addf %98, %100 : vector<2x32xf32>
    %cst_39 = arith.constant dense<0.000000e+00> : vector<2x96xf32>
    %102 = tpu.matmul %101, %11, %cst_39 {dimension_numbers = #tpu.dot_dimension_numbers<[1], [0], [0], [1], [0, 0, 1, 1], [], []>} : vector<2x32xf32>, vector<32x96xf32>, vector<2x96xf32> -> vector<2x96xf32>
    %103 = vector.extract_strided_slice %102 {offsets = [0, 0], sizes = [2, 32], strides = [1, 1]} : vector<2x96xf32> to vector<2x32xf32>
    %104 = arith.addf %31, %103 : vector<2x32xf32>
    %105 = arith.negf %104 : vector<2x32xf32>
    %106 = math.exp %105 : vector<2x32xf32>
    %cst_40 = arith.constant 1.000000e+00 : f32
    %107 = vector.broadcast %cst_40 : f32 to vector<2x32xf32>
    %108 = arith.addf %107, %106 : vector<2x32xf32>
    %109 = arith.divf %107, %108 : vector<2x32xf32>
    %110 = vector.extract_strided_slice %102 {offsets = [0, 32], sizes = [2, 32], strides = [1, 1]} : vector<2x96xf32> to vector<2x32xf32>
    %111 = arith.addf %39, %110 : vector<2x32xf32>
    %112 = arith.negf %111 : vector<2x32xf32>
    %113 = math.exp %112 : vector<2x32xf32>
    %cst_41 = arith.constant 1.000000e+00 : f32
    %114 = vector.broadcast %cst_41 : f32 to vector<2x32xf32>
    %115 = arith.addf %114, %113 : vector<2x32xf32>
    %116 = arith.divf %114, %115 : vector<2x32xf32>
    %117 = vector.extract_strided_slice %102 {offsets = [0, 64], sizes = [2, 32], strides = [1, 1]} : vector<2x96xf32> to vector<2x32xf32>
    %118 = vector.broadcast %19 : vector<1x32xf32> to vector<2x32xf32>
    %119 = arith.addf %117, %118 : vector<2x32xf32>
    %120 = arith.mulf %109, %119 : vector<2x32xf32>
    %121 = arith.addf %47, %120 : vector<2x32xf32>
    %122 = math.tanh %121 : vector<2x32xf32>
    %123 = arith.subf %101, %122 : vector<2x32xf32>
    %124 = arith.mulf %116, %123 : vector<2x32xf32>
    %125 = arith.addf %122, %124 : vector<2x32xf32>
    %cst_42 = arith.constant dense<0.000000e+00> : vector<2x96xf32>
    %126 = tpu.matmul %125, %11, %cst_42 {dimension_numbers = #tpu.dot_dimension_numbers<[1], [0], [0], [1], [0, 0, 1, 1], [], []>} : vector<2x32xf32>, vector<32x96xf32>, vector<2x96xf32> -> vector<2x96xf32>
    %127 = vector.extract_strided_slice %126 {offsets = [0, 0], sizes = [2, 32], strides = [1, 1]} : vector<2x96xf32> to vector<2x32xf32>
    %128 = arith.addf %32, %127 : vector<2x32xf32>
    %129 = arith.negf %128 : vector<2x32xf32>
    %130 = math.exp %129 : vector<2x32xf32>
    %cst_43 = arith.constant 1.000000e+00 : f32
    %131 = vector.broadcast %cst_43 : f32 to vector<2x32xf32>
    %132 = arith.addf %131, %130 : vector<2x32xf32>
    %133 = arith.divf %131, %132 : vector<2x32xf32>
    %134 = vector.extract_strided_slice %126 {offsets = [0, 32], sizes = [2, 32], strides = [1, 1]} : vector<2x96xf32> to vector<2x32xf32>
    %135 = arith.addf %40, %134 : vector<2x32xf32>
    %136 = arith.negf %135 : vector<2x32xf32>
    %137 = math.exp %136 : vector<2x32xf32>
    %cst_44 = arith.constant 1.000000e+00 : f32
    %138 = vector.broadcast %cst_44 : f32 to vector<2x32xf32>
    %139 = arith.addf %138, %137 : vector<2x32xf32>
    %140 = arith.divf %138, %139 : vector<2x32xf32>
    %141 = vector.extract_strided_slice %126 {offsets = [0, 64], sizes = [2, 32], strides = [1, 1]} : vector<2x96xf32> to vector<2x32xf32>
    %142 = vector.broadcast %19 : vector<1x32xf32> to vector<2x32xf32>
    %143 = arith.addf %141, %142 : vector<2x32xf32>
    %144 = arith.mulf %133, %143 : vector<2x32xf32>
    %145 = arith.addf %48, %144 : vector<2x32xf32>
    %146 = math.tanh %145 : vector<2x32xf32>
    %147 = arith.subf %125, %146 : vector<2x32xf32>
    %148 = arith.mulf %140, %147 : vector<2x32xf32>
    %149 = arith.addf %146, %148 : vector<2x32xf32>
    %cst_45 = arith.constant dense<0.000000e+00> : vector<2x96xf32>
    %150 = tpu.matmul %149, %11, %cst_45 {dimension_numbers = #tpu.dot_dimension_numbers<[1], [0], [0], [1], [0, 0, 1, 1], [], []>} : vector<2x32xf32>, vector<32x96xf32>, vector<2x96xf32> -> vector<2x96xf32>
    %151 = vector.extract_strided_slice %150 {offsets = [0, 0], sizes = [2, 32], strides = [1, 1]} : vector<2x96xf32> to vector<2x32xf32>
    %152 = arith.addf %33, %151 : vector<2x32xf32>
    %153 = arith.negf %152 : vector<2x32xf32>
    %154 = math.exp %153 : vector<2x32xf32>
    %cst_46 = arith.constant 1.000000e+00 : f32
    %155 = vector.broadcast %cst_46 : f32 to vector<2x32xf32>
    %156 = arith.addf %155, %154 : vector<2x32xf32>
    %157 = arith.divf %155, %156 : vector<2x32xf32>
    %158 = vector.extract_strided_slice %150 {offsets = [0, 32], sizes = [2, 32], strides = [1, 1]} : vector<2x96xf32> to vector<2x32xf32>
    %159 = arith.addf %41, %158 : vector<2x32xf32>
    %160 = arith.negf %159 : vector<2x32xf32>
    %161 = math.exp %160 : vector<2x32xf32>
    %cst_47 = arith.constant 1.000000e+00 : f32
    %162 = vector.broadcast %cst_47 : f32 to vector<2x32xf32>
    %163 = arith.addf %162, %161 : vector<2x32xf32>
    %164 = arith.divf %162, %163 : vector<2x32xf32>
    %165 = vector.extract_strided_slice %150 {offsets = [0, 64], sizes = [2, 32], strides = [1, 1]} : vector<2x96xf32> to vector<2x32xf32>
    %166 = vector.broadcast %19 : vector<1x32xf32> to vector<2x32xf32>
    %167 = arith.addf %165, %166 : vector<2x32xf32>
    %168 = arith.mulf %157, %167 : vector<2x32xf32>
    %169 = arith.addf %49, %168 : vector<2x32xf32>
    %170 = math.tanh %169 : vector<2x32xf32>
    %171 = arith.subf %149, %170 : vector<2x32xf32>
    %172 = arith.mulf %164, %171 : vector<2x32xf32>
    %173 = arith.addf %170, %172 : vector<2x32xf32>
    %cst_48 = arith.constant dense<0.000000e+00> : vector<2x96xf32>
    %174 = tpu.matmul %173, %11, %cst_48 {dimension_numbers = #tpu.dot_dimension_numbers<[1], [0], [0], [1], [0, 0, 1, 1], [], []>} : vector<2x32xf32>, vector<32x96xf32>, vector<2x96xf32> -> vector<2x96xf32>
    %175 = vector.extract_strided_slice %174 {offsets = [0, 0], sizes = [2, 32], strides = [1, 1]} : vector<2x96xf32> to vector<2x32xf32>
    %176 = arith.addf %34, %175 : vector<2x32xf32>
    %177 = arith.negf %176 : vector<2x32xf32>
    %178 = math.exp %177 : vector<2x32xf32>
    %cst_49 = arith.constant 1.000000e+00 : f32
    %179 = vector.broadcast %cst_49 : f32 to vector<2x32xf32>
    %180 = arith.addf %179, %178 : vector<2x32xf32>
    %181 = arith.divf %179, %180 : vector<2x32xf32>
    %182 = vector.extract_strided_slice %174 {offsets = [0, 32], sizes = [2, 32], strides = [1, 1]} : vector<2x96xf32> to vector<2x32xf32>
    %183 = arith.addf %42, %182 : vector<2x32xf32>
    %184 = arith.negf %183 : vector<2x32xf32>
    %185 = math.exp %184 : vector<2x32xf32>
    %cst_50 = arith.constant 1.000000e+00 : f32
    %186 = vector.broadcast %cst_50 : f32 to vector<2x32xf32>
    %187 = arith.addf %186, %185 : vector<2x32xf32>
    %188 = arith.divf %186, %187 : vector<2x32xf32>
    %189 = vector.extract_strided_slice %174 {offsets = [0, 64], sizes = [2, 32], strides = [1, 1]} : vector<2x96xf32> to vector<2x32xf32>
    %190 = vector.broadcast %19 : vector<1x32xf32> to vector<2x32xf32>
    %191 = arith.addf %189, %190 : vector<2x32xf32>
    %192 = arith.mulf %181, %191 : vector<2x32xf32>
    %193 = arith.addf %50, %192 : vector<2x32xf32>
    %194 = math.tanh %193 : vector<2x32xf32>
    %195 = arith.subf %173, %194 : vector<2x32xf32>
    %196 = arith.mulf %188, %195 : vector<2x32xf32>
    %197 = arith.addf %194, %196 : vector<2x32xf32>
    %cst_51 = arith.constant dense<0.000000e+00> : vector<2x96xf32>
    %198 = tpu.matmul %197, %11, %cst_51 {dimension_numbers = #tpu.dot_dimension_numbers<[1], [0], [0], [1], [0, 0, 1, 1], [], []>} : vector<2x32xf32>, vector<32x96xf32>, vector<2x96xf32> -> vector<2x96xf32>
    %199 = vector.extract_strided_slice %198 {offsets = [0, 0], sizes = [2, 32], strides = [1, 1]} : vector<2x96xf32> to vector<2x32xf32>
    %200 = arith.addf %35, %199 : vector<2x32xf32>
    %201 = arith.negf %200 : vector<2x32xf32>
    %202 = math.exp %201 : vector<2x32xf32>
    %cst_52 = arith.constant 1.000000e+00 : f32
    %203 = vector.broadcast %cst_52 : f32 to vector<2x32xf32>
    %204 = arith.addf %203, %202 : vector<2x32xf32>
    %205 = arith.divf %203, %204 : vector<2x32xf32>
    %206 = vector.extract_strided_slice %198 {offsets = [0, 32], sizes = [2, 32], strides = [1, 1]} : vector<2x96xf32> to vector<2x32xf32>
    %207 = arith.addf %43, %206 : vector<2x32xf32>
    %208 = arith.negf %207 : vector<2x32xf32>
    %209 = math.exp %208 : vector<2x32xf32>
    %cst_53 = arith.constant 1.000000e+00 : f32
    %210 = vector.broadcast %cst_53 : f32 to vector<2x32xf32>
    %211 = arith.addf %210, %209 : vector<2x32xf32>
    %212 = arith.divf %210, %211 : vector<2x32xf32>
    %213 = vector.extract_strided_slice %198 {offsets = [0, 64], sizes = [2, 32], strides = [1, 1]} : vector<2x96xf32> to vector<2x32xf32>
    %214 = vector.broadcast %19 : vector<1x32xf32> to vector<2x32xf32>
    %215 = arith.addf %213, %214 : vector<2x32xf32>
    %216 = arith.mulf %205, %215 : vector<2x32xf32>
    %217 = arith.addf %51, %216 : vector<2x32xf32>
    %218 = math.tanh %217 : vector<2x32xf32>
    %219 = arith.subf %197, %218 : vector<2x32xf32>
    %220 = arith.mulf %212, %219 : vector<2x32xf32>
    %221 = arith.addf %218, %220 : vector<2x32xf32>
    %cst_54 = arith.constant dense<0.000000e+00> : vector<2x96xf32>
    %222 = tpu.matmul %221, %11, %cst_54 {dimension_numbers = #tpu.dot_dimension_numbers<[1], [0], [0], [1], [0, 0, 1, 1], [], []>} : vector<2x32xf32>, vector<32x96xf32>, vector<2x96xf32> -> vector<2x96xf32>
    %223 = vector.extract_strided_slice %222 {offsets = [0, 0], sizes = [2, 32], strides = [1, 1]} : vector<2x96xf32> to vector<2x32xf32>
    %224 = arith.addf %36, %223 : vector<2x32xf32>
    %225 = arith.negf %224 : vector<2x32xf32>
    %226 = math.exp %225 : vector<2x32xf32>
    %cst_55 = arith.constant 1.000000e+00 : f32
    %227 = vector.broadcast %cst_55 : f32 to vector<2x32xf32>
    %228 = arith.addf %227, %226 : vector<2x32xf32>
    %229 = arith.divf %227, %228 : vector<2x32xf32>
    %230 = vector.extract_strided_slice %222 {offsets = [0, 32], sizes = [2, 32], strides = [1, 1]} : vector<2x96xf32> to vector<2x32xf32>
    %231 = arith.addf %44, %230 : vector<2x32xf32>
    %232 = arith.negf %231 : vector<2x32xf32>
    %233 = math.exp %232 : vector<2x32xf32>
    %cst_56 = arith.constant 1.000000e+00 : f32
    %234 = vector.broadcast %cst_56 : f32 to vector<2x32xf32>
    %235 = arith.addf %234, %233 : vector<2x32xf32>
    %236 = arith.divf %234, %235 : vector<2x32xf32>
    %237 = vector.extract_strided_slice %222 {offsets = [0, 64], sizes = [2, 32], strides = [1, 1]} : vector<2x96xf32> to vector<2x32xf32>
    %238 = vector.broadcast %19 : vector<1x32xf32> to vector<2x32xf32>
    %239 = arith.addf %237, %238 : vector<2x32xf32>
    %240 = arith.mulf %229, %239 : vector<2x32xf32>
    %241 = arith.addf %52, %240 : vector<2x32xf32>
    %242 = math.tanh %241 : vector<2x32xf32>
    %243 = arith.subf %221, %242 : vector<2x32xf32>
    %244 = arith.mulf %236, %243 : vector<2x32xf32>
    %245 = arith.addf %242, %244 : vector<2x32xf32>
    %c1_i32 = arith.constant 1 : i32
    %246 = arith.cmpi ne, %arg0, %c1_i32 : i32
    %247 = arith.extui %246 : i1 to i32
    %c0_i32_57 = arith.constant 0 : i32
    %248 = arith.cmpi ne, %247, %c0_i32_57 : i32
    scf.if %248 {
      %252 = tpu.concatenate %77, %101, %125, %149, %173, %197, %221, %245 in 0 : vector<2x32xf32>, vector<2x32xf32>, vector<2x32xf32>, vector<2x32xf32>, vector<2x32xf32>, vector<2x32xf32>, vector<2x32xf32>, vector<2x32xf32> -> vector<16x32xf32>
      %c0_60 = arith.constant 0 : index
      %c0_61 = arith.constant 0 : index
      %253 = vector.load %arg8[%c0_60, %c0_61] : memref<16x32xf32, #tpu.memory_space<vmem>>, vector<16x32xf32>
      tpu.vector_store %arg8[%c0_60, %c0_61], %252 {strides = array<i32>} : memref<16x32xf32, #tpu.memory_space<vmem>>, vector<16x32xf32>,
    } else {
    }
    %c1_i32_58 = arith.constant 1 : i32
    %249 = arith.cmpi eq, %arg0, %c1_i32_58 : i32
    %250 = arith.extui %249 : i1 to i32
    %c0_i32_59 = arith.constant 0 : i32
    %251 = arith.cmpi ne, %250, %c0_i32_59 : i32
    scf.if %251 {
      %252 = vector.extract_strided_slice %77 {offsets = [1, 0], sizes = [1, 32], strides = [1, 1]} : vector<2x32xf32> to vector<1x32xf32>
      %253 = vector.extract_strided_slice %101 {offsets = [1, 0], sizes = [1, 32], strides = [1, 1]} : vector<2x32xf32> to vector<1x32xf32>
      %254 = vector.extract_strided_slice %125 {offsets = [1, 0], sizes = [1, 32], strides = [1, 1]} : vector<2x32xf32> to vector<1x32xf32>
      %255 = vector.extract_strided_slice %149 {offsets = [1, 0], sizes = [1, 32], strides = [1, 1]} : vector<2x32xf32> to vector<1x32xf32>
      %256 = vector.extract_strided_slice %173 {offsets = [1, 0], sizes = [1, 32], strides = [1, 1]} : vector<2x32xf32> to vector<1x32xf32>
      %257 = vector.extract_strided_slice %197 {offsets = [1, 0], sizes = [1, 32], strides = [1, 1]} : vector<2x32xf32> to vector<1x32xf32>
      %258 = vector.extract_strided_slice %221 {offsets = [1, 0], sizes = [1, 32], strides = [1, 1]} : vector<2x32xf32> to vector<1x32xf32>
      %259 = vector.extract_strided_slice %245 {offsets = [1, 0], sizes = [1, 32], strides = [1, 1]} : vector<2x32xf32> to vector<1x32xf32>
      %260 = tpu.concatenate %252, %253, %254, %255, %256, %257, %258, %259 in 0 : vector<1x32xf32>, vector<1x32xf32>, vector<1x32xf32>, vector<1x32xf32>, vector<1x32xf32>, vector<1x32xf32>, vector<1x32xf32>, vector<1x32xf32> -> vector<8x32xf32>
      %c0_60 = arith.constant 0 : index
      %c0_61 = arith.constant 0 : index
      %261 = vector.load %arg7[%c0_60, %c0_61] : memref<8x32xf32, #tpu.memory_space<vmem>>, vector<8x32xf32>
      tpu.vector_store %arg7[%c0_60, %c0_61], %260 {strides = array<i32>} : memref<8x32xf32, #tpu.memory_space<vmem>>, vector<8x32xf32>,
    } else {
    }
    return
  }
  func.func @transform_1(%arg0: i32, %arg1: memref<16xi32, #tpu.memory_space<smem>>) -> (i32, i32, i32, i32) {
    %c0_i32 = arith.constant 0 : i32
    %c0_i32_0 = arith.constant 0 : i32
    %c0_i32_1 = arith.constant 0 : i32
    %c0_i32_2 = arith.constant 0 : i32
    return %arg0, %c0_i32, %c0_i32_0, %c0_i32_1 : i32, i32, i32, i32
  }
  func.func @transform_2(%arg0: i32, %arg1: memref<16xi32, #tpu.memory_space<smem>>) -> (i32, i32, i32) {
    %c0_i32 = arith.constant 0 : i32
    %c0_i32_0 = arith.constant 0 : i32
    %c0_i32_1 = arith.constant 0 : i32
    return %arg0, %c0_i32, %c0_i32_0 : i32, i32, i32
  }
  func.func @transform_3(%arg0: i32, %arg1: memref<16xi32, #tpu.memory_space<smem>>) -> (i32, i32, i32, i32) {
    %c0_i32 = arith.constant 0 : i32
    %c0_i32_0 = arith.constant 0 : i32
    %c0_i32_1 = arith.constant 0 : i32
    %c0_i32_2 = arith.constant 0 : i32
    return %arg0, %c0_i32, %c0_i32_0, %c0_i32_1 : i32, i32, i32, i32
  }
  func.func @transform_4(%arg0: i32, %arg1: memref<16xi32, #tpu.memory_space<smem>>) -> (i32, i32, i32) {
    %c0_i32 = arith.constant 0 : i32
    %c0_i32_0 = arith.constant 0 : i32
    %c0_i32_1 = arith.constant 0 : i32
    return %arg0, %c0_i32, %c0_i32_0 : i32, i32, i32
  }
  func.func @transform_5(%arg0: i32, %arg1: memref<16xi32, #tpu.memory_space<smem>>) -> (i32, i32) {
    %c0_i32 = arith.constant 0 : i32
    %c0_i32_0 = arith.constant 0 : i32
    %c0_i32_1 = arith.constant 0 : i32
    return %c0_i32, %c0_i32_0 : i32, i32
  }
}

</mosaic_0001>

<bundles_post_ra>
// kernel: tpu_custom_call.1
= control target key start
LH: loop header
LB: loop body
LE: loop exit
PB: predicated region body
PF: predicated region fallthrough
CT: control target
= control target key end

     0   :  { %s4107_s0 = inlined_call_operand.hbm [shape: s32[16], index: 0, kind: input, shape index: {}]   ;;  %s4108_s1 = inlined_call_operand.hbm [shape: f32[20,32], index: 1, kind: input, shape index: {}]   ;;  %s4109_s2 = inlined_call_operand.hbm [shape: f32[2,3,32,32], index: 2, kind: input, shape index: {}]   ;;  %s4110_s3 = inlined_call_operand.hbm [shape: f32[2,32,96], index: 3, kind: input, shape index: {}]   ;;  %s4111_s4 = inlined_call_operand.vmem [shape: f32[2,3,1,32], index: 4, kind: input, shape index: {}]   ;;  %s4112_s5 = inlined_call_operand.vmem [shape: f32[2,1,32], index: 5, kind: input, shape index: {}]   ;;  %s4113_s6 = inlined_call_operand.hbm [shape: f32[8,32], index: 6, kind: output, shape index: {}]  }
   0x1   :  { %4116 = sst [smem:[#allocation66_spill]] %s4109_s2  ;;  %s2579_s23 = scalar_lea.hbm %s4107_s0, 16 }
   0x2   :  { %4117 = sst [smem:[#allocation67_spill]] %s4110_s3  ;;  %p2580_p0 = scmp.ne.s32.totalorder %s4107_s0, %s2579_s23 }
   0x3   :  { %4118 = sst [smem:[#allocation68_spill]] %s4111_s4  ;;  %p2583_p1 = scmp.lt.u32.totalorder %s2579_s23, %s4107_s0 }
   0x5   :  { %p2585_p2 = pnand %p2583_p1, %p2580_p0 }
   0x7   :  { %2588 = shalt.err (!%p2585_p2)  }
   0x8   :  { %s3233_s28 = smov [#allocation5]  }
   0x9   :  { %12 = dma.hbm_to_smem %s4107_s0, 16, %s3233_s28, [#allocation4] }
   0xa   :  { %3139 = dma.done.wait [#allocation4], 16 }
   0xb   :  { %3140 = vsyncadd [#allocation4], 4294967280 }
   0xc   :  { %14 = sfence }
   0xd   :  { %15 = vsyncpa [#allocation7], 0 }
   0xe   :  { %17 = vsyncpa [#allocation7 + $0x1], 0 }
   0xf   :  { %18 = vsyncpa [#allocation10], 0 }
  0x10   :  { %20 = vsyncpa [#allocation10 + $0x1], 0 }
  0x11   :  { %21 = vsyncpa [#allocation8], 0  ;;  %s3307_s7 = smov 0   ;;  %s3309_s8 = smov 0  }
  0x12   :  { %s3311_s9 = smov 0   ;;  %s3313_s10 = smov 0  }
  0x13 LB: > { %s3326_s0 = sadd.s32 4294967295, %s3231_s10   ;;  %s3329_s11 = sadd.s32 1, %s3231_s10   ;;  %s3231_s10 = sphi %s3313_s10, %s4209_s10   ;;  %s3227_s9 = sphi %s3311_s9, %s4208_s9   ;;  %s3223_s8 = sphi %s3309_s8, %s4207_s8   ;;  %s3219_s7 = sphi %s3307_s7, %s4206_s7  }
  0x14   : > { %s31_s12 = ssub.s32 %s3231_s10, %s3329_s11  ;;  %s34_s13 = sadd.s32 1, %s3227_s9 }
  0x15   : > { %p32_p3 = scmp.eq.s32.totalorder %s31_s12, 0  ;;  %p41_p4 = scmp.ne.s32.totalorder %s3227_s9, %s3223_s8 }
  0x16   : > { %p42_p5 = scmp.eq.s32.totalorder %s3231_s10, 0  ;;  %p47_p6 = scmp.ne.s32.totalorder %s3223_s8, %s3219_s7 }
  0x17   : > { %s3339_s14 = scalar_select %p32_p3, %s3227_s9, %s34_s13  }
  0x18   : > { %p43_p7 = por %p42_p5, %p41_p4  ;;  %p4114_p8 = scmp.eq.s32.totalorder %s3326_s0, 0 }
  0x19   : > { %p2438_p9 = scmp.lt.s32.totalorder %s3231_s10, 2  ;;  %s3350_s16 = sand.u32 1, %s3227_s9  }
  0x1a   : > { %p3345_p10 = por %p4114_p8, %p47_p6  ;;  %s2386_s17 = smul.u32 96, %s3350_s16 }
  0x1b   : > { %s2387_s18 = smul.u32 1536, %s3231_s10  ;;  %p3354_p11 = pnand %p2438_p9, %p43_p7 }
  0x1c   : > { %s4119_s15 = scalar_select %p3345_p10, 1, 0 }
  0x1d   : > { %s4121_s2 = sld [smem:[#allocation66_spill]]  ;;  %s174_s23 = scalar_lea.vmem [#allocation6], %s2386_s17 }
  0x1e   : > { %s181_s24 = sshll.u32 %s174_s23, 4  ;;  %s171_s25 = scalar_lea.sflag [#allocation7], %s3350_s16  ;;  %s3363_s24 = int_to_ptr.vmem [resolvable:$true] %s181_s24 }
  0x1f   : > { %p2591_p0 = pneg %p3354_p11 }
  0x23   : > { %s3361_s22 = scalar_lea.hbm %s4121_s2, %s2387_s18  ;;  %s2594_s29 = scalar_lea.hbm %s4121_s2, 3072 }
  0x24   : > { %s2589_s26 = scalar_lea.hbm %s3361_s22, 1536  ;;  %p2595_p3 = scmp.lt.u32.totalorder %s3361_s22, %s4121_s2 }
  0x25   : > { %p2590_p13 = scmp.ne.s32.totalorder %s3361_s22, %s2589_s26  ;;  %p2596_p4 = scmp.lt.u32.totalorder %s2594_s29, %s2589_s26 }
  0x26   : > { %p2598_p6 = scmp.lt.u32.totalorder %s2589_s26, %s3361_s22 }
  0x27   : > { %p2592_p1 = pnand %p2591_p0, %p2590_p13  ;;  %p2597_p5 = por %p2596_p4, %p2595_p3 }
  0x29   : > { %p2593_p2 = pneg %p2592_p1  ;;  %p2599_p7 = por %p2598_p6, %p2597_p5 }
  0x2b   : > { %p2600_p9 = pnand %p2599_p7, %p2593_p2 }
  0x2d   : > { %2603 = shalt.err (!%p2600_p9)
}
  0x2e   : > { %s2604_s12 = scalar_lea.vmem %s3363_s24, 1536  ;;  %s3234_s13 = smov [#allocation6]  }
  0x2f   : > { %p2605_p13 = scmp.ne.s32.totalorder %s3363_s24, %s2604_s12  ;;  %s2609_s17 = sshll.u32 %s3234_s13, 4  ;;  %s2610_s17 = int_to_ptr.vmem [resolvable:$false] %s2609_s17 }
  0x30   : > { %s2611_s18 = scalar_lea.vmem %s2610_s17, 3072  ;;  %p2612_p12 = scmp.lt.s32.totalorder %s3363_s24, %s2610_s17 }
  0x31   : > { %p2607_p1 = pnand %p2605_p13, %p2591_p0  ;;  %p2613_p3 = scmp.lt.s32.totalorder %s2611_s18, %s2604_s12 }
  0x33   : > { %p2608_p8 = pneg %p2607_p1  ;;  %p2614_p4 = por %p2613_p3, %p2612_p12 }
  0x35   : > { %p2615_p5 = pnand %p2614_p4, %p2608_p8 }
  0x37   : > { %2618 = shalt.err (!%p2615_p5)
}
  0x38   : > { %s3235_s20 = smov 128   ;;  %s3236_s21 = smov 8  }
  0x39   : > { %2434 = dma.hbm_to_vmem [thread:$0]  (!%p3354_p11), %s3361_s22, 1536, %s3363_s24, %s171_s25, %s3235_s20, %s3235_s20, %s3236_s21  }
  0x3a   : > { %p223_p8 = scmp.lt.s32.totalorder %s3231_s10, 3  ;;  %s2032_s23 = sshll.u32 %s3350_s16, 5 }
  0x3b   : > { %s2134_s26 = sshll.u32 %s3231_s10, 9  ;;  %p4122_p12 = scmp.ge.s32.totalorder %s3231_s10, 1 }
  0x3c   : > { %s4124_s3 = sld [smem:[#allocation67_spill]]  ;;  %s195_s7 = scalar_lea.vmem [#allocation9], %s2032_s23 }
  0x3d   : > { %p3402_p2 = pnand %p4122_p12, %p223_p8  ;;  %s202_s12 = sshll.u32 %s195_s7, 4  ;;  %s3411_s12 = int_to_ptr.vmem [resolvable:$true] %s202_s12 }
  0x3e   : > { %s192_s22 = scalar_lea.sflag [#allocation10], %s3350_s16 }
  0x42   : > { %s3409_s30 = scalar_lea.hbm %s4124_s3, %s2134_s26  ;;  %s2624_s13 = scalar_lea.hbm %s4124_s3, 1024 }
  0x43   : > { %s2619_s24 = scalar_lea.hbm %s3409_s30, 512  ;;  %p2625_p13 = scmp.lt.u32.totalorder %s3409_s30, %s4124_s3 }
  0x44   : > { %p2620_p6 = scmp.ne.s32.totalorder %s3409_s30, %s2619_s24  ;;  %p2626_p1 = scmp.lt.u32.totalorder %s2624_s13, %s2619_s24 }
  0x45   : > { %p2628_p4 = scmp.lt.u32.totalorder %s2619_s24, %s3409_s30 }
  0x46   : > { %p2622_p7 = pnand %p2620_p6, %p2591_p0  ;;  %p2627_p3 = por %p2626_p1, %p2625_p13 }
  0x48   : > { %p2623_p9 = pneg %p2622_p7  ;;  %p2629_p5 = por %p2628_p4, %p2627_p3 }
  0x4a   : > { %p2630_p8 = pnand %p2629_p5, %p2623_p9 }
  0x4c   : > { %2633 = shalt.err (!%p2630_p8)
}
  0x4d   : > { %s2634_s23 = scalar_lea.vmem %s3411_s12, 512  ;;  %s3237_s26 = smov [#allocation9]  }
  0x4e   : > { %p2635_p12 = scmp.ne.s32.totalorder %s3411_s12, %s2634_s23  ;;  %s2639_s28 = sshll.u32 %s3237_s26, 4  ;;  %s2640_s28 = int_to_ptr.vmem [resolvable:$false] %s2639_s28 }
  0x4f   : > { %s2641_s29 = scalar_lea.vmem %s2640_s28, 1024  ;;  %p2642_p10 = scmp.lt.s32.totalorder %s3411_s12, %s2640_s28 }
  0x50   : > { %p2637_p6 = pnand %p2635_p12, %p2591_p0  ;;  %p2643_p13 = scmp.lt.s32.totalorder %s2641_s29, %s2634_s23 }
  0x52   : > { %p2638_p7 = pneg %p2637_p6  ;;  %p2644_p1 = por %p2643_p13, %p2642_p10 }
  0x54   : > { %p2645_p3 = pnand %p2644_p1, %p2638_p7 }
  0x56   : > { %2648 = shalt.err (!%p2645_p3)
}
  0x57   : > { %2437 = dma.hbm_to_vmem [thread:$0]  (!%p3354_p11), %s3409_s30, 512, %s3411_s12, %s192_s22, %s3235_s20, %s3235_s20, %s3236_s21  }
  0x58   : > { %227 = sbr.rel (%p3402_p2) target bundleno = 3498 (0xdaa), region = 36  ;;  %s229_s7 = sand.u32 (!%p3402_p2), 1, %s3223_s8  }
  0x59   : > { %s2388_s24 = smul.u32 (!%p3402_p2), 96, %s229_s7  ;;  %s230_s10 = scalar_lea.sflag (!%p3402_p2), [#allocation7], %s229_s7 }
  0x5a   : > { %p4125_p10 = scmp.ne.s32.totalorder (!%p3402_p2), %s4119_s15, 0 }
  0x5b   : > { %s3445_s25 = scalar_lea.vmem (!%p3402_p2), [#allocation6], %s2388_s24 }
  0x5f   : > { %3142 = dma.done.wait (%p4125_p10), %s230_s10, 1536  }
  0x60   : > { %3144 = vsyncadd (%p4125_p10), %s230_s10, 4294965760  ;;  %s2036_s16 = sshll.u32 %s229_s7, 5  ;;  %s239_s19 = scalar_lea.sflag [#allocation10], %s229_s7 }
  0x61   : > { %s3451_s13 = scalar_lea.vmem [#allocation9], %s2036_s16 }
  0x62   : > { %3146 = dma.done.wait (%p4125_p10), %s239_s19, 512  }
  0x63   : > { %3148 = vsyncadd (%p4125_p10), %s239_s19, 4294966784  ;;  %p274_p11 = scmp.lt.s32.totalorder %s3326_s0, 1  ;;  %s285_s20 = sld [smem:[#allocation5]] }
  0x64   : > { %s3238_s27 = smov [#allocation2]   ;;  %s3461_s12 = sld [smem:[#allocation5 + $0x1]] }
  0x65   : > { %s3459_s21 = scalar_select %p274_p11, %s3326_s0, 1 }
  0x66   : > { %s295_s30 = sshll.u32 %s3238_s27, 4  ;;  %s4126_s4 = sld [smem:[#allocation68_spill]]  ;;  %s3468_s30 = int_to_ptr.vmem [resolvable:$true] %s295_s30 }
  0x67   : > { %s2389_s22 = smul.u32 3, %s3459_s21  ;;  %s3239_s29 = smov [#allocation2 + $0x1]  }
  0x68   : > { %s311_s7 = sshll.u32 %s3239_s29, 4  ;;  %s3480_s27 = sld [smem:[#allocation5 + $0x2]]  ;;  %s3475_s7 = int_to_ptr.vmem [resolvable:$true] %s311_s7 }
  0x69   : > { %s2038_s24 = sshll.u32 %s285_s20, 4  ;;  %p4127_p2 = scmp.eq.s32.totalorder %s3326_s0, 0 }
  0x6a   : > { %s287_s19 = scalar_lea.hbm %s4108_s1, %s2038_s24 }
  0x6b   : > { %s2649_s17 = scalar_lea.hbm %s287_s19, 16  ;;  %p2654_p5 = scmp.lt.u32.totalorder %s287_s19, %s4108_s1 }
  0x6c   : > { %s3473_s28 = scalar_lea.vmem %s4126_s4, %s2389_s22  ;;  %p2650_p0 = scmp.ne.s32.totalorder %s287_s19, %s2649_s17 }
  0x6d   : > { %s3487_s22 = scalar_lea.hbm %s4108_s1, 384  ;;  %p2657_p6 = scmp.lt.u32.totalorder %s2649_s17, %s287_s19 }
  0x6e   : > { %p2651_p9 = pnand %p2650_p0, %p4127_p2  ;;  %p2655_p8 = scmp.lt.u32.totalorder %s3487_s22, %s2649_s17 }
  0x70   : > { %p2652_p4 = pneg %p2651_p9  ;;  %p2656_p12 = por %p2655_p8, %p2654_p5 }
  0x72   : > { %p2658_p7 = por %p2657_p6, %p2656_p12 }
  0x74   : > { %p2659_p13 = pnand %p2658_p7, %p2652_p4 }
  0x76   : > { %2662 = shalt.err (!%p2659_p13)  }
  0x77   : > { %s2663_s29 = scalar_lea.vmem %s3468_s30, 16  ;;  %p4128_p3 = pmov %p4127_p2 }
  0x78   : > { %p2664_p1 = scmp.ne.s32.totalorder %s3468_s30, %s2663_s29  ;;  %s3498_s24 = scalar_lea.vmem %s3468_s30, 256 }
  0x79   : > { %p2670_p0 = scmp.lt.s32.totalorder %s3468_s30, %s3468_s30  ;;  %p2671_p2 = scmp.lt.s32.totalorder %s3498_s24, %s2663_s29 }
  0x7a   : > { %p2665_p10 = pnand %p2664_p1, %p4128_p3 }
  0x7b   : > { %p2672_p9 = por %p2671_p2, %p2670_p0 }
  0x7c   : > { %p2666_p11 = pneg %p2665_p10 }
  0x7e   : > { %p2673_p5 = pnand %p2672_p9, %p2666_p11 }
  0x80   : > { %2676 = shalt.err (!%p2673_p5)  }
  0x81   : > { %p4129_p4 = pmov %p4128_p3  ;;  %s2040_s10 = sshll.u32 %s3461_s12, 4 }
  0x82   : > { %s301_s18 = scalar_lea.hbm %s4108_s1, %s2040_s10  ;;  %s3240_s15 = smov [#allocation2 + $0x2]  }
  0x83   : > { %2395 = dma.hbm_to_vmem [thread:$0]  (%p4129_p4), %s287_s19, 16, %s3468_s30, [#allocation3] }
  0x84   : > { %s327_s26 = sshll.u32 %s3240_s15, 4  ;;  %s2677_s20 = scalar_lea.hbm %s301_s18, 16  ;;  %s328_s26 = int_to_ptr.vmem [resolvable:$true] %s327_s26 }
  0x85   : > { %p2678_p8 = scmp.ne.s32.totalorder %s301_s18, %s2677_s20  ;;  %p4130_p12 = pmov %p4128_p3 }
  0x86   : > { %p2682_p13 = scmp.lt.u32.totalorder %s301_s18, %s4108_s1  ;;  %p2683_p1 = scmp.lt.u32.totalorder %s3487_s22, %s2677_s20 }
  0x87   : > { %p2679_p6 = pnand %p2678_p8, %p4130_p12  ;;  %p2685_p10 = scmp.lt.u32.totalorder %s2677_s20, %s301_s18 }
  0x88   : > { %p2684_p3 = por %p2683_p1, %p2682_p13 }
  0x89   : > { %p2680_p7 = pneg %p2679_p6 }
  0x8a   : > { %p2686_p11 = por %p2685_p10, %p2684_p3 }
  0x8c   : > { %p2687_p0 = pnand %p2686_p11, %p2680_p7 }
  0x8e   : > { %2690 = shalt.err (!%p2687_p0)  }
  0x8f   : > { %s2691_s12 = scalar_lea.vmem %s3475_s7, 16  ;;  %p4131_p9 = pmov %p4129_p4 }
  0x90   : > { %p2692_p2 = scmp.ne.s32.totalorder %s3475_s7, %s2691_s12  ;;  %p2698_p8 = scmp.lt.s32.totalorder %s3475_s7, %s3468_s30 }
  0x91   : > { %p2699_p12 = scmp.lt.s32.totalorder %s3498_s24, %s2691_s12 }
  0x92   : > { %p2693_p5 = pnand %p2692_p2, %p4131_p9 }
  0x93   : > { %p2700_p6 = por %p2699_p12, %p2698_p8 }
  0x94   : > { %p2694_p4 = pneg %p2693_p5 }
  0x96   : > { %p2701_p1 = pnand %p2700_p6, %p2694_p4 }
  0x98   : > { %2704 = shalt.err (!%p2701_p1)  }
  0x99   : > { %p4132_p13 = pmov %p4131_p9  ;;  %s3526_s23 = sld [smem:[#allocation5 + $0x3]] }
  0x9a   : > { %s2042_s19 = sshll.u32 %s3480_s27, 4  ;;  %s3241_s15 = smov [#allocation2 + $0x3]  }
  0x9b   : > { %2396 = dma.hbm_to_vmem [thread:$0]  (%p4132_p13), %s301_s18, 16, %s3475_s7, [#allocation3 + $0x1] }
  0x9c   : > { %s317_s17 = scalar_lea.hbm %s4108_s1, %s2042_s19  ;;  %s343_s20 = sshll.u32 %s3241_s15, 4  ;;  %s344_s20 = int_to_ptr.vmem [resolvable:$true] %s343_s20 }
  0x9d   : > { %s2705_s29 = scalar_lea.hbm %s317_s17, 16  ;;  %p4133_p3 = pmov %p4131_p9 }
  0x9e   : > { %p2706_p7 = scmp.ne.s32.totalorder %s317_s17, %s2705_s29  ;;  %p2710_p0 = scmp.lt.u32.totalorder %s317_s17, %s4108_s1 }
  0x9f   : > { %p2711_p2 = scmp.lt.u32.totalorder %s3487_s22, %s2705_s29  ;;  %p2713_p5 = scmp.lt.u32.totalorder %s2705_s29, %s317_s17 }
  0xa0   : > { %p2707_p10 = pnand %p2706_p7, %p4133_p3 }
  0xa1   : > { %p2712_p9 = por %p2711_p2, %p2710_p0 }
  0xa2   : > { %p2708_p11 = pneg %p2707_p10 }
  0xa3   : > { %p2714_p4 = por %p2713_p5, %p2712_p9 }
  0xa5   : > { %p2715_p8 = pnand %p2714_p4, %p2708_p11 }
  0xa7   : > { %2718 = shalt.err (!%p2715_p8)  }
  0xa8   : > { %s2719_s7 = scalar_lea.vmem %s328_s26, 16  ;;  %p4134_p6 = pmov %p4133_p3 }
  0xa9   : > { %p2720_p12 = scmp.ne.s32.totalorder %s328_s26, %s2719_s7  ;;  %p2726_p7 = scmp.lt.s32.totalorder %s328_s26, %s3468_s30 }
  0xaa   : > { %p2727_p3 = scmp.lt.s32.totalorder %s3498_s24, %s2719_s7 }
  0xab   : > { %p2721_p1 = pnand %p2720_p12, %p4134_p6 }
  0xac   : > { %p2728_p10 = por %p2727_p3, %p2726_p7 }
  0xad   : > { %p2722_p13 = pneg %p2721_p1 }
  0xaf   : > { %p2729_p0 = pnand %p2728_p10, %p2722_p13 }
  0xb1   : > { %2732 = shalt.err (!%p2729_p0)  }
  0xb2   : > { %p4135_p2 = pmov %p4134_p6  ;;  %s3544_s2 = sld [smem:[#allocation5 + $0x4]] }
  0xb3   : > { %s3546_s27 = sld [smem:[#allocation5 + $0x5]]  ;;  %s2044_s18 = sshll.u32 %s3526_s23, 4 }
  0xb4   : > { %2397 = dma.hbm_to_vmem [thread:$0]  (%p4135_p2), %s317_s17, 16, %s328_s26, [#allocation3 + $0x2] }
  0xb5   : > { %s3242_s19 = smov [#allocation2 + $0x4]   ;;  %s333_s29 = scalar_lea.hbm %s4108_s1, %s2044_s18 }
  0xb6   : > { %s359_s10 = sshll.u32 %s3242_s19, 4  ;;  %s2733_s12 = scalar_lea.hbm %s333_s29, 16  ;;  %s3552_s10 = int_to_ptr.vmem [resolvable:$true] %s359_s10 }
  0xb7   : > { %p2734_p11 = scmp.ne.s32.totalorder %s333_s29, %s2733_s12  ;;  %p4136_p9 = pmov %p4135_p2 }
  0xb8   : > { %p2738_p8 = scmp.lt.u32.totalorder %s333_s29, %s4108_s1  ;;  %p2739_p12 = scmp.lt.u32.totalorder %s3487_s22, %s2733_s12 }
  0xb9   : > { %p2735_p5 = pnand %p2734_p11, %p4136_p9  ;;  %p2741_p1 = scmp.lt.u32.totalorder %s2733_s12, %s333_s29 }
  0xba   : > { %p2740_p6 = por %p2739_p12, %p2738_p8 }
  0xbb   : > { %p2736_p4 = pneg %p2735_p5 }
  0xbc   : > { %p2742_p13 = por %p2741_p1, %p2740_p6 }
  0xbe   : > { %p2743_p7 = pnand %p2742_p13, %p2736_p4 }
  0xc0   : > { %2746 = shalt.err (!%p2743_p7)  }
  0xc1   : > { %s2747_s23 = scalar_lea.vmem %s344_s20, 16  ;;  %p4137_p10 = pmov %p4135_p2 }
  0xc2   : > { %p2748_p3 = scmp.ne.s32.totalorder %s344_s20, %s2747_s23  ;;  %p2754_p11 = scmp.lt.s32.totalorder %s344_s20, %s3468_s30 }
  0xc3   : > { %p2755_p9 = scmp.lt.s32.totalorder %s3498_s24, %s2747_s23 }
  0xc4   : > { %p2749_p0 = pnand %p2748_p3, %p4137_p10 }
  0xc5   : > { %p2756_p5 = por %p2755_p9, %p2754_p11 }
  0xc6   : > { %p2750_p2 = pneg %p2749_p0 }
  0xc8   : > { %p2757_p8 = pnand %p2756_p5, %p2750_p2 }
  0xca   : > { %2760 = shalt.err (!%p2757_p8)  }
  0xcb   : > { %p4138_p12 = pmov %p4137_p10  ;;  %s3566_s7 = sld [smem:[#allocation5 + $0x6]] }
  0xcc   : > { %s2046_s18 = sshll.u32 %s3544_s2, 4  ;;  %s3243_s19 = smov [#allocation2 + $0x5]  }
  0xcd   : > { %2398 = dma.hbm_to_vmem [thread:$0]  (%p4138_p12), %s333_s29, 16, %s344_s20, [#allocation3 + $0x3] }
  0xce   : > { %s375_s16 = sshll.u32 %s3243_s19, 4  ;;  %s349_s26 = scalar_lea.hbm %s4108_s1, %s2046_s18  ;;  %s376_s16 = int_to_ptr.vmem [resolvable:$true] %s375_s16 }
  0xcf   : > { %s2048_s17 = sshll.u32 %s3546_s27, 4  ;;  %s2761_s23 = scalar_lea.hbm %s349_s26, 16 }
  0xd0   : > { %p2762_p4 = scmp.ne.s32.totalorder %s349_s26, %s2761_s23  ;;  %p4139_p6 = pmov %p4137_p10 }
  0xd1   : > { %p2766_p7 = scmp.lt.u32.totalorder %s349_s26, %s4108_s1  ;;  %p2767_p3 = scmp.lt.u32.totalorder %s3487_s22, %s2761_s23 }
  0xd2   : > { %p2763_p1 = pnand %p2762_p4, %p4139_p6  ;;  %p2769_p0 = scmp.lt.u32.totalorder %s2761_s23, %s349_s26 }
  0xd3   : > { %p2768_p10 = por %p2767_p3, %p2766_p7 }
  0xd4   : > { %p2764_p13 = pneg %p2763_p1 }
  0xd5   : > { %p2770_p2 = por %p2769_p0, %p2768_p10 }
  0xd7   : > { %p2771_p11 = pnand %p2770_p2, %p2764_p13 }
  0xd9   : > { %2774 = shalt.err (!%p2771_p11)  }
  0xda   : > { %s2775_s20 = scalar_lea.vmem %s3552_s10, 16  ;;  %p4140_p5 = pmov %p4139_p6 }
  0xdb   : > { %p2776_p9 = scmp.ne.s32.totalorder %s3552_s10, %s2775_s20  ;;  %p2782_p4 = scmp.lt.s32.totalorder %s3552_s10, %s3468_s30 }
  0xdc   : > { %p2783_p6 = scmp.lt.s32.totalorder %s3498_s24, %s2775_s20 }
  0xdd   : > { %p2777_p8 = pnand %p2776_p9, %p4140_p5 }
  0xde   : > { %p2784_p1 = por %p2783_p6, %p2782_p4 }
  0xdf   : > { %p2778_p12 = pneg %p2777_p8 }
  0xe1   : > { %p2785_p3 = pnand %p2784_p1, %p2778_p12 }
  0xe3   : > { %2788 = shalt.err (!%p2785_p3)  }
  0xe4   : > { %p4141_p7 = pmov %p4140_p5  ;;  %s365_s2 = scalar_lea.hbm %s4108_s1, %s2048_s17 }
  0xe5   : > { %s2789_s27 = scalar_lea.hbm %s365_s2, 16  ;;  %p4142_p10 = pmov %p4140_p5 }
  0xe6   : > { %2399 = dma.hbm_to_vmem [thread:$0]  (%p4141_p7), %s349_s26, 16, %s3552_s10, [#allocation3 + $0x4] }
  0xe7   : > { %p2790_p13 = scmp.ne.s32.totalorder %s365_s2, %s2789_s27  ;;  %p2794_p11 = scmp.lt.u32.totalorder %s365_s2, %s4108_s1 }
  0xe8   : > { %p2795_p9 = scmp.lt.u32.totalorder %s3487_s22, %s2789_s27  ;;  %p2797_p8 = scmp.lt.u32.totalorder %s2789_s27, %s365_s2 }
  0xe9   : > { %p2791_p0 = pnand %p2790_p13, %p4142_p10 }
  0xea   : > { %p2796_p5 = por %p2795_p9, %p2794_p11 }
  0xeb   : > { %p2792_p2 = pneg %p2791_p0 }
  0xec   : > { %p2798_p12 = por %p2797_p8, %p2796_p5 }
  0xee   : > { %p2799_p4 = pnand %p2798_p12, %p2792_p2 }
  0xf0   : > { %2802 = shalt.err (!%p2799_p4)  }
  0xf1   : > { %s2803_s10 = scalar_lea.vmem %s376_s16, 16  ;;  %p4143_p1 = pmov %p4141_p7 }
  0xf2   : > { %p2804_p6 = scmp.ne.s32.totalorder %s376_s16, %s2803_s10  ;;  %p2810_p13 = scmp.lt.s32.totalorder %s376_s16, %s3468_s30 }
  0xf3   : > { %p2811_p10 = scmp.lt.s32.totalorder %s3498_s24, %s2803_s10 }
  0xf4   : > { %p2805_p3 = pnand %p2804_p6, %p4143_p1 }
  0xf5   : > { %p2812_p0 = por %p2811_p10, %p2810_p13 }
  0xf6   : > { %p2806_p7 = pneg %p2805_p3 }
  0xf8   : > { %p2813_p9 = pnand %p2812_p0, %p2806_p7 }
  0xfa   : > { %2816 = shalt.err (!%p2813_p9)  }
  0xfb   : > { %p4144_p11 = pmov %p4143_p1  ;;  %s2050_s19 = sshll.u32 %s3566_s7, 4 }
  0xfc   : > { %s381_s26 = scalar_lea.hbm %s4108_s1, %s2050_s19  ;;  %s3244_s17 = smov [#allocation2 + $0x6]  }
  0xfd   : > { %2400 = dma.hbm_to_vmem [thread:$0]  (%p4144_p11), %s365_s2, 16, %s376_s16, [#allocation3 + $0x5] }
  0xfe   : > { %s391_s23 = sshll.u32 %s3244_s17, 4  ;;  %s3608_s20 = sld [smem:[#allocation5 + $0x7]]  ;;  %s392_s23 = int_to_ptr.vmem [resolvable:$true] %s391_s23 }
  0xff   : > { %s2817_s3 = scalar_lea.hbm %s381_s26, 16  ;;  %p4145_p5 = pmov %p4143_p1 }
 0x100   : > { %p2818_p2 = scmp.ne.s32.totalorder %s381_s26, %s2817_s3  ;;  %p2822_p4 = scmp.lt.u32.totalorder %s381_s26, %s4108_s1 }
 0x101   : > { %p2823_p6 = scmp.lt.u32.totalorder %s3487_s22, %s2817_s3  ;;  %p2825_p3 = scmp.lt.u32.totalorder %s2817_s3, %s381_s26 }
 0x102   : > { %p2819_p8 = pnand %p2818_p2, %p4145_p5 }
 0x103   : > { %p2824_p1 = por %p2823_p6, %p2822_p4 }
 0x104   : > { %p2820_p12 = pneg %p2819_p8 }
 0x105   : > { %p2826_p7 = por %p2825_p3, %p2824_p1 }
 0x107   : > { %p2827_p13 = pnand %p2826_p7, %p2820_p12 }
 0x109   : > { %2830 = shalt.err (!%p2827_p13)  }
 0x10a   : > { %s2831_s7 = scalar_lea.vmem %s392_s23, 16  ;;  %p4146_p0 = pmov %p4145_p5 }
 0x10b   : > { %p2832_p10 = scmp.ne.s32.totalorder %s392_s23, %s2831_s7  ;;  %p2838_p2 = scmp.lt.s32.totalorder %s392_s23, %s3468_s30 }
 0x10c   : > { %p2839_p5 = scmp.lt.s32.totalorder %s3498_s24, %s2831_s7 }
 0x10d   : > { %p2833_p9 = pnand %p2832_p10, %p4146_p0 }
 0x10e   : > { %p2840_p8 = por %p2839_p5, %p2838_p2 }
 0x10f   : > { %p2834_p11 = pneg %p2833_p9 }
 0x111   : > { %p2841_p4 = pnand %p2840_p8, %p2834_p11 }
 0x113   : > { %2844 = shalt.err (!%p2841_p4)  }
 0x114   : > { %p4147_p6 = pmov %p4146_p0  ;;  %s3622_s16 = sld [smem:[#allocation5 + $0x8]] }
 0x115   : > { %s3245_s2 = smov [#allocation2 + $0x7]   ;;  %s3246_s18 = smov [#allocation2 + $0x8]  }
 0x116   : > { %2401 = dma.hbm_to_vmem [thread:$0]  (%p4147_p6), %s381_s26, 16, %s392_s23, [#allocation3 + $0x6] }
 0x117   : > { %s407_s29 = sshll.u32 %s3245_s2, 4  ;;  %s423_s10 = sshll.u32 %s3246_s18, 4  ;;  %s3624_s29 = int_to_ptr.vmem [resolvable:$true] %s407_s29  ;;  %s3626_s10 = int_to_ptr.vmem [resolvable:$true] %s423_s10 }
 0x118   : > { %s3628_s19 = sld [smem:[#allocation5 + $0x9]]  ;;  %s2052_s15 = sshll.u32 %s3608_s20, 4 }
 0x119   : > { %s397_s3 = scalar_lea.hbm %s4108_s1, %s2052_s15  ;;  %s3247_s4 = smov [#allocation2 + $0x9]  }
 0x11a   : > { %s439_s26 = sshll.u32 %s3247_s4, 4  ;;  %s2845_s23 = scalar_lea.hbm %s397_s3, 16  ;;  %s3651_s26 = int_to_ptr.vmem [resolvable:$true] %s439_s26 }
 0x11b   : > { %p2846_p12 = scmp.ne.s32.totalorder %s397_s3, %s2845_s23  ;;  %p4148_p1 = pmov %p4146_p0 }
 0x11c   : > { %p2850_p13 = scmp.lt.u32.totalorder %s397_s3, %s4108_s1  ;;  %p2851_p10 = scmp.lt.u32.totalorder %s3487_s22, %s2845_s23 }
 0x11d   : > { %p2847_p3 = pnand %p2846_p12, %p4148_p1  ;;  %p2853_p9 = scmp.lt.u32.totalorder %s2845_s23, %s397_s3 }
 0x11e   : > { %p2852_p0 = por %p2851_p10, %p2850_p13 }
 0x11f   : > { %p2848_p7 = pneg %p2847_p3 }
 0x120   : > { %p2854_p11 = por %p2853_p9, %p2852_p0 }
 0x122   : > { %p2855_p2 = pnand %p2854_p11, %p2848_p7 }
 0x124   : > { %2858 = shalt.err (!%p2855_p2)  }
 0x125   : > { %s2859_s20 = scalar_lea.vmem %s3624_s29, 16  ;;  %p4149_p8 = pmov %p4148_p1 }
 0x126   : > { %p2860_p5 = scmp.ne.s32.totalorder %s3624_s29, %s2859_s20  ;;  %p2866_p12 = scmp.lt.s32.totalorder %s3624_s29, %s3468_s30 }
 0x127   : > { %p2867_p1 = scmp.lt.s32.totalorder %s3498_s24, %s2859_s20 }
 0x128   : > { %p2861_p4 = pnand %p2860_p5, %p4149_p8 }
 0x129   : > { %p2868_p3 = por %p2867_p1, %p2866_p12 }
 0x12a   : > { %p2862_p6 = pneg %p2861_p4 }
 0x12c   : > { %p2869_p10 = pnand %p2868_p3, %p2862_p6 }
 0x12e   : > { %2872 = shalt.err (!%p2869_p10)  }
 0x12f   : > { %p4150_p13 = pmov %p4149_p8  ;;  %s2054_s2 = sshll.u32 %s3622_s16, 4 }
 0x130   : > { %s413_s12 = scalar_lea.hbm %s4108_s1, %s2054_s2  ;;  %s3656_s17 = sld [smem:[#allocation5 + $0xa]] }
 0x131   : > { %2402 = dma.hbm_to_vmem [thread:$0]  (%p4150_p13), %s397_s3, 16, %s3624_s29, [#allocation3 + $0x7] }
 0x132   : > { %s2873_s4 = scalar_lea.hbm %s413_s12, 16  ;;  %p4151_p0 = pmov %p4149_p8 }
 0x133   : > { %p2874_p7 = scmp.ne.s32.totalorder %s413_s12, %s2873_s4  ;;  %p2878_p2 = scmp.lt.u32.totalorder %s413_s12, %s4108_s1 }
 0x134   : > { %p2879_p5 = scmp.lt.u32.totalorder %s3487_s22, %s2873_s4  ;;  %p2881_p4 = scmp.lt.u32.totalorder %s2873_s4, %s413_s12 }
 0x135   : > { %p2875_p9 = pnand %p2874_p7, %p4151_p0 }
 0x136   : > { %p2880_p8 = por %p2879_p5, %p2878_p2 }
 0x137   : > { %p2876_p11 = pneg %p2875_p9 }
 0x138   : > { %p2882_p6 = por %p2881_p4, %p2880_p8 }
 0x13a   : > { %p2883_p12 = pnand %p2882_p6, %p2876_p11 }
 0x13c   : > { %2886 = shalt.err (!%p2883_p12)  }
 0x13d   : > { %s2887_s16 = scalar_lea.vmem %s3626_s10, 16  ;;  %p4152_p3 = pmov %p4151_p0 }
 0x13e   : > { %p2888_p1 = scmp.ne.s32.totalorder %s3626_s10, %s2887_s16  ;;  %p2894_p7 = scmp.lt.s32.totalorder %s3626_s10, %s3468_s30 }
 0x13f   : > { %p2895_p0 = scmp.lt.s32.totalorder %s3498_s24, %s2887_s16 }
 0x140   : > { %p2889_p10 = pnand %p2888_p1, %p4152_p3 }
 0x141   : > { %p2896_p9 = por %p2895_p0, %p2894_p7 }
 0x142   : > { %p2890_p13 = pneg %p2889_p10 }
 0x144   : > { %p2897_p2 = pnand %p2896_p9, %p2890_p13 }
 0x146   : > { %2900 = shalt.err (!%p2897_p2)  }
 0x147   : > { %p4153_p5 = pmov %p4152_p3  ;;  %s2056_s29 = sshll.u32 %s3628_s19, 4 }
 0x148   : > { %s429_s20 = scalar_lea.hbm %s4108_s1, %s2056_s29  ;;  %s3248_s2 = smov [#allocation2 + $0xa]  }
 0x149   : > { %2403 = dma.hbm_to_vmem [thread:$0]  (%p4153_p5), %s413_s12, 16, %s3626_s10, [#allocation3 + $0x8] }
 0x14a   : > { %s455_s18 = sshll.u32 %s3248_s2, 4  ;;  %s2901_s15 = scalar_lea.hbm %s429_s20, 16  ;;  %s456_s18 = int_to_ptr.vmem [resolvable:$true] %s455_s18 }
 0x14b   : > { %p2902_p11 = scmp.ne.s32.totalorder %s429_s20, %s2901_s15  ;;  %p4154_p8 = pmov %p4152_p3 }
 0x14c   : > { %p2906_p12 = scmp.lt.u32.totalorder %s429_s20, %s4108_s1  ;;  %p2907_p1 = scmp.lt.u32.totalorder %s3487_s22, %s2901_s15 }
 0x14d   : > { %p2903_p4 = pnand %p2902_p11, %p4154_p8  ;;  %p2909_p10 = scmp.lt.u32.totalorder %s2901_s15, %s429_s20 }
 0x14e   : > { %p2908_p3 = por %p2907_p1, %p2906_p12 }
 0x14f   : > { %p2904_p6 = pneg %p2903_p4 }
 0x150   : > { %p2910_p13 = por %p2909_p10, %p2908_p3 }
 0x152   : > { %p2911_p7 = pnand %p2910_p13, %p2904_p6 }
 0x154   : > { %2914 = shalt.err (!%p2911_p7)  }
 0x155   : > { %s2915_s10 = scalar_lea.vmem %s3651_s26, 16  ;;  %p4155_p9 = pmov %p4153_p5 }
 0x156   : > { %p2916_p0 = scmp.ne.s32.totalorder %s3651_s26, %s2915_s10  ;;  %p2922_p11 = scmp.lt.s32.totalorder %s3651_s26, %s3468_s30 }
 0x157   : > { %p2923_p8 = scmp.lt.s32.totalorder %s3498_s24, %s2915_s10 }
 0x158   : > { %p2917_p2 = pnand %p2916_p0, %p4155_p9 }
 0x159   : > { %p2924_p4 = por %p2923_p8, %p2922_p11 }
 0x15a   : > { %p2918_p5 = pneg %p2917_p2 }
 0x15c   : > { %p2925_p1 = pnand %p2924_p4, %p2918_p5 }
 0x15e   : > { %2928 = shalt.err (!%p2925_p1)  }
 0x15f   : > { %p4156_p12 = pmov %p4155_p9  ;;  %s3694_s19 = sld [smem:[#allocation5 + $0xb]] }
 0x160   : > { %s2058_s12 = sshll.u32 %s3656_s17, 4  ;;  %s3249_s3 = smov [#allocation2 + $0xb]  }
 0x161   : > { %2404 = dma.hbm_to_vmem [thread:$0]  (%p4156_p12), %s429_s20, 16, %s3651_s26, [#allocation3 + $0x9] }
 0x162   : > { %s445_s29 = scalar_lea.hbm %s4108_s1, %s2058_s12  ;;  %s471_s7 = sshll.u32 %s3249_s3, 4  ;;  %s472_s7 = int_to_ptr.vmem [resolvable:$true] %s471_s7 }
 0x163   : > { %s2929_s2 = scalar_lea.hbm %s445_s29, 16  ;;  %p4157_p3 = pmov %p4155_p9 }
 0x164   : > { %p2930_p6 = scmp.ne.s32.totalorder %s445_s29, %s2929_s2  ;;  %p2934_p7 = scmp.lt.u32.totalorder %s445_s29, %s4108_s1 }
 0x165   : > { %p2935_p0 = scmp.lt.u32.totalorder %s3487_s22, %s2929_s2  ;;  %p2937_p2 = scmp.lt.u32.totalorder %s2929_s2, %s445_s29 }
 0x166   : > { %p2931_p10 = pnand %p2930_p6, %p4157_p3 }
 0x167   : > { %p2936_p9 = por %p2935_p0, %p2934_p7 }
 0x168   : > { %p2932_p13 = pneg %p2931_p10 }
 0x169   : > { %p2938_p5 = por %p2937_p2, %p2936_p9 }
 0x16b   : > { %p2939_p11 = pnand %p2938_p5, %p2932_p13 }
 0x16d   : > { %2942 = shalt.err (!%p2939_p11)  }
 0x16e   : > { %s2943_s26 = scalar_lea.vmem %s456_s18, 16  ;;  %p4158_p4 = pmov %p4157_p3 }
 0x16f   : > { %p2944_p8 = scmp.ne.s32.totalorder %s456_s18, %s2943_s26  ;;  %p2950_p6 = scmp.lt.s32.totalorder %s456_s18, %s3468_s30 }
 0x170   : > { %p2951_p3 = scmp.lt.s32.totalorder %s3498_s24, %s2943_s26 }
 0x171   : > { %p2945_p1 = pnand %p2944_p8, %p4158_p4 }
 0x172   : > { %p2952_p10 = por %p2951_p3, %p2950_p6 }
 0x173   : > { %p2946_p12 = pneg %p2945_p1 }
 0x175   : > { %p2953_p0 = pnand %p2952_p10, %p2946_p12 }
 0x177   : > { %2956 = shalt.err (!%p2953_p0)  }
 0x178   : > { %p4159_p7 = pmov %p4158_p4  ;;  %s3712_s17 = sld [smem:[#allocation5 + $0xc]] }
 0x179   : > { %s3714_s20 = sld [smem:[#allocation5 + $0xd]]  ;;  %s2060_s23 = sshll.u32 %s3694_s19, 4 }
 0x17a   : > { %2405 = dma.hbm_to_vmem [thread:$0]  (%p4159_p7), %s445_s29, 16, %s456_s18, [#allocation3 + $0xa] }
 0x17b   : > { %s3250_s10 = smov [#allocation2 + $0xc]   ;;  %s461_s3 = scalar_lea.hbm %s4108_s1, %s2060_s23 }
 0x17c   : > { %s487_s12 = sshll.u32 %s3250_s10, 4  ;;  %s2957_s2 = scalar_lea.hbm %s461_s3, 16  ;;  %s3720_s12 = int_to_ptr.vmem [resolvable:$true] %s487_s12 }
 0x17d   : > { %p2958_p13 = scmp.ne.s32.totalorder %s461_s3, %s2957_s2  ;;  %p4160_p9 = pmov %p4158_p4 }
 0x17e   : > { %p2962_p11 = scmp.lt.u32.totalorder %s461_s3, %s4108_s1  ;;  %p2963_p8 = scmp.lt.u32.totalorder %s3487_s22, %s2957_s2 }
 0x17f   : > { %p2959_p2 = pnand %p2958_p13, %p4160_p9  ;;  %p2965_p1 = scmp.lt.u32.totalorder %s2957_s2, %s461_s3 }
 0x180   : > { %p2964_p4 = por %p2963_p8, %p2962_p11 }
 0x181   : > { %p2960_p5 = pneg %p2959_p2 }
 0x182   : > { %p2966_p12 = por %p2965_p1, %p2964_p4 }
 0x184   : > { %p2967_p6 = pnand %p2966_p12, %p2960_p5 }
 0x186   : > { %2970 = shalt.err (!%p2967_p6)  }
 0x187   : > { %s2971_s19 = scalar_lea.vmem %s472_s7, 16  ;;  %p4161_p10 = pmov %p4159_p7 }
 0x188   : > { %p2972_p3 = scmp.ne.s32.totalorder %s472_s7, %s2971_s19  ;;  %p2978_p13 = scmp.lt.s32.totalorder %s472_s7, %s3468_s30 }
 0x189   : > { %p2979_p9 = scmp.lt.s32.totalorder %s3498_s24, %s2971_s19 }
 0x18a   : > { %p2973_p0 = pnand %p2972_p3, %p4161_p10 }
 0x18b   : > { %p2980_p2 = por %p2979_p9, %p2978_p13 }
 0x18c   : > { %p2974_p7 = pneg %p2973_p0 }
 0x18e   : > { %p2981_p8 = pnand %p2980_p2, %p2974_p7 }
 0x190   : > { %2984 = shalt.err (!%p2981_p8)  }
 0x191   : > { %p4162_p11 = pmov %p4161_p10  ;;  %s3734_s15 = sld [smem:[#allocation5 + $0xe]] }
 0x192   : > { %s2062_s4 = sshll.u32 %s3712_s17, 4  ;;  %s3251_s26 = smov [#allocation2 + $0xd]  }
 0x193   : > { %2406 = dma.hbm_to_vmem [thread:$0]  (%p4162_p11), %s461_s3, 16, %s472_s7, [#allocation3 + $0xb] }
 0x194   : > { %s503_s23 = sshll.u32 %s3251_s26, 4  ;;  %s477_s16 = scalar_lea.hbm %s4108_s1, %s2062_s4  ;;  %s504_s23 = int_to_ptr.vmem [resolvable:$true] %s503_s23 }
 0x195   : > { %s2064_s2 = sshll.u32 %s3714_s20, 4  ;;  %s2985_s18 = scalar_lea.hbm %s477_s16, 16 }
 0x196   : > { %p2986_p5 = scmp.ne.s32.totalorder %s477_s16, %s2985_s18  ;;  %p4163_p4 = pmov %p4161_p10 }
 0x197   : > { %p2990_p6 = scmp.lt.u32.totalorder %s477_s16, %s4108_s1  ;;  %p2991_p3 = scmp.lt.u32.totalorder %s3487_s22, %s2985_s18 }
 0x198   : > { %p2987_p1 = pnand %p2986_p5, %p4163_p4  ;;  %p2993_p0 = scmp.lt.u32.totalorder %s2985_s18, %s477_s16 }
 0x199   : > { %p2992_p10 = por %p2991_p3, %p2990_p6 }
 0x19a   : > { %p2988_p12 = pneg %p2987_p1 }
 0x19b   : > { %p2994_p7 = por %p2993_p0, %p2992_p10 }
 0x19d   : > { %p2995_p13 = pnand %p2994_p7, %p2988_p12 }
 0x19f   : > { %2998 = shalt.err (!%p2995_p13)  }
 0x1a0   : > { %s2999_s7 = scalar_lea.vmem %s3720_s12, 16  ;;  %p4164_p2 = pmov %p4163_p4 }
 0x1a1   : > { %p3000_p9 = scmp.ne.s32.totalorder %s3720_s12, %s2999_s7  ;;  %p3006_p5 = scmp.lt.s32.totalorder %s3720_s12, %s3468_s30 }
 0x1a2   : > { %p3007_p4 = scmp.lt.s32.totalorder %s3498_s24, %s2999_s7 }
 0x1a3   : > { %p3001_p8 = pnand %p3000_p9, %p4164_p2 }
 0x1a4   : > { %p3008_p1 = por %p3007_p4, %p3006_p5 }
 0x1a5   : > { %p3002_p11 = pneg %p3001_p8 }
 0x1a7   : > { %p3009_p3 = pnand %p3008_p1, %p3002_p11 }
 0x1a9   : > { %3012 = shalt.err (!%p3009_p3)  }
 0x1aa   : > { %p4165_p6 = pmov %p4164_p2  ;;  %s493_s3 = scalar_lea.hbm %s4108_s1, %s2064_s2 }
 0x1ab   : > { %s3013_s4 = scalar_lea.hbm %s493_s3, 16  ;;  %p4166_p10 = pmov %p4164_p2 }
 0x1ac   : > { %2407 = dma.hbm_to_vmem [thread:$0]  (%p4165_p6), %s477_s16, 16, %s3720_s12, [#allocation3 + $0xc] }
 0x1ad   : > { %p3014_p12 = scmp.ne.s32.totalorder %s493_s3, %s3013_s4  ;;  %p3018_p13 = scmp.lt.u32.totalorder %s493_s3, %s4108_s1 }
 0x1ae   : > { %p3019_p9 = scmp.lt.u32.totalorder %s3487_s22, %s3013_s4  ;;  %p3021_p8 = scmp.lt.u32.totalorder %s3013_s4, %s493_s3 }
 0x1af   : > { %p3015_p0 = pnand %p3014_p12, %p4166_p10 }
 0x1b0   : > { %p3020_p2 = por %p3019_p9, %p3018_p13 }
 0x1b1   : > { %p3016_p7 = pneg %p3015_p0 }
 0x1b2   : > { %p3022_p11 = por %p3021_p8, %p3020_p2 }
 0x1b4   : > { %p3023_p5 = pnand %p3022_p11, %p3016_p7 }
 0x1b6   : > { %3026 = shalt.err (!%p3023_p5)  }
 0x1b7   : > { %s3027_s12 = scalar_lea.vmem %s504_s23, 16  ;;  %p4167_p1 = pmov %p4165_p6 }
 0x1b8   : > { %p3028_p4 = scmp.ne.s32.totalorder %s504_s23, %s3027_s12  ;;  %p3034_p12 = scmp.lt.s32.totalorder %s504_s23, %s3468_s30 }
 0x1b9   : > { %p3035_p10 = scmp.lt.s32.totalorder %s3498_s24, %s3027_s12 }
 0x1ba   : > { %p3029_p3 = pnand %p3028_p4, %p4167_p1 }
 0x1bb   : > { %p3036_p0 = por %p3035_p10, %p3034_p12 }
 0x1bc   : > { %p3030_p6 = pneg %p3029_p3 }
 0x1be   : > { %p3037_p9 = pnand %p3036_p0, %p3030_p6 }
 0x1c0   : > { %3040 = shalt.err (!%p3037_p9)  }
 0x1c1   : > { %p4168_p13 = pmov %p4167_p1  ;;  %s2066_s27 = sshll.u32 %s3734_s15, 4 }
 0x1c2   : > { %s509_s18 = scalar_lea.hbm %s4108_s1, %s2066_s27  ;;  %s3252_s29 = smov [#allocation2 + $0xe]  }
 0x1c3   : > { %2408 = dma.hbm_to_vmem [thread:$0]  (%p4168_p13), %s493_s3, 16, %s504_s23, [#allocation3 + $0xd] }
 0x1c4   : > { %s519_s19 = sshll.u32 %s3252_s29, 4  ;;  %s2067_s7 = sld [smem:[#allocation5 + $0xf]]  ;;  %s520_s19 = int_to_ptr.vmem [resolvable:$true] %s519_s19 }
 0x1c5   : > { %s3041_s17 = scalar_lea.hbm %s509_s18, 16  ;;  %p4169_p2 = pmov %p4167_p1 }
 0x1c6   : > { %p3042_p7 = scmp.ne.s32.totalorder %s509_s18, %s3041_s17  ;;  %p3046_p5 = scmp.lt.u32.totalorder %s509_s18, %s4108_s1 }
 0x1c7   : > { %p3047_p4 = scmp.lt.u32.totalorder %s3487_s22, %s3041_s17  ;;  %p3049_p3 = scmp.lt.u32.totalorder %s3041_s17, %s509_s18 }
 0x1c8   : > { %p3043_p8 = pnand %p3042_p7, %p4169_p2 }
 0x1c9   : > { %p3048_p1 = por %p3047_p4, %p3046_p5 }
 0x1ca   : > { %p3044_p11 = pneg %p3043_p8 }
 0x1cb   : > { %p3050_p6 = por %p3049_p3, %p3048_p1 }
 0x1cd   : > { %p3051_p12 = pnand %p3050_p6, %p3044_p11 }
 0x1cf   : > { %3054 = shalt.err (!%p3051_p12)  }
 0x1d0   : > { %s3055_s15 = scalar_lea.vmem %s520_s19, 16  ;;  %p4170_p0 = pmov %p4169_p2 }
 0x1d1   : > { %p3056_p10 = scmp.ne.s32.totalorder %s520_s19, %s3055_s15  ;;  %p3062_p7 = scmp.lt.s32.totalorder %s520_s19, %s3468_s30 }
 0x1d2   : > { %p3063_p2 = scmp.lt.s32.totalorder %s3498_s24, %s3055_s15 }
 0x1d3   : > { %p3057_p9 = pnand %p3056_p10, %p4170_p0 }
 0x1d4   : > { %p3064_p8 = por %p3063_p2, %p3062_p7 }
 0x1d5   : > { %p3058_p13 = pneg %p3057_p9 }
 0x1d7   : > { %p3065_p4 = pnand %p3064_p8, %p3058_p13 }
 0x1d9   : > { %3068 = shalt.err (!%p3065_p4)  }
 0x1da   : > { %p4171_p5 = pmov %p4170_p0  ;;  %s3253_s23 = smov [#allocation2 + $0xf]  }
 0x1db   : > { %s535_s3 = sshll.u32 %s3253_s23, 4  ;;  %s2068_s26 = sshll.u32 %s2067_s7, 4  ;;  %s536_s3 = int_to_ptr.vmem [resolvable:$true] %s535_s3 }
 0x1dc   : > { %2409 = dma.hbm_to_vmem [thread:$0]  (%p4171_p5), %s509_s18, 16, %s520_s19, [#allocation3 + $0xe] }
 0x1dd   : > { %s525_s27 = scalar_lea.hbm %s4108_s1, %s2068_s26  ;;  %p4172_p1 = pmov %p4170_p0 }
 0x1de   : > { %s3069_s16 = scalar_lea.hbm %s525_s27, 16  ;;  %p3074_p12 = scmp.lt.u32.totalorder %s525_s27, %s4108_s1 }
 0x1df   : > { %p3070_p11 = scmp.ne.s32.totalorder %s525_s27, %s3069_s16  ;;  %p3075_p10 = scmp.lt.u32.totalorder %s3487_s22, %s3069_s16 }
 0x1e0   : > { %p3077_p9 = scmp.lt.u32.totalorder %s3069_s16, %s525_s27 }
 0x1e1   : > { %p3071_p3 = pnand %p3070_p11, %p4172_p1  ;;  %p3076_p0 = por %p3075_p10, %p3074_p12 }
 0x1e3   : > { %p3072_p6 = pneg %p3071_p3  ;;  %p3078_p13 = por %p3077_p9, %p3076_p0 }
 0x1e5   : > { %p3079_p7 = pnand %p3078_p13, %p3072_p6 }
 0x1e7   : > { %3082 = shalt.err (!%p3079_p7)  }
 0x1e8   : > { %s3083_s18 = scalar_lea.vmem %s536_s3, 16  ;;  %p4173_p8 = pmov %p4172_p1 }
 0x1e9   : > { %p3084_p2 = scmp.ne.s32.totalorder %s536_s3, %s3083_s18  ;;  %p3090_p11 = scmp.lt.s32.totalorder %s536_s3, %s3468_s30 }
 0x1ea   : > { %p3091_p1 = scmp.lt.s32.totalorder %s3498_s24, %s3083_s18 }
 0x1eb   : > { %p3085_p4 = pnand %p3084_p2, %p4173_p8 }
 0x1ec   : > { %p3092_p3 = por %p3091_p1, %p3090_p11 }
 0x1ed   : > { %p3086_p5 = pneg %p3085_p4 }
 0x1ef   : > { %p3093_p10 = pnand %p3092_p3, %p3086_p5 }
 0x1f1   : > { %3096 = shalt.err (!%p3093_p10)  }
 0x1f2   : > { %p4174_p12 = pmov %p4173_p8  ;;  %p4175_p0 = pmov %p4173_p8 }
 0x1f4   : > { %2410 = dma.hbm_to_vmem [thread:$0]  (%p4174_p12), %s525_s27, 16, %s536_s3, [#allocation3 + $0xf] }
 0x1f5   : > { %3150 = dma.done.wait (%p4175_p0), [#allocation3], 16  ;;  %p4176_p6 = pmov %p4175_p0 }
 0x1f6   : > { %p4177_p9 = pmov %p4175_p0 }
 0x1f7   : > { %3152 = vsyncadd (%p4176_p6), [#allocation3], 4294967280 }
 0x1f8   : > { %3154 = dma.done.wait (%p4177_p9), [#allocation3 + $0x1], 16  ;;  %p4178_p13 = pmov %p4175_p0 }
 0x1f9   : > { %p4179_p7 = pmov %p4175_p0 }
 0x1fa   : > { %3156 = vsyncadd (%p4178_p13), [#allocation3 + $0x1], 4294967280 }
 0x1fb   : > { %3158 = dma.done.wait (%p4179_p7), [#allocation3 + $0x2], 16  ;;  %p4180_p2 = pmov %p4175_p0 }
 0x1fc   : > { %p4181_p8 = pmov %p4175_p0 }
 0x1fd   : > { %3160 = vsyncadd (%p4180_p2), [#allocation3 + $0x2], 4294967280 }
 0x1fe   : > { %3162 = dma.done.wait (%p4181_p8), [#allocation3 + $0x3], 16  ;;  %p4182_p4 = pmov %p4175_p0 }
 0x1ff   : > { %p4183_p5 = pmov %p4175_p0 }
 0x200   : > { %3164 = vsyncadd (%p4182_p4), [#allocation3 + $0x3], 4294967280 }
 0x201   : > { %3166 = dma.done.wait (%p4183_p5), [#allocation3 + $0x4], 16  ;;  %p4184_p11 = pmov %p4175_p0 }
 0x202   : > { %p4185_p1 = pmov %p4175_p0 }
 0x203   : > { %3168 = vsyncadd (%p4184_p11), [#allocation3 + $0x4], 4294967280 }
 0x204   : > { %3170 = dma.done.wait (%p4185_p1), [#allocation3 + $0x5], 16  ;;  %p4186_p3 = pmov %p4175_p0 }
 0x205   : > { %p4187_p10 = pmov %p4175_p0 }
 0x206   : > { %3172 = vsyncadd (%p4186_p3), [#allocation3 + $0x5], 4294967280 }
 0x207   : > { %3174 = dma.done.wait (%p4187_p10), [#allocation3 + $0x6], 16  ;;  %p4188_p12 = pmov %p4175_p0 }
 0x209   : > { %3176 = vsyncadd (%p4188_p12), [#allocation3 + $0x6], 4294967280 }
 0x20a   : > { %3178 = dma.done.wait (%p4175_p0), [#allocation3 + $0x7], 16  ;;  %p4189_p6 = pmov %p4175_p0 }
 0x20b   : > { %p4190_p9 = pmov %p4175_p0 }
 0x20c   : > { %3180 = vsyncadd (%p4189_p6), [#allocation3 + $0x7], 4294967280 }
 0x20d   : > { %3182 = dma.done.wait (%p4190_p9), [#allocation3 + $0x8], 16  ;;  %p4191_p13 = pmov %p4175_p0 }
 0x20e   : > { %p4192_p7 = pmov %p4175_p0 }
 0x20f   : > { %3184 = vsyncadd (%p4191_p13), [#allocation3 + $0x8], 4294967280 }
 0x210   : > { %3186 = dma.done.wait (%p4192_p7), [#allocation3 + $0x9], 16  ;;  %p4193_p2 = pmov %p4175_p0 }
 0x211   : > { %p4194_p8 = pmov %p4175_p0 }
 0x212   : > { %3188 = vsyncadd (%p4193_p2), [#allocation3 + $0x9], 4294967280 }
 0x213   : > { %3190 = dma.done.wait (%p4194_p8), [#allocation3 + $0xa], 16  ;;  %p4195_p4 = pmov %p4175_p0 }
 0x214   : > { %p4196_p5 = pmov %p4175_p0 }
 0x215   : > { %3192 = vsyncadd (%p4195_p4), [#allocation3 + $0xa], 4294967280 }
 0x216   : > { %3194 = dma.done.wait (%p4196_p5), [#allocation3 + $0xb], 16  ;;  %p4197_p11 = pmov %p4175_p0 }
 0x217   : > { %p4198_p1 = pmov %p4175_p0 }
 0x218   : > { %3196 = vsyncadd (%p4197_p11), [#allocation3 + $0xb], 4294967280 }
 0x219   : > { %3198 = dma.done.wait (%p4198_p1), [#allocation3 + $0xc], 16  ;;  %p4199_p3 = pmov %p4175_p0 }
 0x21a   : > { %p4200_p10 = pmov %p4175_p0 }
 0x21b   : > { %3200 = vsyncadd (%p4199_p3), [#allocation3 + $0xc], 4294967280 }
 0x21c   : > { %3202 = dma.done.wait (%p4200_p10), [#allocation3 + $0xd], 16  ;;  %p4201_p12 = pmov %p4175_p0 }
 0x21e   : > { %3204 = vsyncadd (%p4201_p12), [#allocation3 + $0xd], 4294967280 }
 0x21f   : > { %3206 = dma.done.wait (%p4175_p0), [#allocation3 + $0xe], 16  ;;  %p4202_p6 = pmov %p4175_p0 }
 0x220   : > { %p4203_p9 = pmov %p4175_p0 }
 0x221   : > { %3208 = vsyncadd (%p4202_p6), [#allocation3 + $0xe], 4294967280 }
 0x222   : > { %3210 = dma.done.wait (%p4203_p9), [#allocation3 + $0xf], 16  ;;  %p4204_p13 = pmov %p4175_p0 }
 0x223   : > { %v2069_v0 = vld [vmem:[%s3445_s25 + $0x20] sm:$0xff]  ;;  %v2070_v1 = vld [vmem:[%s3445_s25 + $0x28] sm:$0xff]  ;;  %v2071_v2 = vld [vmem:[%s3445_s25 + $0x30] sm:$0xff]  ;;  %vm604_vm0 = vcmask 261120   ;;  %s4205_s24 = scalar_lea.vmem %s4112_s5, %s3459_s21  ;;  %s3254_s19 = smov 64   ;;  %v3255_v23 = vmov 0.0|0.0  }
 0x224   : > { %3212 = vsyncadd (%p4204_p13), [#allocation3 + $0xf], 4294967280  ;;  %v2322_v3 = vpack.c.bf16 %v2070_v1, %v2069_v0  ;;  %v2072_v4 = vld [vmem:[%s3445_s25 + $0x38] sm:$0xff]  ;;  %v574_v5 = vld [vmem:[%s3445_s25] sm:$0xff]  ;;  %vm3256_vm1 = vmmov 0   ;;  %v3257_v28 = vmov 0.0  }
 0x225   : > { %v575_v6 = vld [vmem:[%s3445_s25 + $0x8] sm:$0xff]  ;;  %v2326_v7 = vpack.c.bf16 %v2072_v4, %v2071_v2  ;;  %v572_v9 = vld [vmem:[#allocation2] sm:$0xff]  ;;  %v577_v11 = vld [vmem:[%s3445_s25 + $0x18] sm:$0xff]  ;;  %p2112_p7 = scmp.eq.s32.totalorder %s3326_s0, 1 }
 0x226   : > { %v2314_v8 = vpack.c.bf16 %v575_v6, %v574_v5  ;;  %v576_v10 = vld [vmem:[%s3445_s25 + $0x10] sm:$0xff]  ;;  %2323 = vmatprep.subr.bf16.mxu1 %v2322_v3  ;;  %2212 = vmatprep.mubr.msk.f32.mxu1 %vm604_vm0, %v572_v9  ;;  %v588_v13 = vld [vmem:[%s3451_s13] sm:$0xff]  ;;  %v589_v15 = vld [vmem:[%s3451_s13 + $0x8] sm:$0xff]  ;;  %vm1741_vm2 = vcmask (!%p2112_p7), 1041408   ;;  %vm1743_vm3 = vcmask (!%p2112_p7), 1043456   ;;  %vm1745_vm4 = vcmask (!%p2112_p7), 1045504  }
 0x227   : > { %2325 = vmatpush3.bf16.msra.mxu1 %v2322_v3  ;;  %v2318_v12 = vpack.c.bf16 %v577_v11, %v576_v10  ;;  %v2090_v14 = vld [vmem:[%s4205_s24] ss:$0 sm:$0xff]  ;;  %v2074_v17 = vld [vmem:[%s3445_s25 + $0x48] sm:$0xff]  ;;  %2201 = vmatprep.mubr.msk.f32.mxu0 %vm604_vm0, %v572_v9  ;;  %v573_v19 = vld [vmem:[#allocation2 + $0x8] sm:$0xff]  ;;  %v3887_v20 = vpack.c.bf16 %v589_v15, %v588_v13 }
 0x228   : > { %2315 = vmatprep.subr.bf16.mxu0 %v2314_v8  ;;  %2327 = vmatprep.subr.bf16.mxu1 %v2326_v7  ;;  %v2073_v16 = vld [vmem:[%s3445_s25 + $0x40] sm:$0xff]  ;;  %v2075_v21 = vld [vmem:[%s3445_s25 + $0x50] sm:$0xff]  ;;  %v2076_v22 = vld [vmem:[%s3445_s25 + $0x58] sm:$0xff]  ;;  %s3258_s25 = smov 96  }
 0x229   : > { %2317 = vmatpush3.bf16.msra.mxu0 %v2314_v8  ;;  %v2330_v18 = vpack.c.bf16 %v2074_v17, %v2073_v16  ;;  %944 = vrot.lane.b32.xlu0 %v2090_v14, %s3254_s19  ;;  %v590_v24 = vld [vmem:[%s3451_s13 + $0x10] sm:$0xff]  ;;  %v591_v25 = vld [vmem:[%s3451_s13 + $0x18] sm:$0xff]  ;;  %v2334_v26 = vpack.c.bf16 %v2076_v22, %v2075_v21  ;;  %v2082_v29 = vld [vmem:[%s3473_s28 + $0x1] ss:$0 sm:$0xff] }
 0x22a   : > { %2319 = vmatprep.subr.bf16.mxu0 %v2318_v12  ;;  %v3897_v27 = vpack.c.bf16 %v591_v25, %v590_v24  ;;  %v2079_v34 = vld [vmem:[%s3473_s28] ss:$0 sm:$0xff]  ;;  %v2085_v42 = vld [vmem:[%s3473_s28 + $0x2] ss:$0 sm:$0xff] }
 0x22b   : > { %2329 = vmatpush3.bf16.msra.mxu1 %v2326_v7 }
 0x22c   : > { %2338 = vmatprep.subr.bf16.mxu1 %v3255_v23 }
 0x22d   : > { %2321 = vmatpush3.bf16.msra.mxu0 %v2318_v12 }
 0x22e   : > { %2331 = vmatprep.subr.bf16.mxu0 %v2330_v18  ;;  %2213 = vmatmul.mubr.msk.f32.vlgmr.msra.gmra.mrb[0].mxu1 %vm604_vm0, %v573_v19 }
 0x22f   : > { %2340 = vmatpush3.bf16.msra.mxu1 %v3887_v20  ;;  %2234 = vmatprep.mubr.msk.f32.mxu1 %vm3256_vm1, %v3257_v28 }
 0x230   : > { %2202 = vmatmul.mubr.msk.f32.vlgmr.msra.gmra.mrb[0].mxu0 %vm604_vm0, %v573_v19  ;;  %2341 = vmatprep.subr.bf16.mxu1 %v3255_v23 }
 0x231   : > { %2333 = vmatpush3.bf16.msra.mxu0 %v2330_v18  ;;  %2223 = vmatprep.mubr.msk.f32.mxu0 %vm604_vm0, %v572_v9 }
 0x232   : > { %2335 = vmatprep.subr.bf16.mxu0 %v2334_v26 }
 0x233   : > { %2343 = vmatpush3.bf16.msra.mxu1 %v3897_v27 }
 0x234   : > { %2350 = vmatprep.subr.bf16.mxu1 %v3255_v23 }
 0x235   : > { %2337 = vmatpush3.bf16.msra.mxu0 %v2334_v26 }
 0x236   : > { %2235 = vmatmul.mubr.f32.vlgmr.msra.gmra.mrb[2].mxu1 %v3257_v28  ;;  %2344 = vmatprep.subr.bf16.mxu0 %v3255_v23 }
 0x237   : > { %2352 = vmatpush3.bf16.msra.mxu1 %v3887_v20  ;;  %2256 = vmatprep.mubr.msk.f32.mxu1 %vm3256_vm1, %v3257_v28 }
 0x238   : > { %2224 = vmatmul.mubr.msk.f32.vlgmr.msra.gmra.mrb[2].mxu0 %vm604_vm0, %v573_v19  ;;  %2353 = vmatprep.subr.bf16.mxu1 %v3255_v23 }
 0x239   : > { %2346 = vmatpush3.bf16.msra.mxu0 %v3887_v20  ;;  %2245 = vmatprep.mubr.msk.f32.mxu0 %vm3256_vm1, %v3257_v28 }
 0x23a   : > { %2347 = vmatprep.subr.bf16.mxu0 %v3255_v23 }
 0x23b   : > { %2355 = vmatpush3.bf16.msra.mxu1 %v3897_v27 }
 0x23c   : > { %2362 = vmatprep.subr.bf16.mxu1 %v3255_v23 }
 0x23d   : > { %2349 = vmatpush3.bf16.msra.mxu0 %v3897_v27 }
 0x23e   : > { %2356 = vmatprep.subr.bf16.mxu0 %v3255_v23 }
 0x29b   : > { %v3926_v37 = vpop.permute.xlu0 %944 }
 0x301   : > { %v2214_v30 = vpop.f32.mrb[0].mxu1 }
 0x302   : > { %v3921_v31 = vadd.f32 %v2214_v30, %v2082_v29  ;;  %v758_v32 = vpop.f32.mrb[1].mxu1 }
 0x303   : > { %v2203_v33 = vpop.f32.mrb[0].mxu0  ;;  %v3937_v50 = vadd.f32 %v2082_v29, %v758_v32 }
 0x304   : > { %v3924_v35 = vadd.f32 %v2203_v33, %v2079_v34  ;;  %v677_v36 = vpop.f32.mrb[1].mxu0 }
 0x305   : > { %v3934_v45 = vadd.f32 %v2079_v34, %v677_v36 }
 0x309   : > { %v917_v38 = vpop.f32.mrb[2].mxu1 }
 0x30a   : > { %929 = vrot.lane.b32.xlu0 %v917_v38, %s3258_s25  ;;  %v2236_v39 = vpop.f32.mrb[3].mxu1  ;;  %v947_v40 = vadd.f32 %v3926_v37, %v917_v38  ;;  %v921_v46 = vadd.f32 %v917_v38, %v3934_v45 }
 0x30b   : > { %v2225_v41 = vpop.f32.mrb[2].mxu0 }
 0x30c   : > { %949 = vrot.lane.b32.xlu1 %v947_v40, %s3254_s19  ;;  %v3932_v43 = vadd.f32 %v2225_v41, %v2085_v42  ;;  %v839_v44 = vpop.f32.mrb[3].mxu0  ;;  %v2088_v47 = vmul.f32 -1.442695, %v921_v46 }
 0x30d   : > { %v3940_v57 = vadd.f32 %v2085_v42, %v839_v44 }
 0x30e   : > { %2499 = vpow2.f32 %v2088_v47 }
 0x318   : > { %v2500_v48 = vpop.eup %2499 }
 0x319   : > { %v925_v49 = vadd.f32 1.0, %v2500_v48 }
 0x31b   : > { %2501 = vrcp.f32 %v925_v49 }
 0x325   : > { %v2502_v55 = vpop.eup %2501 }
 0x37c   : > { %v930_v51 = vpop.permute.xlu0 %929 }
 0x37d   : > { %v932_v52 = vadd.f32 %v930_v51, %v3937_v50 }
 0x37e   : > { %v950_v54 = vpop.permute.xlu1 %949 }
 0x37f   : > { %v2089_v53 = vmul.f32 -1.442695, %v932_v52  ;;  %v952_v56 = vmul.f32 %v2502_v55, %v950_v54 }
 0x381   : > { %2503 = vpow2.f32 %v2089_v53  ;;  %v953_v58 = vadd.f32 %v952_v56, %v3940_v57 }
 0x383   : > { %2505 = vtanh.f32 %v953_v58 }
 0x38b   : > { %v2504_v59 = vpop.eup %2503 }
 0x38c   : > { %v936_v60 = vadd.f32 1.0, %v2504_v59 }
 0x38d   : > { %v2506_v61 = vpop.eup %2505 }
 0x38e   : > { %2507 = vrcp.f32 %v936_v60  ;;  %v955_v62 = vsub.f32 0.0, %v2506_v61 }
 0x398   : > { %v2508_v63 = vpop.eup %2507 }
 0x399   : > { %v956_v0 = vmul.f32 %v2508_v63, %v955_v62 }
 0x39b   : > { %v3943_v1 = vadd.f32 %v2506_v61, %v956_v0 }
 0x39d   : > { %2246 = vmatmul.mubr.msk.f32.vlgmr.msra.gmra.mrb[4].mxu0 %vm604_vm0, %v3943_v1 }
 0x39e   : > { %2358 = vmatpush3.bf16.msra.mxu0 %v3887_v20  ;;  %2267 = vmatprep.mubr.msk.f32.mxu0 %vm3256_vm1, %v3257_v28 }
 0x39f   : > { %2359 = vmatprep.subr.bf16.mxu0 %v3255_v23 }
 0x3a2   : > { %2361 = vmatpush3.bf16.msra.mxu0 %v3897_v27 }
 0x3a3   : > { %2368 = vmatprep.subr.bf16.mxu0 %v3255_v23 }
 0x470   : > { %v1027_v2 = vpop.f32.mrb[4].mxu0 }
 0x471   : > { %v1032_v3 = vrot.slane %v1027_v2, 6  ;;  %v1051_v4 = vadd.f32 %v1027_v2, %v3926_v37  ;;  %v2247_v5 = vpop.f32.mrb[5].mxu0 }
 0x473   : > { %v1053_v6 = vrot.slane %v1051_v4, 6  ;;  %1041 = vrot.lane.b32.xlu1 %v1032_v3, %s3258_s25  ;;  %v1034_v7 = vadd.f32 %v1032_v3, %v3934_v45 }
 0x475   : > { %1054 = vrot.lane.b32.xlu0 %v1053_v6, %s3254_s19  ;;  %v2092_v8 = vmul.f32 -1.442695, %v1034_v7 }
 0x477   : > { %2509 = vpow2.f32 %v2092_v8 }
 0x481   : > { %v2510_v9 = vpop.eup %2509 }
 0x482   : > { %v1038_v10 = vadd.f32 1.0, %v2510_v9 }
 0x484   : > { %2511 = vrcp.f32 %v1038_v10 }
 0x48e   : > { %v2512_v13 = vpop.eup %2511 }
 0x4e5   : > { %v1042_v11 = vpop.permute.xlu1 %1041 }
 0x4e6   : > { %v1044_v12 = vadd.f32 %v1042_v11, %v3937_v50 }
 0x4e7   : > { %v1055_v14 = vpop.permute.xlu0 %1054 }
 0x4e8   : > { %v2093_v15 = vmul.f32 -1.442695, %v1044_v12  ;;  %v1057_v16 = vmul.f32 %v2512_v13, %v1055_v14 }
 0x4ea   : > { %2513 = vpow2.f32 %v2093_v15  ;;  %v1058_v17 = vadd.f32 %v1057_v16, %v3940_v57 }
 0x4ec   : > { %2515 = vtanh.f32 %v1058_v17 }
 0x4f4   : > { %v2514_v18 = vpop.eup %2513 }
 0x4f5   : > { %v1048_v19 = vadd.f32 1.0, %v2514_v18 }
 0x4f6   : > { %v2516_v21 = vpop.eup %2515 }
 0x4f7   : > { %2517 = vrcp.f32 %v1048_v19  ;;  %v1061_v22 = vrot.slane %v2516_v21, 2 }
 0x4f9   : > { %v1063_v24 = vsub.f32 %v3943_v1, %v1061_v22 }
 0x4fb   : > { %v1065_v25 = vrot.slane %v1063_v24, 6 }
 0x501   : > { %v2518_v26 = vpop.eup %2517 }
 0x502   : > { %v1067_v29 = vmul.f32 %v2518_v26, %v1065_v25 }
 0x504   : > { %v3960_v30 = vadd.f32 %v2516_v21, %v1067_v29 }
 0x506   : > { %v1070_v32 = vrot.slane %v3960_v30, 2 }
 0x508   : > { %2257 = vmatmul.mubr.msk.f32.vlgmr.msra.gmra.mrb[4].mxu1 %vm604_vm0, %v1070_v32 }
 0x509   : > { %2364 = vmatpush3.bf16.msra.mxu1 %v3887_v20  ;;  %2278 = vmatprep.mubr.msk.f32.mxu1 %vm3256_vm1, %v3257_v28 }
 0x50a   : > { %2365 = vmatprep.subr.bf16.mxu1 %v3255_v23 }
 0x50d   : > { %2367 = vmatpush3.bf16.msra.mxu1 %v3897_v27 }
 0x50e   : > { %2374 = vmatprep.subr.bf16.mxu1 %v3255_v23 }
 0x5db   : > { %v1139_v33 = vpop.f32.mrb[4].mxu1 }
 0x5dc   : > { %v1144_v34 = vrot.slane %v1139_v33, 4  ;;  %v1163_v36 = vadd.f32 %v1139_v33, %v3926_v37  ;;  %v2258_v38 = vpop.f32.mrb[5].mxu1 }
 0x5de   : > { %v1165_v39 = vrot.slane %v1163_v36, 4  ;;  %1153 = vrot.lane.b32.xlu1 %v1144_v34, %s3258_s25  ;;  %v1146_v40 = vadd.f32 %v1144_v34, %v3934_v45 }
 0x5e0   : > { %1166 = vrot.lane.b32.xlu0 %v1165_v39, %s3254_s19  ;;  %v2095_v41 = vmul.f32 -1.442695, %v1146_v40 }
 0x5e2   : > { %2519 = vpow2.f32 %v2095_v41 }
 0x5ec   : > { %v2520_v42 = vpop.eup %2519 }
 0x5ed   : > { %v1150_v44 = vadd.f32 1.0, %v2520_v42 }
 0x5ef   : > { %2521 = vrcp.f32 %v1150_v44 }
 0x5f9   : > { %v2522_v48 = vpop.eup %2521 }
 0x650   : > { %v1154_v46 = vpop.permute.xlu1 %1153 }
 0x651   : > { %v1156_v47 = vadd.f32 %v1154_v46, %v3937_v50 }
 0x652   : > { %v1167_v49 = vpop.permute.xlu0 %1166 }
 0x653   : > { %v2096_v51 = vmul.f32 -1.442695, %v1156_v47  ;;  %v1169_v52 = vmul.f32 %v2522_v48, %v1167_v49 }
 0x655   : > { %2523 = vpow2.f32 %v2096_v51  ;;  %v1170_v53 = vadd.f32 %v1169_v52, %v3940_v57 }
 0x657   : > { %2525 = vtanh.f32 %v1170_v53 }
 0x65f   : > { %v2524_v54 = vpop.eup %2523 }
 0x660   : > { %v1160_v55 = vadd.f32 1.0, %v2524_v54 }
 0x661   : > { %v2526_v56 = vpop.eup %2525 }
 0x662   : > { %2527 = vrcp.f32 %v1160_v55  ;;  %v1173_v58 = vrot.slane %v2526_v56, 2 }
 0x664   : > { %v1175_v59 = vsub.f32 %v3960_v30, %v1173_v58 }
 0x666   : > { %v1177_v60 = vrot.slane %v1175_v59, 6 }
 0x66c   : > { %v2528_v61 = vpop.eup %2527 }
 0x66d   : > { %v1179_v62 = vmul.f32 %v2528_v61, %v1177_v60 }
 0x66f   : > { %v3979_v63 = vadd.f32 %v2526_v56, %v1179_v62 }
 0x671   : > { %v1182_v0 = vrot.slane %v3979_v63, 4 }
 0x673   : > { %2268 = vmatmul.mubr.msk.f32.vlgmr.msra.gmra.mrb[6].mxu0 %vm604_vm0, %v1182_v0 }
 0x674   : > { %2370 = vmatpush3.bf16.msra.mxu0 %v3887_v20  ;;  %2289 = vmatprep.mubr.msk.f32.mxu0 %vm3256_vm1, %v3257_v28 }
 0x675   : > { %2371 = vmatprep.subr.bf16.mxu0 %v3255_v23 }
 0x678   : > { %2373 = vmatpush3.bf16.msra.mxu0 %v3897_v27 }
 0x679   : > { %2380 = vmatprep.subr.bf16.mxu0 %v3255_v23 }
 0x746   : > { %v1251_v2 = vpop.f32.mrb[6].mxu0 }
 0x747   : > { %v1256_v3 = vrot.slane %v1251_v2, 2  ;;  %v1275_v4 = vadd.f32 %v1251_v2, %v3926_v37  ;;  %v2269_v5 = vpop.f32.mrb[7].mxu0 }
 0x749   : > { %v1277_v6 = vrot.slane %v1275_v4, 2  ;;  %1265 = vrot.lane.b32.xlu1 %v1256_v3, %s3258_s25  ;;  %v1258_v7 = vadd.f32 %v1256_v3, %v3934_v45 }
 0x74b   : > { %1278 = vrot.lane.b32.xlu0 %v1277_v6, %s3254_s19  ;;  %v2098_v8 = vmul.f32 -1.442695, %v1258_v7 }
 0x74d   : > { %2529 = vpow2.f32 %v2098_v8 }
 0x757   : > { %v2530_v9 = vpop.eup %2529 }
 0x758   : > { %v1262_v10 = vadd.f32 1.0, %v2530_v9 }
 0x75a   : > { %2531 = vrcp.f32 %v1262_v10 }
 0x764   : > { %v2532_v13 = vpop.eup %2531 }
 0x7bb   : > { %v1266_v11 = vpop.permute.xlu1 %1265 }
 0x7bc   : > { %v1268_v12 = vadd.f32 %v1266_v11, %v3937_v50 }
 0x7bd   : > { %v1279_v14 = vpop.permute.xlu0 %1278 }
 0x7be   : > { %v2099_v15 = vmul.f32 -1.442695, %v1268_v12  ;;  %v1281_v16 = vmul.f32 %v2532_v13, %v1279_v14 }
 0x7c0   : > { %2533 = vpow2.f32 %v2099_v15  ;;  %v1282_v17 = vadd.f32 %v1281_v16, %v3940_v57 }
 0x7c2   : > { %2535 = vtanh.f32 %v1282_v17 }
 0x7ca   : > { %v2534_v18 = vpop.eup %2533 }
 0x7cb   : > { %v1272_v19 = vadd.f32 1.0, %v2534_v18 }
 0x7cc   : > { %v2536_v21 = vpop.eup %2535 }
 0x7cd   : > { %2537 = vrcp.f32 %v1272_v19  ;;  %v1285_v45 = vrot.slane %v2536_v21, 2 }
 0x7cf   : > { %v1287_v22 = vsub.f32 %v3979_v63, %v1285_v45 }
 0x7d1   : > { %v1289_v24 = vrot.slane %v1287_v22, 6 }
 0x7d7   : > { %v2538_v25 = vpop.eup %2537 }
 0x7d8   : > { %v1291_v26 = vmul.f32 %v2538_v25, %v1289_v24 }
 0x7da   : > { %v3996_v29 = vadd.f32 %v2536_v21, %v1291_v26 }
 0x7dc   : > { %v1294_v50 = vrot.slane %v3996_v29, 6 }
 0x7de   : > { %2279 = vmatmul.mubr.msk.f32.vlgmr.msra.gmra.mrb[6].mxu1 %vm604_vm0, %v1294_v50 }
 0x7df   : > { %2376 = vmatpush3.bf16.msra.mxu1 %v3887_v20  ;;  %2300 = vmatprep.mubr.msk.f32.mxu1 %vm3256_vm1, %v3257_v28 }
 0x7e0   : > { %2377 = vmatprep.subr.bf16.mxu1 %v3255_v23 }
 0x7e3   : > { %2379 = vmatpush3.bf16.msra.mxu1 %v3897_v27 }
 0x8b1   : > { %v1363_v57 = vpop.f32.mrb[6].mxu1 }
 0x8b2   : > { %v1385_v33 = vadd.f32 %v1363_v57, %v3926_v37  ;;  %1375 = vrot.lane.b32.xlu1 %v1363_v57, %s3258_s25  ;;  %v2280_v34 = vpop.f32.mrb[7].mxu1  ;;  %v1367_v36 = vadd.f32 %v1363_v57, %v3924_v35 }
 0x8b4   : > { %1387 = vrot.lane.b32.xlu0 %v1385_v33, %s3254_s19  ;;  %v2101_v38 = vmul.f32 -1.442695, %v1367_v36 }
 0x8b6   : > { %2539 = vpow2.f32 %v2101_v38 }
 0x8c0   : > { %v2540_v39 = vpop.eup %2539 }
 0x8c1   : > { %v1371_v40 = vadd.f32 1.0, %v2540_v39 }
 0x8c3   : > { %2541 = vrcp.f32 %v1371_v40 }
 0x8cd   : > { %v2542_v44 = vpop.eup %2541 }
 0x924   : > { %v1376_v41 = vpop.permute.xlu1 %1375 }
 0x925   : > { %v1378_v42 = vadd.f32 %v1376_v41, %v3921_v31 }
 0x926   : > { %v1388_v46 = vpop.permute.xlu0 %1387 }
 0x927   : > { %v2102_v47 = vmul.f32 -1.442695, %v1378_v42  ;;  %v1390_v48 = vmul.f32 %v2542_v44, %v1388_v46 }
 0x929   : > { %2543 = vpow2.f32 %v2102_v47  ;;  %v1391_v49 = vadd.f32 %v1390_v48, %v3932_v43 }
 0x92b   : > { %2545 = vtanh.f32 %v1391_v49 }
 0x933   : > { %v2544_v51 = vpop.eup %2543 }
 0x934   : > { %v1382_v52 = vadd.f32 1.0, %v2544_v51 }
 0x935   : > { %v2546_v53 = vpop.eup %2545 }
 0x936   : > { %2547 = vrcp.f32 %v1382_v52  ;;  %v1394_v54 = vrot.slane %v2546_v53, 2 }
 0x938   : > { %v1396_v55 = vsub.f32 %v3996_v29, %v1394_v54 }
 0x93a   : > { %v1398_v56 = vrot.slane %v1396_v55, 6 }
 0x940   : > { %v2548_v58 = vpop.eup %2547 }
 0x941   : > { %v1400_v59 = vmul.f32 %v2548_v58, %v1398_v56 }
 0x943   : > { %v4012_v60 = vadd.f32 %v2546_v53, %v1400_v59 }
 0x945   : > { %2290 = vmatmul.mubr.msk.f32.vlgmr.msra.gmra.mrb[8].mxu0 %vm604_vm0, %v4012_v60 }
 0x946   : > { %2382 = vmatpush3.bf16.msra.mxu0 %v3887_v20  ;;  %2311 = vmatprep.mubr.msk.f32.mxu0 %vm3256_vm1, %v3257_v28 }
 0x947   : > { %2383 = vmatprep.subr.bf16.mxu0 %v3255_v23 }
 0x94a   : > { %2385 = vmatpush3.bf16.msra.mxu0 %v3897_v27 }
 0xa18   : > { %v1471_v61 = vpop.f32.mrb[8].mxu0 }
 0xa19   : > { %v1476_v62 = vrot.slane %v1471_v61, 6  ;;  %v1495_v0 = vadd.f32 %v1471_v61, %v3926_v37  ;;  %v2291_v2 = vpop.f32.mrb[9].mxu0 }
 0xa1b   : > { %v1497_v3 = vrot.slane %v1495_v0, 6  ;;  %1485 = vrot.lane.b32.xlu1 %v1476_v62, %s3258_s25  ;;  %v1478_v4 = vadd.f32 %v1476_v62, %v3924_v35 }
 0xa1d   : > { %1498 = vrot.lane.b32.xlu0 %v1497_v3, %s3254_s19  ;;  %v2104_v20 = vmul.f32 -1.442695, %v1478_v4 }
 0xa1f   : > { %2549 = vpow2.f32 %v2104_v20 }
 0xa29   : > { %v2550_v5 = vpop.eup %2549 }
 0xa2a   : > { %v1482_v28 = vadd.f32 1.0, %v2550_v5 }
 0xa2c   : > { %2551 = vrcp.f32 %v1482_v28 }
 0xa36   : > { %v2552_v6 = vpop.eup %2551 }
 0xa8d   : > { %v1486_v23 = vpop.permute.xlu1 %1485 }
 0xa8e   : > { %v1488_v27 = vadd.f32 %v1486_v23, %v3921_v31 }
 0xa8f   : > { %v1499_v7 = vpop.permute.xlu0 %1498 }
 0xa90   : > { %v2105_v8 = vmul.f32 -1.442695, %v1488_v27  ;;  %v1501_v9 = vmul.f32 %v2552_v6, %v1499_v7 }
 0xa92   : > { %2553 = vpow2.f32 %v2105_v8  ;;  %v1502_v10 = vadd.f32 %v1501_v9, %v3932_v43 }
 0xa94   : > { %2555 = vtanh.f32 %v1502_v10 }
 0xa9c   : > { %v2554_v11 = vpop.eup %2553 }
 0xa9d   : > { %v1492_v12 = vadd.f32 1.0, %v2554_v11 }
 0xa9e   : > { %v2556_v13 = vpop.eup %2555 }
 0xa9f   : > { %2557 = vrcp.f32 %v1492_v12  ;;  %v1505_v14 = vrot.slane %v2556_v13, 2 }
 0xaa1   : > { %v1507_v15 = vsub.f32 %v4012_v60, %v1505_v14 }
 0xaa3   : > { %v1509_v16 = vrot.slane %v1507_v15, 6 }
 0xaa9   : > { %v2558_v17 = vpop.eup %2557 }
 0xaaa   : > { %v1511_v18 = vmul.f32 %v2558_v17, %v1509_v16 }
 0xaac   : > { %v4028_v19 = vadd.f32 %v2556_v13, %v1511_v18 }
 0xaae   : > { %v1514_v21 = vrot.slane %v4028_v19, 2 }
 0xab0   : > { %2301 = vmatmul.mubr.msk.f32.vlgmr.msra.gmra.mrb[8].mxu1 %vm604_vm0, %v1514_v21 }
 0xb83   : > { %v1583_v45 = vpop.f32.mrb[8].mxu1 }
 0xb84   : > { %v1588_v22 = vrot.slane %v1583_v45, 4  ;;  %v1607_v24 = vadd.f32 %v1583_v45, %v3926_v37  ;;  %v2302_v25 = vpop.f32.mrb[9].mxu1 }
 0xb86   : > { %v1609_v26 = vrot.slane %v1607_v24, 4  ;;  %1597 = vrot.lane.b32.xlu1 %v1588_v22, %s3258_s25  ;;  %v1590_v50 = vadd.f32 %v1588_v22, %v3924_v35 }
 0xb88   : > { %1610 = vrot.lane.b32.xlu0 %v1609_v26, %s3254_s19  ;;  %v2107_v57 = vmul.f32 -1.442695, %v1590_v50 }
 0xb8a   : > { %2559 = vpow2.f32 %v2107_v57 }
 0xb94   : > { %v2560_v33 = vpop.eup %2559 }
 0xb95   : > { %v1594_v34 = vadd.f32 1.0, %v2560_v33 }
 0xb97   : > { %2561 = vrcp.f32 %v1594_v34 }
 0xba1   : > { %v2562_v39 = vpop.eup %2561 }
 0xbf8   : > { %v1598_v36 = vpop.permute.xlu1 %1597 }
 0xbf9   : > { %v1600_v38 = vadd.f32 %v1598_v36, %v3921_v31 }
 0xbfa   : > { %v1611_v40 = vpop.permute.xlu0 %1610 }
 0xbfb   : > { %v2108_v41 = vmul.f32 -1.442695, %v1600_v38  ;;  %v1613_v42 = vmul.f32 %v2562_v39, %v1611_v40 }
 0xbfd   : > { %2563 = vpow2.f32 %v2108_v41  ;;  %v1614_v44 = vadd.f32 %v1613_v42, %v3932_v43 }
 0xbff   : > { %2565 = vtanh.f32 %v1614_v44 }
 0xc07   : > { %v2564_v46 = vpop.eup %2563 }
 0xc08   : > { %v1604_v47 = vadd.f32 1.0, %v2564_v46 }
 0xc09   : > { %v2566_v48 = vpop.eup %2565 }
 0xc0a   : > { %2567 = vrcp.f32 %v1604_v47  ;;  %v1617_v49 = vrot.slane %v2566_v48, 2 }
 0xc0c   : > { %v1619_v51 = vsub.f32 %v4028_v19, %v1617_v49 }
 0xc0e   : > { %v1621_v52 = vrot.slane %v1619_v51, 6 }
 0xc14   : > { %v2568_v53 = vpop.eup %2567 }
 0xc15   : > { %v1623_v54 = vmul.f32 %v2568_v53, %v1621_v52 }
 0xc17   : > { %v4039_v55 = vadd.f32 %v2566_v48, %v1623_v54 }
 0xc19   : > { %v1626_v56 = vrot.slane %v4039_v55, 4 }
 0xc1b   : > { %2312 = vmatmul.mubr.msk.f32.vlgmr.msra.gmra.mrb[10].mxu0 %vm604_vm0, %v1626_v56 }
 0xcee   : > { %v1695_v58 = vpop.f32.mrb[10].mxu0 }
 0xcef   : > { %v1700_v59 = vrot.slane %v1695_v58, 2  ;;  %v1719_v61 = vadd.f32 %v1695_v58, %v3926_v37  ;;  %v2313_v62 = vpop.f32.mrb[11].mxu0 }
 0xcf1   : > { %v1721_v0 = vrot.slane %v1719_v61, 2  ;;  %1709 = vrot.lane.b32.xlu1 %v1700_v59, %s3258_s25  ;;  %v1702_v2 = vadd.f32 %v1700_v59, %v3924_v35 }
 0xcf3   : > { %1722 = vrot.lane.b32.xlu0 %v1721_v0, %s3254_s19  ;;  %v2110_v3 = vmul.f32 -1.442695, %v1702_v2 }
 0xcf5   : > { %2569 = vpow2.f32 %v2110_v3 }
 0xcff   : > { %v2570_v4 = vpop.eup %2569 }
 0xd00   : > { %v1706_v20 = vadd.f32 1.0, %v2570_v4 }
 0xd02   : > { %2571 = vrcp.f32 %v1706_v20 }
 0xd0c   : > { %v2572_v23 = vpop.eup %2571 }
 0xd63   : > { %v1710_v5 = vpop.permute.xlu1 %1709 }
 0xd64   : > { %v1712_v28 = vadd.f32 %v1710_v5, %v3921_v31  ;;  %v1742_v31 = vsel (!%p2112_p7), %vm1741_vm2, %v3943_v1, %v3960_v30 }
 0xd65   : > { %v1723_v27 = vpop.permute.xlu0 %1722  ;;  %v1744_v16 = vsel (!%p2112_p7), %vm1743_vm3, %v1742_v31, %v3979_v63 }
 0xd66   : > { %v2111_v6 = vmul.f32 -1.442695, %v1712_v28  ;;  %v1725_v37 = vmul.f32 %v2572_v23, %v1723_v27  ;;  %v1746_v18 = vsel (!%p2112_p7), %vm1745_vm4, %v1744_v16, %v3996_v29 }
 0xd67   : > { %1750 = vst.msk [vmem:[#allocation2] sm:$0xff] (!%p2112_p7), %vm604_vm0, %v1746_v18 }
 0xd68   : > { %2573 = vpow2.f32 %v2111_v6  ;;  %v1726_v7 = vadd.f32 %v1725_v37, %v3932_v43  ;;  %v1747_v43 = vsel (!%p2112_p7), %vm1741_vm2, %v4012_v60, %v4028_v19 }
 0xd69   : > { %v1748_v17 = vsel (!%p2112_p7), %vm1743_vm3, %v1747_v43, %v4039_v55 }
 0xd6a   : > { %2575 = vtanh.f32 %v1726_v7 }
 0xd72   : > { %v2574_v8 = vpop.eup %2573 }
 0xd73   : > { %v1716_v9 = vadd.f32 1.0, %v2574_v8 }
 0xd74   : > { %v2576_v10 = vpop.eup %2575 }
 0xd75   : > { %2577 = vrcp.f32 %v1716_v9  ;;  %v1729_v35 = vrot.slane %v2576_v10, 2 }
 0xd77   : > { %v1731_v11 = vsub.f32 %v4039_v55, %v1729_v35 }
 0xd79   : > { %v1733_v12 = vrot.slane %v1731_v11, 6 }
 0xd7c   : > { %1740 = sbr.rel (%p2112_p7) target bundleno = 3462 (0xd86), region = 116 }
 0xd7f   : > { %v2578_v13 = vpop.eup %2577 }
 0xd80   : > { %v1735_v14 = vmul.f32 %v2578_v13, %v1733_v12 }
 0xd82   : > { %v1736_v15 = vadd.f32 %v2576_v10, %v1735_v14 }
 0xd84   : > { %v1749_v21 = vsel %vm1745_vm4, %v1748_v17, %v1736_v15 }
 0xd85   : > { %1751 = vst.msk [vmem:[#allocation2 + $0x8] sm:$0xff] %vm604_vm0, %v1749_v21 }
 0xd86 PF: > { %p2113_p2 = scmp.ne.s32.totalorder %s3326_s0, 1 }
 0xd87   : > { %v1756_v45 = vrot.slane (!%p2113_p2), %v3943_v1, 1  ;;  %v1759_v22 = vrot.slane (!%p2113_p2), %v3979_v63, 3  ;;  %v1761_v24 = vrot.slane (!%p2113_p2), %v3996_v29, 4  ;;  %v1763_v25 = vrot.slane (!%p2113_p2), %v4012_v60, 5 }
 0xd88   : > { %1755 = sbr.rel (%p2113_p2) target bundleno = 3473 (0xd91), region = 120  ;;  %vm1769_vm5 = vcmask (!%p2113_p2), 1040384   ;;  %vm1771_vm6 = vcmask (!%p2113_p2), 1041408   ;;  %v1765_v26 = vrot.slane (!%p2113_p2), %v4028_v19, 6  ;;  %vm1773_vm7 = vcmask (!%p2113_p2), 1042432  }
 0xd89   : > { %v1770_v50 = vsel (!%p2113_p2), %vm1769_vm5, %v1756_v45, %v1070_v32  ;;  %vm1775_vm8 = vcmask (!%p2113_p2), 1043456   ;;  %v1767_v57 = vrot.slane (!%p2113_p2), %v4039_v55, 7  ;;  %vm1777_vm9 = vcmask (!%p2113_p2), 1044480  }
 0xd8a   : > { %v1772_v33 = vsel (!%p2113_p2), %vm1771_vm6, %v1770_v50, %v1759_v22  ;;  %vm1779_vm10 = vcmask (!%p2113_p2), 1045504   ;;  %vm1781_vm11 = vcmask (!%p2113_p2), 1046528  }
 0xd8b   : > { %v1774_v1 = vsel (!%p2113_p2), %vm1773_vm7, %v1772_v33, %v1761_v24 }
 0xd8c   : > { %v1776_v63 = vsel (!%p2113_p2), %vm1775_vm8, %v1774_v1, %v1763_v25 }
 0xd8d   : > { %v1778_v29 = vsel (!%p2113_p2), %vm1777_vm9, %v1776_v63, %v1765_v26 }
 0xd8e   : > { %v1780_v34 = vsel (!%p2113_p2), %vm1779_vm10, %v1778_v29, %v1767_v57 }
 0xd8f   : > { %v1782_v60 = vsel %vm1781_vm11, %v1780_v34, %v1736_v15 }
 0xd90   : > { %1783 = vst.msk [vmem:[#allocation11] sm:$0xff] %vm604_vm0, %v1782_v60 }
 0xd91 PF: > { %s3259_s13 = smov [#allocation11]  }
 0xd92   : > { %s1791_s21 = sshll.u32 %s3259_s13, 4  ;;  %s1792_s21 = int_to_ptr.vmem [resolvable:$true] %s1791_s21 }
 0xd93   : > { %s3097_s28 = scalar_lea.vmem %s1792_s21, 128  ;;  %p3104_p11 = scmp.lt.s32.totalorder %s1792_s21, %s1792_s21 }
 0xd94   : > { %p3098_p8 = scmp.ne.s32.totalorder %s1792_s21, %s3097_s28  ;;  %p3105_p1 = scmp.lt.s32.totalorder %s3097_s28, %s3097_s28 }
 0xd96   : > { %p3099_p4 = pnand %p3098_p8, %p2112_p7  ;;  %p3106_p3 = por %p3105_p1, %p3104_p11 }
 0xd98   : > { %p3100_p5 = pneg %p3099_p4 }
 0xd9a   : > { %p3107_p10 = pnand %p3106_p3, %p3100_p5 }
 0xd9c   : > { %3110 = shalt.err (!%p3107_p10)
}
 0xd9d   : > { %s3111_s20 = scalar_lea.hbm %s4113_s6, 128 }
 0xd9e   : > { %p3112_p12 = scmp.ne.s32.totalorder %s4113_s6, %s3111_s20  ;;  %p3117_p9 = scmp.lt.u32.totalorder %s3111_s20, %s4113_s6 }
 0xda0   : > { %p3113_p0 = pnand %p3112_p12, %p2112_p7 }
 0xda2   : > { %p3114_p6 = pneg %p3113_p0 }
 0xda4   : > { %p3119_p13 = pnand %p3117_p9, %p3114_p6 }
 0xda6   : > { %3122 = shalt.err (!%p3119_p13)
}
 0xda7   : > { %2428 = dma.vmem_to_hbm [thread:$0]  (%p2112_p7), %s1792_s21, 128, %s4113_s6, [#allocation8]  }
 0xda8   : > { %3214 = dma.done.wait (%p2112_p7), [#allocation8], 128  }
 0xda9   : > { %3216 = vsyncadd (%p2112_p7), [#allocation8], 4294967168 }
 0xdaa PF: > { %p24_p2 = scmp.ge.s32.totalorder %s3329_s11, 4   ;;  %s4206_s7 = smov %s3223_s8 }
 0xdab   : > { %s4207_s8 = smov %s3227_s9  ;;  %s4208_s9 = smov %s3339_s14 }
 0xdac   : > { %s4209_s10 = smov %s3329_s11  ;;  %26 = sbr.rel (!%p24_p2) target bundleno = 19 (0x13), region = 233 }
 0xdb3   :  { %1804 = vsyncpa [#allocation7], 1 }
 0xdb4   :  { %1806 = vsyncpa [#allocation7 + $0x1], 1 }
 0xdb5   :  { %1807 = vsyncpa [#allocation10], 1 }
 0xdb6   :  { %1809 = vsyncpa [#allocation10 + $0x1], 1 }
 0xdb7   :  { %1810 = vsyncpa [#allocation8], 1 }
 0xdb8   :  { %1812 = vsyncpa [#allocation8 + $0x1], 1 }
 0xdb9   :  { %1813 = vsyncmov [#allocation3] }
 0xdbc   :  { %s1814_s0 = vpop.sfrf %1813 }
 0xdbd   :  { %p2118_p7 = scmp.ne.s32.totalorder %s1814_s0, 0 }
 0xdbf   :  { %1818 = shalt.err (%p2118_p7)  }
 0xdc0   :  { %1820 = vsyncmov [#allocation3 + $0x1] }
 0xdc3   :  { %s1821_s12 = vpop.sfrf %1820 }
 0xdc4   :  { %p2119_p8 = scmp.ne.s32.totalorder %s1821_s12, 0 }
 0xdc6   :  { %1825 = shalt.err (%p2119_p8)  }
 0xdc7   :  { %1827 = vsyncmov [#allocation3 + $0x2] }
 0xdca   :  { %s1828_s27 = vpop.sfrf %1827 }
 0xdcb   :  { %p2120_p4 = scmp.ne.s32.totalorder %s1828_s27, 0 }
 0xdcd   :  { %1832 = shalt.err (%p2120_p4)  }
 0xdce   :  { %1834 = vsyncmov [#allocation3 + $0x3] }
 0xdd1   :  { %s1835_s11 = vpop.sfrf %1834 }
 0xdd2   :  { %p2121_p5 = scmp.ne.s32.totalorder %s1835_s11, 0 }
 0xdd4   :  { %1839 = shalt.err (%p2121_p5)  }
 0xdd5   :  { %1841 = vsyncmov [#allocation3 + $0x4] }
 0xdd8   :  { %s1842_s1 = vpop.sfrf %1841 }
 0xdd9   :  { %p2122_p11 = scmp.ne.s32.totalorder %s1842_s1, 0 }
 0xddb   :  { %1846 = shalt.err (%p2122_p11)  }
 0xddc   :  { %1848 = vsyncmov [#allocation3 + $0x5] }
 0xddf   :  { %s1849_s5 = vpop.sfrf %1848 }
 0xde0   :  { %p2123_p1 = scmp.ne.s32.totalorder %s1849_s5, 0 }
 0xde2   :  { %1853 = shalt.err (%p2123_p1)  }
 0xde3   :  { %1855 = vsyncmov [#allocation3 + $0x6] }
 0xde6   :  { %s1856_s6 = vpop.sfrf %1855 }
 0xde7   :  { %p2124_p3 = scmp.ne.s32.totalorder %s1856_s6, 0 }
 0xde9   :  { %1860 = shalt.err (%p2124_p3)  }
 0xdea   :  { %1862 = vsyncmov [#allocation3 + $0x7] }
 0xded   :  { %s1863_s8 = vpop.sfrf %1862 }
 0xdee   :  { %p2125_p10 = scmp.ne.s32.totalorder %s1863_s8, 0 }
 0xdf0   :  { %1867 = shalt.err (%p2125_p10)  }
 0xdf1   :  { %1869 = vsyncmov [#allocation3 + $0x8] }
 0xdf4   :  { %s1870_s9 = vpop.sfrf %1869 }
 0xdf5   :  { %p2126_p12 = scmp.ne.s32.totalorder %s1870_s9, 0 }
 0xdf7   :  { %1874 = shalt.err (%p2126_p12)  }
 0xdf8   :  { %1876 = vsyncmov [#allocation3 + $0x9] }
 0xdfb   :  { %s1877_s14 = vpop.sfrf %1876 }
 0xdfc   :  { %p2127_p0 = scmp.ne.s32.totalorder %s1877_s14, 0 }
 0xdfe   :  { %1881 = shalt.err (%p2127_p0)  }
 0xdff   :  { %1883 = vsyncmov [#allocation3 + $0xa] }
 0xe02   :  { %s1884_s16 = vpop.sfrf %1883 }
 0xe03   :  { %p2128_p6 = scmp.ne.s32.totalorder %s1884_s16, 0 }
 0xe05   :  { %1888 = shalt.err (%p2128_p6)  }
 0xe06   :  { %1890 = vsyncmov [#allocation3 + $0xb] }
 0xe09   :  { %s1891_s2 = vpop.sfrf %1890 }
 0xe0a   :  { %p2129_p9 = scmp.ne.s32.totalorder %s1891_s2, 0 }
 0xe0c   :  { %1895 = shalt.err (%p2129_p9)  }
 0xe0d   :  { %1897 = vsyncmov [#allocation3 + $0xc] }
 0xe10   :  { %s1898_s29 = vpop.sfrf %1897 }
 0xe11   :  { %p2130_p13 = scmp.ne.s32.totalorder %s1898_s29, 0 }
 0xe13   :  { %1902 = shalt.err (%p2130_p13)  }
 0xe14   :  { %1904 = vsyncmov [#allocation3 + $0xd] }
 0xe17   :  { %s1905_s18 = vpop.sfrf %1904 }
 0xe18   :  { %p2131_p2 = scmp.ne.s32.totalorder %s1905_s18, 0 }
 0xe1a   :  { %1909 = shalt.err (%p2131_p2)  }
 0xe1b   :  { %1911 = vsyncmov [#allocation3 + $0xe] }
 0xe1e   :  { %s1912_s30 = vpop.sfrf %1911 }
 0xe1f   :  { %p2132_p7 = scmp.ne.s32.totalorder %s1912_s30, 0 }
 0xe21   :  { %1916 = shalt.err (%p2132_p7)  }
 0xe22   :  { %1918 = vsyncmov [#allocation3 + $0xf] }
 0xe25   :  { %s1919_s22 = vpop.sfrf %1918 }
 0xe26   :  { %p2133_p8 = scmp.ne.s32.totalorder %s1919_s22, 0 }
 0xe28   :  { %1923 = shalt.err (%p2133_p8)  }

</bundles_post_ra>
